<compile_context>
chip_gen: v7x
topology: tpu7x:2x2x1
jax: 0.10.0
libtpu: 0.0.40
codegen_flags: <defaults>
</compile_context>

<pallas_src>
import math

import numpy as np
import jax
import jax.numpy as jnp
from jax.experimental import pallas as pl
from jax.experimental.pallas import tpu as pltpu  # noqa: F401  (kept for TPU-specific params if needed)

HIDDEN = 32          # hidden_channels == out_channels
HEADS = 4            # num_heads
HEAD_DIM = HIDDEN // HEADS
NUM_LAYERS = 2       # num_layers

NODE_TYPES = ("author", "paper")
NODE_IN_DIMS = {"author": 8, "paper": 16}
NUM_NODES = {"author": 16, "paper": 24}
EDGE_TYPES = (("author", "writes", "paper"), ("paper", "rev_writes", "author"))
NUM_EDGES = 48

N_AUTHOR = NUM_NODES["author"]
N_PAPER = NUM_NODES["paper"]
N_TOTAL = N_AUTHOR + N_PAPER
ROW_OFF = {"author": 0, "paper": N_AUTHOR}   # global row offset of each node type
NT_COL = {"author": 0, "paper": 1}           # lane-half index of each node type


# ---------------------------------------------------------------------------
# Fused Pallas kernel: whole GNNEncoder forward, VMEM-resident, one launch.
# ---------------------------------------------------------------------------

def _fused_forward_kernel(
    x_ref, lin_w_ref, lin_b_ref,
    kqv_w_ref, kqv_b_ref, a_w_ref, a_b_ref, skip_ref,
    km_rel_ref, prel_ref, bmat_ref,
    g_src_ref, g_dst_ref, g_dst_t_ref, same_dst_ref,
    out_ref,
):
    f32 = jnp.float32

    def mm(a, b):
        return jnp.dot(a, b, preferred_element_type=f32)

    def erf(x):
        # Abramowitz & Stegun 7.1.26, |err| < 1.5e-7 (matches torch erf-GELU to f32 tol)
        a1, a2, a3 = 0.254829592, -0.284496736, 1.421413741
        a4, a5, pp_ = -1.453152027, 1.061405429, 0.3275911
        sgn = jnp.where(x < 0.0, -1.0, 1.0)
        ax = jnp.abs(x)
        t = 1.0 / (1.0 + pp_ * ax)
        poly = ((((a5 * t + a4) * t + a3) * t + a2) * t + a1) * t
        return sgn * (1.0 - poly * jnp.exp(-ax * ax))

    def gelu(x):
        return 0.5 * x * (1.0 + erf(x * (1.0 / math.sqrt(2.0))))

    bmat64 = bmat_ref[...]           # [32, 64]: same-head indicator, tiled over both halves

    # ---- input Linear + ReLU -----------------------------------------------------
    # Block-diagonal weights keep each node type's activations in its own 32-lane half
    # of the [N, 64] slab (author -> lanes 0:32, paper -> lanes 32:64); ReLU(0)=0
    # preserves the invariant, so no per-layer masking is ever needed.
    hb = jnp.maximum(mm(x_ref[...], lin_w_ref[...]) + lin_b_ref[...], 0.0)   # [N, 64]

    # ---- HGTConv layers (static 2-layer / 2-edge-type unroll) ---------------------
    for l in range(NUM_LAYERS):
        # One type-stacked kqv matmul for BOTH node types -> unified [N, 96] = [k|v|q]
        kqv = mm(hb, kqv_w_ref[l]) + kqv_b_ref[l]
        kv = kqv[:, 0:2 * HIDDEN]                     # [N, 64] (k | v), contiguous slice
        q = kqv[:, 2 * HIDDEN:3 * HIDDEN]             # [N, 32]

        agg = jnp.zeros((hb.shape[0], 2 * HIDDEN), f32)   # dst-type-blocked [N, 64]
        for et in range(2):
            # Fused a_rel/m_rel transform: one [N,64]@[64,96] matmul yields
            # [k_rel | v_rel], with the m_rel block routing v into the
            # destination-type lane half so the later scatter is blocked for free.
            kvr = mm(kv, km_rel_ref[l, et])                       # [N, 96]
            kvr_e = mm(g_src_ref[et], kvr)                        # [E, 96] gather sources
            k_e = kvr_e[:, 0:HIDDEN]                              # [E, 32]
            v_e = kvr_e[:, HIDDEN:3 * HIDDEN]                     # [E, 64] (dst-half only)
            q_e = mm(g_dst_ref[et], q)                            # [E, 32] gather dests
            # per-head logits replicated across both 32-lane halves; scale folded
            # into prel at pack time.
            logits = mm(q_e * k_e, bmat64) * prel_ref[l, et]      # [E, 64]
            # segment softmax (shift by global per-lane max; shift-invariant).
            m = jnp.max(logits, axis=0, keepdims=True)
            ex = jnp.exp(logits - m)
            seg = mm(same_dst_ref[et], ex)                        # per-dst sums -> edges
            alpha = ex * pl.reciprocal(seg + 1e-16, approx=True)  # EUP reciprocal
            agg = agg + mm(g_dst_t_ref[et], v_e * alpha)          # [N, 64] scatter-add

        # out = a_lin(gelu(agg)) with block-diagonal weights -> output stays blocked;
        # gated skip with precomputed per-row sigmoid(skip).
        out = mm(gelu(agg), a_w_ref[l]) + a_b_ref[l]              # [N, 64]
        gate = skip_ref[l]                                        # [N, 1]
        hb = gate * out + (1.0 - gate) * hb

    # Collapse the two type halves (exactly one is nonzero per row).
    out_ref[...] = hb[:, 0:HIDDEN] + hb[:, HIDDEN:2 * HIDDEN]


@jax.jit
def _fused_call(xa, xp, pp, pe):
    na, da = xa.shape
    npp, dp = xp.shape
    # Type-blocked input slab: author rows use feature cols 0:da, paper rows da:da+dp.
    x_slab = jnp.zeros((na + npp, da + dp), jnp.float32)
    x_slab = jax.lax.dynamic_update_slice(x_slab, xa, (0, 0))
    x_slab = jax.lax.dynamic_update_slice(x_slab, xp, (na, da))
    out = pl.pallas_call(
        _fused_forward_kernel,
        out_shape=jax.ShapeDtypeStruct((na + npp, HIDDEN), jnp.float32),
    )(x_slab,
      pp["lin_w"], pp["lin_b"],
      pp["kqv_w"], pp["kqv_b"], pp["a_w"], pp["a_b"], pp["skip_gate"],
      pp["km_rel"], pp["prel"], pp["bmat"],
      pe["g_src"], pe["g_dst"], pe["g_dst_t"], pe["same_dst"])
    return out[:na], out[na:]


def gnn_encoder_forward(packed_params, packed_edges, x_dict):
    out_a, out_p = _fused_call(x_dict["author"], x_dict["paper"],
                               packed_params, packed_edges)
    return {"author": out_a, "paper": out_p}


# ---------------------------------------------------------------------------
# One-time parameter / edge-index packing for the fused kernel layout
# ---------------------------------------------------------------------------

def _block_diag(*mats):
    rows = sum(m.shape[0] for m in mats)
    cols = sum(m.shape[1] for m in mats)
    out = jnp.zeros((rows, cols), jnp.float32)
    r = c = 0
    for m in mats:
        out = out.at[r:r + m.shape[0], c:c + m.shape[1]].set(m)
        r += m.shape[0]
        c += m.shape[1]
    return out


def _head_block_diag(rel):
    # rel: [H, D, D] -> [H*D, H*D] (head h at rows/cols [8h, 8h+8))
    return _block_diag(*[rel[i] for i in range(rel.shape[0])])


def _rows_per_type(val_author, val_paper):
    # per-row (unified) values: [N_TOTAL, W]
    return jnp.concatenate([jnp.tile(val_author, (N_AUTHOR, 1)),
                            jnp.tile(val_paper, (N_PAPER, 1))], axis=0)


def _rows_blocked(val_author, val_paper):
    # per-row type-blocked: author rows -> [val_a | 0], paper rows -> [0 | val_p]
    w = val_author.shape[1]
    z = jnp.zeros((1, w), jnp.float32)
    top = jnp.tile(jnp.concatenate([val_author, z], axis=1), (N_AUTHOR, 1))
    bot = jnp.tile(jnp.concatenate([z, val_paper], axis=1), (N_PAPER, 1))
    return jnp.concatenate([top, bot], axis=0)


def pack_params(params):
    scale = 1.0 / math.sqrt(HEAD_DIM)

    # Input Linear: block-diagonal weights + per-row blocked bias.
    lin_w = _block_diag(params["lin_dict"]["author"]["w"],
                        params["lin_dict"]["paper"]["w"])              # [24, 64]
    lin_b = _rows_blocked(params["lin_dict"]["author"]["b"],
                          params["lin_dict"]["paper"]["b"])            # [40, 64]

    kqv_w, kqv_b, a_w, a_b, skip_gate, km_rel, prel = ([] for _ in range(7))
    for layer in params["convs"]:
        # kqv: type-stacked along input dim, [k|v|q] along output dim.
        w_blocks, b_types = [], []
        for nt in NODE_TYPES:
            p = layer["nodes"][nt]
            w_blocks.append(jnp.concatenate([p["k_w"], p["v_w"], p["q_w"]], axis=1))
            b_types.append(jnp.concatenate([p["k_b"], p["v_b"], p["q_b"]], axis=1))
        kqv_w.append(jnp.concatenate(w_blocks, axis=0))                # [64, 96]
        kqv_b.append(_rows_per_type(b_types[0], b_types[1]))           # [40, 96]

        # Output Linear: block-diagonal so the output stays type-blocked.
        a_w.append(_block_diag(layer["nodes"]["author"]["a_w"],
                               layer["nodes"]["paper"]["a_w"]))        # [64, 64]
        a_b.append(_rows_blocked(layer["nodes"]["author"]["a_b"],
                                 layer["nodes"]["paper"]["a_b"]))      # [40, 64]

        # Skip gate folded: per-row sigmoid(skip).
        skip_gate.append(_rows_per_type(jax.nn.sigmoid(layer["nodes"]["author"]["skip"]),
                                        jax.nn.sigmoid(layer["nodes"]["paper"]["skip"])))

        km_list, pr_list = [], []
        for et in EDGE_TYPES:
            _, _, dst_t = et
            ep = layer["edges"][et]
            a_bd = _head_block_diag(ep["a_rel"])                       # [32, 32]
            m_bd = _head_block_diag(ep["m_rel"])                       # [32, 32]
            km = jnp.zeros((2 * HIDDEN, 3 * HIDDEN), jnp.float32)      # [64, 96]
            km = km.at[0:HIDDEN, 0:HIDDEN].set(a_bd)                   # k -> k_rel
            off = HIDDEN + NT_COL[dst_t] * HIDDEN                      # v -> dst-type half
            km = km.at[HIDDEN:2 * HIDDEN, off:off + HIDDEN].set(m_bd)
            km_list.append(km)
            pr = jnp.repeat(ep["p_rel"], HEAD_DIM, axis=1) * scale     # [1, 32], scale folded
            pr_list.append(jnp.tile(pr, (1, 2)))                       # [1, 64]
        km_rel.append(jnp.stack(km_list))
        prel.append(jnp.stack(pr_list))

    # Same-head indicator, duplicated over both lane halves (numpy, no in-kernel iotas).
    bmat = np.kron(np.eye(HEADS, dtype=np.float32),
                   np.ones((HEAD_DIM, HEAD_DIM), np.float32))
    bmat64 = jnp.asarray(np.tile(bmat, (1, 2)))                        # [32, 64]

    return {
        "lin_w": lin_w, "lin_b": lin_b,
        "kqv_w": jnp.stack(kqv_w), "kqv_b": jnp.stack(kqv_b),
        "a_w": jnp.stack(a_w), "a_b": jnp.stack(a_b),
        "skip_gate": jnp.stack(skip_gate),
        "km_rel": jnp.stack(km_rel), "prel": jnp.stack(prel),
        "bmat": bmat64,
    }


def pack_edges(edge_index_dict):
    # One-hot gather/scatter operators over GLOBAL rows (author 0:16, paper 16:40) and
    # the [E,E] same-destination matrix; all static, built once, reused by both layers.
    g_src, g_dst, g_dst_t, same_dst = [], [], [], []
    for et in EDGE_TYPES:
        src_t, _, dst_t = et
        ei = edge_index_dict[et]
        src = ei[0].astype(jnp.int32) + ROW_OFF[src_t]
        dst = ei[1].astype(jnp.int32) + ROW_OFF[dst_t]
        gs = jax.nn.one_hot(src, N_TOTAL, dtype=jnp.float32)          # [E, N]
        gd = jax.nn.one_hot(dst, N_TOTAL, dtype=jnp.float32)          # [E, N]
        g_src.append(gs)
        g_dst.append(gd)
        g_dst_t.append(gd.T)                                          # [N, E]
        same_dst.append(gd @ gd.T)                                    # [E, E]
    return {"g_src": jnp.stack(g_src), "g_dst": jnp.stack(g_dst),
            "g_dst_t": jnp.stack(g_dst_t), "same_dst": jnp.stack(same_dst)}


# ---------------------------------------------------------------------------
# Pure-JAX reference (same math) for a correctness cross-check
# ---------------------------------------------------------------------------

def reference_forward(params, x_dict, edge_index_dict):
    h = {}
    for nt, x in x_dict.items():
        p = params["lin_dict"][nt]
        h[nt] = jnp.maximum(x @ p["w"] + p["b"], 0.0)
    for layer in params["convs"]:
        kd, qd, vd = {}, {}, {}
        for nt, x in h.items():
            p = layer["nodes"][nt]
            n = x.shape[0]
            kd[nt] = (x @ p["k_w"] + p["k_b"]).reshape(n, HEADS, HEAD_DIM)
            qd[nt] = (x @ p["q_w"] + p["q_b"]).reshape(n, HEADS, HEAD_DIM)
            vd[nt] = (x @ p["v_w"] + p["v_b"]).reshape(n, HEADS, HEAD_DIM)
        agg = {nt: jnp.zeros((h[nt].shape[0], HIDDEN), jnp.float32) for nt in h}
        for et, ei in edge_index_dict.items():
            s, _, d = et
            ep = layer["edges"][et]
            k_rel = jnp.einsum("nhd,hde->nhe", kd[s], ep["a_rel"])
            v_rel = jnp.einsum("nhd,hde->nhe", vd[s], ep["m_rel"])
            src, dst = ei[0], ei[1]
            q_e, k_e, v_e = qd[d][dst], k_rel[src], v_rel[src]
            logits = jnp.sum(q_e * k_e, -1) * ep["p_rel"] * (1.0 / math.sqrt(HEAD_DIM))
            n_dst = h[d].shape[0]
            seg_max = jax.ops.segment_max(logits, dst, num_segments=n_dst)
            ex = jnp.exp(logits - seg_max[dst])
            seg_sum = jax.ops.segment_sum(ex, dst, num_segments=n_dst)
            alpha = ex / (seg_sum[dst] + 1e-16)
            msg = v_e * alpha[:, :, None]
            agg[d] = agg[d] + jax.ops.segment_sum(
                msg, dst, num_segments=n_dst).reshape(n_dst, HIDDEN)
        new_h = {}
        for nt, x in h.items():
            p = layer["nodes"][nt]
            out = jax.nn.gelu(agg[nt], approximate=False) @ p["a_w"] + p["a_b"]
            a = jax.nn.sigmoid(p["skip"])
            new_h[nt] = a * out + (1.0 - a) * x
        h = new_h
    return h


# ---------------------------------------------------------------------------
# Deterministic parameter init (same structure as the PyTorch module)
# ---------------------------------------------------------------------------

def init_params(key):
    def nxt():
        nonlocal key
        key, sub = jax.random.split(key)
        return sub

    params = {"lin_dict": {}, "convs": []}
    for nt in NODE_TYPES:
        fin = NODE_IN_DIMS[nt]
        params["lin_dict"][nt] = {
            "w": jax.random.normal(nxt(), (fin, HIDDEN), jnp.float32) / math.sqrt(fin),
            "b": 0.01 * jax.random.normal(nxt(), (1, HIDDEN), jnp.float32),
        }
    for _ in range(NUM_LAYERS):
        layer = {"nodes": {}, "edges": {}}
        s = 1.0 / math.sqrt(HIDDEN)
        for nt in NODE_TYPES:
            layer["nodes"][nt] = {
                "k_w": s * jax.random.normal(nxt(), (HIDDEN, HIDDEN), jnp.float32),
                "k_b": 0.01 * jax.random.normal(nxt(), (1, HIDDEN), jnp.float32),
                "q_w": s * jax.random.normal(nxt(), (HIDDEN, HIDDEN), jnp.float32),
                "q_b": 0.01 * jax.random.normal(nxt(), (1, HIDDEN), jnp.float32),
                "v_w": s * jax.random.normal(nxt(), (HIDDEN, HIDDEN), jnp.float32),
                "v_b": 0.01 * jax.random.normal(nxt(), (1, HIDDEN), jnp.float32),
                "a_w": s * jax.random.normal(nxt(), (HIDDEN, HIDDEN), jnp.float32),
                "a_b": 0.01 * jax.random.normal(nxt(), (1, HIDDEN), jnp.float32),
                "skip": jnp.ones((1, 1), jnp.float32),     # torch init: ones
            }
        g = math.sqrt(2.0 / (HEAD_DIM + HEAD_DIM))         # glorot-ish std
        for et in EDGE_TYPES:
            layer["edges"][et] = {
                "a_rel": g * jax.random.normal(nxt(), (HEADS, HEAD_DIM, HEAD_DIM), jnp.float32),
                "m_rel": g * jax.random.normal(nxt(), (HEADS, HEAD_DIM, HEAD_DIM), jnp.float32),
                "p_rel": jnp.ones((1, HEADS), jnp.float32),
            }
        params["convs"].append(layer)
    return params


if __name__ == "__main__":
    key = jax.random.PRNGKey(0)
    keys = jax.random.split(key, 7)
    x_dict = {
        "author": jax.random.normal(keys[0], (NUM_NODES["author"], NODE_IN_DIMS["author"]),
                                    jnp.float32),
        "paper": jax.random.normal(keys[1], (NUM_NODES["paper"], NODE_IN_DIMS["paper"]),
                                   jnp.float32),
    }
    edge_index_dict = {
        ("author", "writes", "paper"): jnp.stack([
            jax.random.randint(keys[2], (NUM_EDGES,), 0, NUM_NODES["author"]),
            jax.random.randint(keys[3], (NUM_EDGES,), 0, NUM_NODES["paper"]),
        ]),
        ("paper", "rev_writes", "author"): jnp.stack([
            jax.random.randint(keys[4], (NUM_EDGES,), 0, NUM_NODES["paper"]),
            jax.random.randint(keys[5], (NUM_EDGES,), 0, NUM_NODES["author"]),
        ]),
    }
    params = init_params(keys[6])

    packed_params = pack_params(params)         # one-time repack (block-diag, type-stacked)
    packed_edges = pack_edges(edge_index_dict)  # one-time edge operator precompute

    out = gnn_encoder_forward(packed_params, packed_edges, x_dict)
    for nt, v in out.items():
        jax.block_until_ready(v)
        assert v.shape == (NUM_NODES[nt], HIDDEN)
        assert bool(jnp.all(jnp.isfinite(v)))

    ref = reference_forward(params, x_dict, edge_index_dict)
    for nt in out:
        diff = float(jnp.max(jnp.abs(out[nt] - ref[nt])))
        assert diff < 5e-3, f"{nt}: max |diff| = {diff}"

    print("KERNEL_OK")
</pallas_src>

<mosaic_0001>
module attributes {stable_mosaic.version = 11 : i64} {
  func.func @_fused_forward_kernel(%arg0: memref<40x24xf32, #tpu.memory_space<vmem>>, %arg1: memref<24x64xf32, #tpu.memory_space<vmem>>, %arg2: memref<40x64xf32, #tpu.memory_space<vmem>>, %arg3: memref<2x64x96xf32, #tpu.memory_space<vmem>>, %arg4: memref<2x40x96xf32, #tpu.memory_space<vmem>>, %arg5: memref<2x64x64xf32, #tpu.memory_space<vmem>>, %arg6: memref<2x40x64xf32, #tpu.memory_space<vmem>>, %arg7: memref<2x40x1xf32, #tpu.memory_space<vmem>>, %arg8: memref<2x2x64x96xf32, #tpu.memory_space<vmem>>, %arg9: memref<2x2x1x64xf32, #tpu.memory_space<vmem>>, %arg10: memref<32x64xf32, #tpu.memory_space<vmem>>, %arg11: memref<2x48x40xf32, #tpu.memory_space<vmem>>, %arg12: memref<2x48x40xf32, #tpu.memory_space<vmem>>, %arg13: memref<2x40x48xf32, #tpu.memory_space<vmem>>, %arg14: memref<2x48x48xf32, #tpu.memory_space<vmem>>, %arg15: memref<40x32xf32, #tpu.memory_space<vmem>>) attributes {dimension_semantics = [], scalar_prefetch = 0 : i64, scratch_operands = 0 : i64, tpu.core_type = #tpu.core_type<tc>} {
    %c0 = arith.constant 0 : index
    %c0_0 = arith.constant 0 : index
    %0 = vector.load %arg10[%c0, %c0_0] : memref<32x64xf32, #tpu.memory_space<vmem>>, vector<32x64xf32>
    %c0_1 = arith.constant 0 : index
    %c0_2 = arith.constant 0 : index
    %1 = vector.load %arg0[%c0_1, %c0_2] : memref<40x24xf32, #tpu.memory_space<vmem>>, vector<40x24xf32>
    %c0_3 = arith.constant 0 : index
    %c0_4 = arith.constant 0 : index
    %2 = vector.load %arg1[%c0_3, %c0_4] : memref<24x64xf32, #tpu.memory_space<vmem>>, vector<24x64xf32>
    %cst = arith.constant dense<0.000000e+00> : vector<40x64xf32>
    %3 = tpu.matmul %1, %2, %cst {dimension_numbers = #tpu.dot_dimension_numbers<[1], [0], [0], [1], [0, 0, 1, 1], [], []>} : vector<40x24xf32>, vector<24x64xf32>, vector<40x64xf32> -> vector<40x64xf32>
    %c0_5 = arith.constant 0 : index
    %c0_6 = arith.constant 0 : index
    %4 = vector.load %arg2[%c0_5, %c0_6] : memref<40x64xf32, #tpu.memory_space<vmem>>, vector<40x64xf32>
    %5 = arith.addf %3, %4 : vector<40x64xf32>
    %cst_7 = arith.constant 0.000000e+00 : f32
    %6 = vector.broadcast %cst_7 : f32 to vector<40x64xf32>
    %7 = arith.maximumf %5, %6 : vector<40x64xf32>
    %c0_8 = arith.constant 0 : index
    %c0_9 = arith.constant 0 : index
    %c0_10 = arith.constant 0 : index
    %8 = vector.load %arg3[%c0_8, %c0_9, %c0_10] : memref<2x64x96xf32, #tpu.memory_space<vmem>>, vector<1x64x96xf32>
    %9 = vector.shape_cast %8 : vector<1x64x96xf32> to vector<64x96xf32>
    %cst_11 = arith.constant dense<0.000000e+00> : vector<40x96xf32>
    %10 = tpu.matmul %7, %9, %cst_11 {dimension_numbers = #tpu.dot_dimension_numbers<[1], [0], [0], [1], [0, 0, 1, 1], [], []>} : vector<40x64xf32>, vector<64x96xf32>, vector<40x96xf32> -> vector<40x96xf32>
    %c0_12 = arith.constant 0 : index
    %c0_13 = arith.constant 0 : index
    %c0_14 = arith.constant 0 : index
    %11 = vector.load %arg4[%c0_12, %c0_13, %c0_14] : memref<2x40x96xf32, #tpu.memory_space<vmem>>, vector<1x40x96xf32>
    %12 = vector.shape_cast %11 : vector<1x40x96xf32> to vector<40x96xf32>
    %13 = arith.addf %10, %12 : vector<40x96xf32>
    %14 = vector.extract_strided_slice %13 {offsets = [0, 0], sizes = [40, 64], strides = [1, 1]} : vector<40x96xf32> to vector<40x64xf32>
    %15 = vector.extract_strided_slice %13 {offsets = [0, 64], sizes = [40, 32], strides = [1, 1]} : vector<40x96xf32> to vector<40x32xf32>
    %cst_15 = arith.constant 0.000000e+00 : f32
    %16 = vector.broadcast %cst_15 : f32 to vector<40x64xf32>
    %c0_16 = arith.constant 0 : index
    %c0_17 = arith.constant 0 : index
    %c0_18 = arith.constant 0 : index
    %c0_19 = arith.constant 0 : index
    %17 = vector.load %arg8[%c0_16, %c0_17, %c0_18, %c0_19] : memref<2x2x64x96xf32, #tpu.memory_space<vmem>>, vector<1x1x64x96xf32>
    %18 = vector.shape_cast %17 : vector<1x1x64x96xf32> to vector<64x96xf32>
    %cst_20 = arith.constant dense<0.000000e+00> : vector<40x96xf32>
    %19 = tpu.matmul %14, %18, %cst_20 {dimension_numbers = #tpu.dot_dimension_numbers<[1], [0], [0], [1], [0, 0, 1, 1], [], []>} : vector<40x64xf32>, vector<64x96xf32>, vector<40x96xf32> -> vector<40x96xf32>
    %c0_21 = arith.constant 0 : index
    %c0_22 = arith.constant 0 : index
    %c0_23 = arith.constant 0 : index
    %20 = vector.load %arg11[%c0_21, %c0_22, %c0_23] : memref<2x48x40xf32, #tpu.memory_space<vmem>>, vector<1x48x40xf32>
    %21 = vector.shape_cast %20 : vector<1x48x40xf32> to vector<48x40xf32>
    %cst_24 = arith.constant dense<0.000000e+00> : vector<48x96xf32>
    %22 = tpu.matmul %21, %19, %cst_24 {dimension_numbers = #tpu.dot_dimension_numbers<[1], [0], [0], [1], [0, 0, 1, 1], [], []>} : vector<48x40xf32>, vector<40x96xf32>, vector<48x96xf32> -> vector<48x96xf32>
    %23 = vector.extract_strided_slice %22 {offsets = [0, 0], sizes = [48, 32], strides = [1, 1]} : vector<48x96xf32> to vector<48x32xf32>
    %24 = vector.extract_strided_slice %22 {offsets = [0, 32], sizes = [48, 64], strides = [1, 1]} : vector<48x96xf32> to vector<48x64xf32>
    %c0_25 = arith.constant 0 : index
    %c0_26 = arith.constant 0 : index
    %c0_27 = arith.constant 0 : index
    %25 = vector.load %arg12[%c0_25, %c0_26, %c0_27] : memref<2x48x40xf32, #tpu.memory_space<vmem>>, vector<1x48x40xf32>
    %26 = vector.shape_cast %25 : vector<1x48x40xf32> to vector<48x40xf32>
    %cst_28 = arith.constant dense<0.000000e+00> : vector<48x32xf32>
    %27 = tpu.matmul %26, %15, %cst_28 {dimension_numbers = #tpu.dot_dimension_numbers<[1], [0], [0], [1], [0, 0, 1, 1], [], []>} : vector<48x40xf32>, vector<40x32xf32>, vector<48x32xf32> -> vector<48x32xf32>
    %28 = arith.mulf %27, %23 : vector<48x32xf32>
    %cst_29 = arith.constant dense<0.000000e+00> : vector<48x64xf32>
    %29 = tpu.matmul %28, %0, %cst_29 {dimension_numbers = #tpu.dot_dimension_numbers<[1], [0], [0], [1], [0, 0, 1, 1], [], []>} : vector<48x32xf32>, vector<32x64xf32>, vector<48x64xf32> -> vector<48x64xf32>
    %c0_30 = arith.constant 0 : index
    %c0_31 = arith.constant 0 : index
    %c0_32 = arith.constant 0 : index
    %c0_33 = arith.constant 0 : index
    %30 = vector.load %arg9[%c0_30, %c0_31, %c0_32, %c0_33] : memref<2x2x1x64xf32, #tpu.memory_space<vmem>>, vector<1x1x1x64xf32>
    %31 = vector.shape_cast %30 : vector<1x1x1x64xf32> to vector<1x64xf32>
    %32 = vector.broadcast %31 : vector<1x64xf32> to vector<48x64xf32>
    %33 = arith.mulf %29, %32 : vector<48x64xf32>
    %cst_34 = arith.constant dense<0xFF800000> : vector<64xf32>
    %34 = vector.multi_reduction <maximumf>, %33, %cst_34 [0] : vector<48x64xf32> to vector<64xf32>
    %35 = vector.shape_cast %34 : vector<64xf32> to vector<1x64xf32>
    %36 = vector.broadcast %35 : vector<1x64xf32> to vector<48x64xf32>
    %37 = arith.subf %33, %36 : vector<48x64xf32>
    %38 = math.exp %37 : vector<48x64xf32>
    %c0_35 = arith.constant 0 : index
    %c0_36 = arith.constant 0 : index
    %c0_37 = arith.constant 0 : index
    %39 = vector.load %arg14[%c0_35, %c0_36, %c0_37] : memref<2x48x48xf32, #tpu.memory_space<vmem>>, vector<1x48x48xf32>
    %40 = vector.shape_cast %39 : vector<1x48x48xf32> to vector<48x48xf32>
    %cst_38 = arith.constant dense<0.000000e+00> : vector<48x64xf32>
    %41 = tpu.matmul %40, %38, %cst_38 {dimension_numbers = #tpu.dot_dimension_numbers<[1], [0], [0], [1], [0, 0, 1, 1], [], []>} : vector<48x48xf32>, vector<48x64xf32>, vector<48x64xf32> -> vector<48x64xf32>
    %cst_39 = arith.constant 1.000000e-16 : f32
    %42 = vector.broadcast %cst_39 : f32 to vector<48x64xf32>
    %43 = arith.addf %41, %42 : vector<48x64xf32>
    %44 = tpu.reciprocal %43 {approx = true} : vector<48x64xf32> -> vector<48x64xf32>
    %45 = arith.mulf %38, %44 : vector<48x64xf32>
    %c0_40 = arith.constant 0 : index
    %c0_41 = arith.constant 0 : index
    %c0_42 = arith.constant 0 : index
    %46 = vector.load %arg13[%c0_40, %c0_41, %c0_42] : memref<2x40x48xf32, #tpu.memory_space<vmem>>, vector<1x40x48xf32>
    %47 = vector.shape_cast %46 : vector<1x40x48xf32> to vector<40x48xf32>
    %48 = arith.mulf %24, %45 : vector<48x64xf32>
    %cst_43 = arith.constant dense<0.000000e+00> : vector<40x64xf32>
    %49 = tpu.matmul %47, %48, %cst_43 {dimension_numbers = #tpu.dot_dimension_numbers<[1], [0], [0], [1], [0, 0, 1, 1], [], []>} : vector<40x48xf32>, vector<48x64xf32>, vector<40x64xf32> -> vector<40x64xf32>
    %50 = arith.addf %16, %49 : vector<40x64xf32>
    %c0_44 = arith.constant 0 : index
    %c1 = arith.constant 1 : index
    %c0_45 = arith.constant 0 : index
    %c0_46 = arith.constant 0 : index
    %51 = vector.load %arg8[%c0_44, %c1, %c0_45, %c0_46] : memref<2x2x64x96xf32, #tpu.memory_space<vmem>>, vector<1x1x64x96xf32>
    %52 = vector.shape_cast %51 : vector<1x1x64x96xf32> to vector<64x96xf32>
    %cst_47 = arith.constant dense<0.000000e+00> : vector<40x96xf32>
    %53 = tpu.matmul %14, %52, %cst_47 {dimension_numbers = #tpu.dot_dimension_numbers<[1], [0], [0], [1], [0, 0, 1, 1], [], []>} : vector<40x64xf32>, vector<64x96xf32>, vector<40x96xf32> -> vector<40x96xf32>
    %c1_48 = arith.constant 1 : index
    %c0_49 = arith.constant 0 : index
    %c0_50 = arith.constant 0 : index
    %54 = vector.load %arg11[%c1_48, %c0_49, %c0_50] : memref<2x48x40xf32, #tpu.memory_space<vmem>>, vector<1x48x40xf32>
    %55 = vector.shape_cast %54 : vector<1x48x40xf32> to vector<48x40xf32>
    %cst_51 = arith.constant dense<0.000000e+00> : vector<48x96xf32>
    %56 = tpu.matmul %55, %53, %cst_51 {dimension_numbers = #tpu.dot_dimension_numbers<[1], [0], [0], [1], [0, 0, 1, 1], [], []>} : vector<48x40xf32>, vector<40x96xf32>, vector<48x96xf32> -> vector<48x96xf32>
    %57 = vector.extract_strided_slice %56 {offsets = [0, 0], sizes = [48, 32], strides = [1, 1]} : vector<48x96xf32> to vector<48x32xf32>
    %58 = vector.extract_strided_slice %56 {offsets = [0, 32], sizes = [48, 64], strides = [1, 1]} : vector<48x96xf32> to vector<48x64xf32>
    %c1_52 = arith.constant 1 : index
    %c0_53 = arith.constant 0 : index
    %c0_54 = arith.constant 0 : index
    %59 = vector.load %arg12[%c1_52, %c0_53, %c0_54] : memref<2x48x40xf32, #tpu.memory_space<vmem>>, vector<1x48x40xf32>
    %60 = vector.shape_cast %59 : vector<1x48x40xf32> to vector<48x40xf32>
    %cst_55 = arith.constant dense<0.000000e+00> : vector<48x32xf32>
    %61 = tpu.matmul %60, %15, %cst_55 {dimension_numbers = #tpu.dot_dimension_numbers<[1], [0], [0], [1], [0, 0, 1, 1], [], []>} : vector<48x40xf32>, vector<40x32xf32>, vector<48x32xf32> -> vector<48x32xf32>
    %62 = arith.mulf %61, %57 : vector<48x32xf32>
    %cst_56 = arith.constant dense<0.000000e+00> : vector<48x64xf32>
    %63 = tpu.matmul %62, %0, %cst_56 {dimension_numbers = #tpu.dot_dimension_numbers<[1], [0], [0], [1], [0, 0, 1, 1], [], []>} : vector<48x32xf32>, vector<32x64xf32>, vector<48x64xf32> -> vector<48x64xf32>
    %c0_57 = arith.constant 0 : index
    %c1_58 = arith.constant 1 : index
    %c0_59 = arith.constant 0 : index
    %c0_60 = arith.constant 0 : index
    %64 = vector.load %arg9[%c0_57, %c1_58, %c0_59, %c0_60] : memref<2x2x1x64xf32, #tpu.memory_space<vmem>>, vector<1x1x1x64xf32>
    %65 = vector.shape_cast %64 : vector<1x1x1x64xf32> to vector<1x64xf32>
    %66 = vector.broadcast %65 : vector<1x64xf32> to vector<48x64xf32>
    %67 = arith.mulf %63, %66 : vector<48x64xf32>
    %cst_61 = arith.constant dense<0xFF800000> : vector<64xf32>
    %68 = vector.multi_reduction <maximumf>, %67, %cst_61 [0] : vector<48x64xf32> to vector<64xf32>
    %69 = vector.shape_cast %68 : vector<64xf32> to vector<1x64xf32>
    %70 = vector.broadcast %69 : vector<1x64xf32> to vector<48x64xf32>
    %71 = arith.subf %67, %70 : vector<48x64xf32>
    %72 = math.exp %71 : vector<48x64xf32>
    %c1_62 = arith.constant 1 : index
    %c0_63 = arith.constant 0 : index
    %c0_64 = arith.constant 0 : index
    %73 = vector.load %arg14[%c1_62, %c0_63, %c0_64] : memref<2x48x48xf32, #tpu.memory_space<vmem>>, vector<1x48x48xf32>
    %74 = vector.shape_cast %73 : vector<1x48x48xf32> to vector<48x48xf32>
    %cst_65 = arith.constant dense<0.000000e+00> : vector<48x64xf32>
    %75 = tpu.matmul %74, %72, %cst_65 {dimension_numbers = #tpu.dot_dimension_numbers<[1], [0], [0], [1], [0, 0, 1, 1], [], []>} : vector<48x48xf32>, vector<48x64xf32>, vector<48x64xf32> -> vector<48x64xf32>
    %cst_66 = arith.constant 1.000000e-16 : f32
    %76 = vector.broadcast %cst_66 : f32 to vector<48x64xf32>
    %77 = arith.addf %75, %76 : vector<48x64xf32>
    %78 = tpu.reciprocal %77 {approx = true} : vector<48x64xf32> -> vector<48x64xf32>
    %79 = arith.mulf %72, %78 : vector<48x64xf32>
    %c1_67 = arith.constant 1 : index
    %c0_68 = arith.constant 0 : index
    %c0_69 = arith.constant 0 : index
    %80 = vector.load %arg13[%c1_67, %c0_68, %c0_69] : memref<2x40x48xf32, #tpu.memory_space<vmem>>, vector<1x40x48xf32>
    %81 = vector.shape_cast %80 : vector<1x40x48xf32> to vector<40x48xf32>
    %82 = arith.mulf %58, %79 : vector<48x64xf32>
    %cst_70 = arith.constant dense<0.000000e+00> : vector<40x64xf32>
    %83 = tpu.matmul %81, %82, %cst_70 {dimension_numbers = #tpu.dot_dimension_numbers<[1], [0], [0], [1], [0, 0, 1, 1], [], []>} : vector<40x48xf32>, vector<48x64xf32>, vector<40x64xf32> -> vector<40x64xf32>
    %84 = arith.addf %50, %83 : vector<40x64xf32>
    %cst_71 = arith.constant 5.000000e-01 : f32
    %85 = vector.broadcast %cst_71 : f32 to vector<40x64xf32>
    %86 = arith.mulf %85, %84 : vector<40x64xf32>
    %cst_72 = arith.constant 0.707106769 : f32
    %87 = vector.broadcast %cst_72 : f32 to vector<40x64xf32>
    %88 = arith.mulf %84, %87 : vector<40x64xf32>
    %cst_73 = arith.constant 0.000000e+00 : f32
    %89 = vector.broadcast %cst_73 : f32 to vector<40x64xf32>
    %90 = arith.cmpf olt, %88, %89 : vector<40x64xf32>
    %cst_74 = arith.constant -1.000000e+00 : f32
    %cst_75 = arith.constant 1.000000e+00 : f32
    %91 = vector.broadcast %cst_74 : f32 to vector<40x64xf32>
    %92 = vector.broadcast %cst_75 : f32 to vector<40x64xf32>
    %93 = arith.select %90, %91, %92 : vector<40x64xi1>, vector<40x64xf32>
    %94 = math.absf %88 : vector<40x64xf32>
    %cst_76 = arith.constant 0.327591091 : f32
    %95 = vector.broadcast %cst_76 : f32 to vector<40x64xf32>
    %96 = arith.mulf %95, %94 : vector<40x64xf32>
    %cst_77 = arith.constant 1.000000e+00 : f32
    %97 = vector.broadcast %cst_77 : f32 to vector<40x64xf32>
    %98 = arith.addf %97, %96 : vector<40x64xf32>
    %cst_78 = arith.constant 1.000000e+00 : f32
    %99 = vector.broadcast %cst_78 : f32 to vector<40x64xf32>
    %100 = arith.divf %99, %98 : vector<40x64xf32>
    %cst_79 = arith.constant 1.06140542 : f32
    %101 = vector.broadcast %cst_79 : f32 to vector<40x64xf32>
    %102 = arith.mulf %101, %100 : vector<40x64xf32>
    %cst_80 = arith.constant -1.45315206 : f32
    %103 = vector.broadcast %cst_80 : f32 to vector<40x64xf32>
    %104 = arith.addf %102, %103 : vector<40x64xf32>
    %105 = arith.mulf %104, %100 : vector<40x64xf32>
    %cst_81 = arith.constant 1.42141378 : f32
    %106 = vector.broadcast %cst_81 : f32 to vector<40x64xf32>
    %107 = arith.addf %105, %106 : vector<40x64xf32>
    %108 = arith.mulf %107, %100 : vector<40x64xf32>
    %cst_82 = arith.constant -0.284496725 : f32
    %109 = vector.broadcast %cst_82 : f32 to vector<40x64xf32>
    %110 = arith.addf %108, %109 : vector<40x64xf32>
    %111 = arith.mulf %110, %100 : vector<40x64xf32>
    %cst_83 = arith.constant 0.254829586 : f32
    %112 = vector.broadcast %cst_83 : f32 to vector<40x64xf32>
    %113 = arith.addf %111, %112 : vector<40x64xf32>
    %114 = arith.mulf %113, %100 : vector<40x64xf32>
    %cst_84 = arith.constant 0.000000e+00 : f32
    %115 = vector.broadcast %cst_84 : f32 to vector<40x64xf32>
    %116 = arith.subf %115, %94 : vector<40x64xf32>
    %117 = arith.mulf %116, %94 : vector<40x64xf32>
    %118 = math.exp %117 : vector<40x64xf32>
    %119 = arith.mulf %114, %118 : vector<40x64xf32>
    %cst_85 = arith.constant 1.000000e+00 : f32
    %120 = vector.broadcast %cst_85 : f32 to vector<40x64xf32>
    %121 = arith.subf %120, %119 : vector<40x64xf32>
    %122 = arith.mulf %93, %121 : vector<40x64xf32>
    %cst_86 = arith.constant 1.000000e+00 : f32
    %123 = vector.broadcast %cst_86 : f32 to vector<40x64xf32>
    %124 = arith.addf %123, %122 : vector<40x64xf32>
    %125 = arith.mulf %86, %124 : vector<40x64xf32>
    %c0_87 = arith.constant 0 : index
    %c0_88 = arith.constant 0 : index
    %c0_89 = arith.constant 0 : index
    %126 = vector.load %arg5[%c0_87, %c0_88, %c0_89] : memref<2x64x64xf32, #tpu.memory_space<vmem>>, vector<1x64x64xf32>
    %127 = vector.shape_cast %126 : vector<1x64x64xf32> to vector<64x64xf32>
    %cst_90 = arith.constant dense<0.000000e+00> : vector<40x64xf32>
    %128 = tpu.matmul %125, %127, %cst_90 {dimension_numbers = #tpu.dot_dimension_numbers<[1], [0], [0], [1], [0, 0, 1, 1], [], []>} : vector<40x64xf32>, vector<64x64xf32>, vector<40x64xf32> -> vector<40x64xf32>
    %c0_91 = arith.constant 0 : index
    %c0_92 = arith.constant 0 : index
    %c0_93 = arith.constant 0 : index
    %129 = vector.load %arg6[%c0_91, %c0_92, %c0_93] : memref<2x40x64xf32, #tpu.memory_space<vmem>>, vector<1x40x64xf32>
    %130 = vector.shape_cast %129 : vector<1x40x64xf32> to vector<40x64xf32>
    %131 = arith.addf %128, %130 : vector<40x64xf32>
    %c0_94 = arith.constant 0 : index
    %c0_95 = arith.constant 0 : index
    %c0_96 = arith.constant 0 : index
    %132 = vector.load %arg7[%c0_94, %c0_95, %c0_96] : memref<2x40x1xf32, #tpu.memory_space<vmem>>, vector<1x40x1xf32>
    %133 = vector.shape_cast %132 : vector<1x40x1xf32> to vector<40x1xf32>
    %134 = vector.broadcast %133 : vector<40x1xf32> to vector<40x64xf32>
    %135 = arith.mulf %134, %131 : vector<40x64xf32>
    %cst_97 = arith.constant 1.000000e+00 : f32
    %136 = vector.broadcast %cst_97 : f32 to vector<40x1xf32>
    %137 = arith.subf %136, %133 : vector<40x1xf32>
    %138 = vector.broadcast %137 : vector<40x1xf32> to vector<40x64xf32>
    %139 = arith.mulf %138, %7 : vector<40x64xf32>
    %140 = arith.addf %135, %139 : vector<40x64xf32>
    %c1_98 = arith.constant 1 : index
    %c0_99 = arith.constant 0 : index
    %c0_100 = arith.constant 0 : index
    %141 = vector.load %arg3[%c1_98, %c0_99, %c0_100] : memref<2x64x96xf32, #tpu.memory_space<vmem>>, vector<1x64x96xf32>
    %142 = vector.shape_cast %141 : vector<1x64x96xf32> to vector<64x96xf32>
    %cst_101 = arith.constant dense<0.000000e+00> : vector<40x96xf32>
    %143 = tpu.matmul %140, %142, %cst_101 {dimension_numbers = #tpu.dot_dimension_numbers<[1], [0], [0], [1], [0, 0, 1, 1], [], []>} : vector<40x64xf32>, vector<64x96xf32>, vector<40x96xf32> -> vector<40x96xf32>
    %c1_102 = arith.constant 1 : index
    %c0_103 = arith.constant 0 : index
    %c0_104 = arith.constant 0 : index
    %144 = vector.load %arg4[%c1_102, %c0_103, %c0_104] : memref<2x40x96xf32, #tpu.memory_space<vmem>>, vector<1x40x96xf32>
    %145 = vector.shape_cast %144 : vector<1x40x96xf32> to vector<40x96xf32>
    %146 = arith.addf %143, %145 : vector<40x96xf32>
    %147 = vector.extract_strided_slice %146 {offsets = [0, 0], sizes = [40, 64], strides = [1, 1]} : vector<40x96xf32> to vector<40x64xf32>
    %148 = vector.extract_strided_slice %146 {offsets = [0, 64], sizes = [40, 32], strides = [1, 1]} : vector<40x96xf32> to vector<40x32xf32>
    %cst_105 = arith.constant 0.000000e+00 : f32
    %149 = vector.broadcast %cst_105 : f32 to vector<40x64xf32>
    %c1_106 = arith.constant 1 : index
    %c0_107 = arith.constant 0 : index
    %c0_108 = arith.constant 0 : index
    %c0_109 = arith.constant 0 : index
    %150 = vector.load %arg8[%c1_106, %c0_107, %c0_108, %c0_109] : memref<2x2x64x96xf32, #tpu.memory_space<vmem>>, vector<1x1x64x96xf32>
    %151 = vector.shape_cast %150 : vector<1x1x64x96xf32> to vector<64x96xf32>
    %cst_110 = arith.constant dense<0.000000e+00> : vector<40x96xf32>
    %152 = tpu.matmul %147, %151, %cst_110 {dimension_numbers = #tpu.dot_dimension_numbers<[1], [0], [0], [1], [0, 0, 1, 1], [], []>} : vector<40x64xf32>, vector<64x96xf32>, vector<40x96xf32> -> vector<40x96xf32>
    %c0_111 = arith.constant 0 : index
    %c0_112 = arith.constant 0 : index
    %c0_113 = arith.constant 0 : index
    %153 = vector.load %arg11[%c0_111, %c0_112, %c0_113] : memref<2x48x40xf32, #tpu.memory_space<vmem>>, vector<1x48x40xf32>
    %154 = vector.shape_cast %153 : vector<1x48x40xf32> to vector<48x40xf32>
    %cst_114 = arith.constant dense<0.000000e+00> : vector<48x96xf32>
    %155 = tpu.matmul %154, %152, %cst_114 {dimension_numbers = #tpu.dot_dimension_numbers<[1], [0], [0], [1], [0, 0, 1, 1], [], []>} : vector<48x40xf32>, vector<40x96xf32>, vector<48x96xf32> -> vector<48x96xf32>
    %156 = vector.extract_strided_slice %155 {offsets = [0, 0], sizes = [48, 32], strides = [1, 1]} : vector<48x96xf32> to vector<48x32xf32>
    %157 = vector.extract_strided_slice %155 {offsets = [0, 32], sizes = [48, 64], strides = [1, 1]} : vector<48x96xf32> to vector<48x64xf32>
    %c0_115 = arith.constant 0 : index
    %c0_116 = arith.constant 0 : index
    %c0_117 = arith.constant 0 : index
    %158 = vector.load %arg12[%c0_115, %c0_116, %c0_117] : memref<2x48x40xf32, #tpu.memory_space<vmem>>, vector<1x48x40xf32>
    %159 = vector.shape_cast %158 : vector<1x48x40xf32> to vector<48x40xf32>
    %cst_118 = arith.constant dense<0.000000e+00> : vector<48x32xf32>
    %160 = tpu.matmul %159, %148, %cst_118 {dimension_numbers = #tpu.dot_dimension_numbers<[1], [0], [0], [1], [0, 0, 1, 1], [], []>} : vector<48x40xf32>, vector<40x32xf32>, vector<48x32xf32> -> vector<48x32xf32>
    %161 = arith.mulf %160, %156 : vector<48x32xf32>
    %cst_119 = arith.constant dense<0.000000e+00> : vector<48x64xf32>
    %162 = tpu.matmul %161, %0, %cst_119 {dimension_numbers = #tpu.dot_dimension_numbers<[1], [0], [0], [1], [0, 0, 1, 1], [], []>} : vector<48x32xf32>, vector<32x64xf32>, vector<48x64xf32> -> vector<48x64xf32>
    %c1_120 = arith.constant 1 : index
    %c0_121 = arith.constant 0 : index
    %c0_122 = arith.constant 0 : index
    %c0_123 = arith.constant 0 : index
    %163 = vector.load %arg9[%c1_120, %c0_121, %c0_122, %c0_123] : memref<2x2x1x64xf32, #tpu.memory_space<vmem>>, vector<1x1x1x64xf32>
    %164 = vector.shape_cast %163 : vector<1x1x1x64xf32> to vector<1x64xf32>
    %165 = vector.broadcast %164 : vector<1x64xf32> to vector<48x64xf32>
    %166 = arith.mulf %162, %165 : vector<48x64xf32>
    %cst_124 = arith.constant dense<0xFF800000> : vector<64xf32>
    %167 = vector.multi_reduction <maximumf>, %166, %cst_124 [0] : vector<48x64xf32> to vector<64xf32>
    %168 = vector.shape_cast %167 : vector<64xf32> to vector<1x64xf32>
    %169 = vector.broadcast %168 : vector<1x64xf32> to vector<48x64xf32>
    %170 = arith.subf %166, %169 : vector<48x64xf32>
    %171 = math.exp %170 : vector<48x64xf32>
    %c0_125 = arith.constant 0 : index
    %c0_126 = arith.constant 0 : index
    %c0_127 = arith.constant 0 : index
    %172 = vector.load %arg14[%c0_125, %c0_126, %c0_127] : memref<2x48x48xf32, #tpu.memory_space<vmem>>, vector<1x48x48xf32>
    %173 = vector.shape_cast %172 : vector<1x48x48xf32> to vector<48x48xf32>
    %cst_128 = arith.constant dense<0.000000e+00> : vector<48x64xf32>
    %174 = tpu.matmul %173, %171, %cst_128 {dimension_numbers = #tpu.dot_dimension_numbers<[1], [0], [0], [1], [0, 0, 1, 1], [], []>} : vector<48x48xf32>, vector<48x64xf32>, vector<48x64xf32> -> vector<48x64xf32>
    %cst_129 = arith.constant 1.000000e-16 : f32
    %175 = vector.broadcast %cst_129 : f32 to vector<48x64xf32>
    %176 = arith.addf %174, %175 : vector<48x64xf32>
    %177 = tpu.reciprocal %176 {approx = true} : vector<48x64xf32> -> vector<48x64xf32>
    %178 = arith.mulf %171, %177 : vector<48x64xf32>
    %c0_130 = arith.constant 0 : index
    %c0_131 = arith.constant 0 : index
    %c0_132 = arith.constant 0 : index
    %179 = vector.load %arg13[%c0_130, %c0_131, %c0_132] : memref<2x40x48xf32, #tpu.memory_space<vmem>>, vector<1x40x48xf32>
    %180 = vector.shape_cast %179 : vector<1x40x48xf32> to vector<40x48xf32>
    %181 = arith.mulf %157, %178 : vector<48x64xf32>
    %cst_133 = arith.constant dense<0.000000e+00> : vector<40x64xf32>
    %182 = tpu.matmul %180, %181, %cst_133 {dimension_numbers = #tpu.dot_dimension_numbers<[1], [0], [0], [1], [0, 0, 1, 1], [], []>} : vector<40x48xf32>, vector<48x64xf32>, vector<40x64xf32> -> vector<40x64xf32>
    %183 = arith.addf %149, %182 : vector<40x64xf32>
    %c1_134 = arith.constant 1 : index
    %c1_135 = arith.constant 1 : index
    %c0_136 = arith.constant 0 : index
    %c0_137 = arith.constant 0 : index
    %184 = vector.load %arg8[%c1_134, %c1_135, %c0_136, %c0_137] : memref<2x2x64x96xf32, #tpu.memory_space<vmem>>, vector<1x1x64x96xf32>
    %185 = vector.shape_cast %184 : vector<1x1x64x96xf32> to vector<64x96xf32>
    %cst_138 = arith.constant dense<0.000000e+00> : vector<40x96xf32>
    %186 = tpu.matmul %147, %185, %cst_138 {dimension_numbers = #tpu.dot_dimension_numbers<[1], [0], [0], [1], [0, 0, 1, 1], [], []>} : vector<40x64xf32>, vector<64x96xf32>, vector<40x96xf32> -> vector<40x96xf32>
    %c1_139 = arith.constant 1 : index
    %c0_140 = arith.constant 0 : index
    %c0_141 = arith.constant 0 : index
    %187 = vector.load %arg11[%c1_139, %c0_140, %c0_141] : memref<2x48x40xf32, #tpu.memory_space<vmem>>, vector<1x48x40xf32>
    %188 = vector.shape_cast %187 : vector<1x48x40xf32> to vector<48x40xf32>
    %cst_142 = arith.constant dense<0.000000e+00> : vector<48x96xf32>
    %189 = tpu.matmul %188, %186, %cst_142 {dimension_numbers = #tpu.dot_dimension_numbers<[1], [0], [0], [1], [0, 0, 1, 1], [], []>} : vector<48x40xf32>, vector<40x96xf32>, vector<48x96xf32> -> vector<48x96xf32>
    %190 = vector.extract_strided_slice %189 {offsets = [0, 0], sizes = [48, 32], strides = [1, 1]} : vector<48x96xf32> to vector<48x32xf32>
    %191 = vector.extract_strided_slice %189 {offsets = [0, 32], sizes = [48, 64], strides = [1, 1]} : vector<48x96xf32> to vector<48x64xf32>
    %c1_143 = arith.constant 1 : index
    %c0_144 = arith.constant 0 : index
    %c0_145 = arith.constant 0 : index
    %192 = vector.load %arg12[%c1_143, %c0_144, %c0_145] : memref<2x48x40xf32, #tpu.memory_space<vmem>>, vector<1x48x40xf32>
    %193 = vector.shape_cast %192 : vector<1x48x40xf32> to vector<48x40xf32>
    %cst_146 = arith.constant dense<0.000000e+00> : vector<48x32xf32>
    %194 = tpu.matmul %193, %148, %cst_146 {dimension_numbers = #tpu.dot_dimension_numbers<[1], [0], [0], [1], [0, 0, 1, 1], [], []>} : vector<48x40xf32>, vector<40x32xf32>, vector<48x32xf32> -> vector<48x32xf32>
    %195 = arith.mulf %194, %190 : vector<48x32xf32>
    %cst_147 = arith.constant dense<0.000000e+00> : vector<48x64xf32>
    %196 = tpu.matmul %195, %0, %cst_147 {dimension_numbers = #tpu.dot_dimension_numbers<[1], [0], [0], [1], [0, 0, 1, 1], [], []>} : vector<48x32xf32>, vector<32x64xf32>, vector<48x64xf32> -> vector<48x64xf32>
    %c1_148 = arith.constant 1 : index
    %c1_149 = arith.constant 1 : index
    %c0_150 = arith.constant 0 : index
    %c0_151 = arith.constant 0 : index
    %197 = vector.load %arg9[%c1_148, %c1_149, %c0_150, %c0_151] : memref<2x2x1x64xf32, #tpu.memory_space<vmem>>, vector<1x1x1x64xf32>
    %198 = vector.shape_cast %197 : vector<1x1x1x64xf32> to vector<1x64xf32>
    %199 = vector.broadcast %198 : vector<1x64xf32> to vector<48x64xf32>
    %200 = arith.mulf %196, %199 : vector<48x64xf32>
    %cst_152 = arith.constant dense<0xFF800000> : vector<64xf32>
    %201 = vector.multi_reduction <maximumf>, %200, %cst_152 [0] : vector<48x64xf32> to vector<64xf32>
    %202 = vector.shape_cast %201 : vector<64xf32> to vector<1x64xf32>
    %203 = vector.broadcast %202 : vector<1x64xf32> to vector<48x64xf32>
    %204 = arith.subf %200, %203 : vector<48x64xf32>
    %205 = math.exp %204 : vector<48x64xf32>
    %c1_153 = arith.constant 1 : index
    %c0_154 = arith.constant 0 : index
    %c0_155 = arith.constant 0 : index
    %206 = vector.load %arg14[%c1_153, %c0_154, %c0_155] : memref<2x48x48xf32, #tpu.memory_space<vmem>>, vector<1x48x48xf32>
    %207 = vector.shape_cast %206 : vector<1x48x48xf32> to vector<48x48xf32>
    %cst_156 = arith.constant dense<0.000000e+00> : vector<48x64xf32>
    %208 = tpu.matmul %207, %205, %cst_156 {dimension_numbers = #tpu.dot_dimension_numbers<[1], [0], [0], [1], [0, 0, 1, 1], [], []>} : vector<48x48xf32>, vector<48x64xf32>, vector<48x64xf32> -> vector<48x64xf32>
    %cst_157 = arith.constant 1.000000e-16 : f32
    %209 = vector.broadcast %cst_157 : f32 to vector<48x64xf32>
    %210 = arith.addf %208, %209 : vector<48x64xf32>
    %211 = tpu.reciprocal %210 {approx = true} : vector<48x64xf32> -> vector<48x64xf32>
    %212 = arith.mulf %205, %211 : vector<48x64xf32>
    %c1_158 = arith.constant 1 : index
    %c0_159 = arith.constant 0 : index
    %c0_160 = arith.constant 0 : index
    %213 = vector.load %arg13[%c1_158, %c0_159, %c0_160] : memref<2x40x48xf32, #tpu.memory_space<vmem>>, vector<1x40x48xf32>
    %214 = vector.shape_cast %213 : vector<1x40x48xf32> to vector<40x48xf32>
    %215 = arith.mulf %191, %212 : vector<48x64xf32>
    %cst_161 = arith.constant dense<0.000000e+00> : vector<40x64xf32>
    %216 = tpu.matmul %214, %215, %cst_161 {dimension_numbers = #tpu.dot_dimension_numbers<[1], [0], [0], [1], [0, 0, 1, 1], [], []>} : vector<40x48xf32>, vector<48x64xf32>, vector<40x64xf32> -> vector<40x64xf32>
    %217 = arith.addf %183, %216 : vector<40x64xf32>
    %cst_162 = arith.constant 5.000000e-01 : f32
    %218 = vector.broadcast %cst_162 : f32 to vector<40x64xf32>
    %219 = arith.mulf %218, %217 : vector<40x64xf32>
    %cst_163 = arith.constant 0.707106769 : f32
    %220 = vector.broadcast %cst_163 : f32 to vector<40x64xf32>
    %221 = arith.mulf %217, %220 : vector<40x64xf32>
    %cst_164 = arith.constant 0.000000e+00 : f32
    %222 = vector.broadcast %cst_164 : f32 to vector<40x64xf32>
    %223 = arith.cmpf olt, %221, %222 : vector<40x64xf32>
    %cst_165 = arith.constant -1.000000e+00 : f32
    %cst_166 = arith.constant 1.000000e+00 : f32
    %224 = vector.broadcast %cst_165 : f32 to vector<40x64xf32>
    %225 = vector.broadcast %cst_166 : f32 to vector<40x64xf32>
    %226 = arith.select %223, %224, %225 : vector<40x64xi1>, vector<40x64xf32>
    %227 = math.absf %221 : vector<40x64xf32>
    %cst_167 = arith.constant 0.327591091 : f32
    %228 = vector.broadcast %cst_167 : f32 to vector<40x64xf32>
    %229 = arith.mulf %228, %227 : vector<40x64xf32>
    %cst_168 = arith.constant 1.000000e+00 : f32
    %230 = vector.broadcast %cst_168 : f32 to vector<40x64xf32>
    %231 = arith.addf %230, %229 : vector<40x64xf32>
    %cst_169 = arith.constant 1.000000e+00 : f32
    %232 = vector.broadcast %cst_169 : f32 to vector<40x64xf32>
    %233 = arith.divf %232, %231 : vector<40x64xf32>
    %cst_170 = arith.constant 1.06140542 : f32
    %234 = vector.broadcast %cst_170 : f32 to vector<40x64xf32>
    %235 = arith.mulf %234, %233 : vector<40x64xf32>
    %cst_171 = arith.constant -1.45315206 : f32
    %236 = vector.broadcast %cst_171 : f32 to vector<40x64xf32>
    %237 = arith.addf %235, %236 : vector<40x64xf32>
    %238 = arith.mulf %237, %233 : vector<40x64xf32>
    %cst_172 = arith.constant 1.42141378 : f32
    %239 = vector.broadcast %cst_172 : f32 to vector<40x64xf32>
    %240 = arith.addf %238, %239 : vector<40x64xf32>
    %241 = arith.mulf %240, %233 : vector<40x64xf32>
    %cst_173 = arith.constant -0.284496725 : f32
    %242 = vector.broadcast %cst_173 : f32 to vector<40x64xf32>
    %243 = arith.addf %241, %242 : vector<40x64xf32>
    %244 = arith.mulf %243, %233 : vector<40x64xf32>
    %cst_174 = arith.constant 0.254829586 : f32
    %245 = vector.broadcast %cst_174 : f32 to vector<40x64xf32>
    %246 = arith.addf %244, %245 : vector<40x64xf32>
    %247 = arith.mulf %246, %233 : vector<40x64xf32>
    %cst_175 = arith.constant 0.000000e+00 : f32
    %248 = vector.broadcast %cst_175 : f32 to vector<40x64xf32>
    %249 = arith.subf %248, %227 : vector<40x64xf32>
    %250 = arith.mulf %249, %227 : vector<40x64xf32>
    %251 = math.exp %250 : vector<40x64xf32>
    %252 = arith.mulf %247, %251 : vector<40x64xf32>
    %cst_176 = arith.constant 1.000000e+00 : f32
    %253 = vector.broadcast %cst_176 : f32 to vector<40x64xf32>
    %254 = arith.subf %253, %252 : vector<40x64xf32>
    %255 = arith.mulf %226, %254 : vector<40x64xf32>
    %cst_177 = arith.constant 1.000000e+00 : f32
    %256 = vector.broadcast %cst_177 : f32 to vector<40x64xf32>
    %257 = arith.addf %256, %255 : vector<40x64xf32>
    %258 = arith.mulf %219, %257 : vector<40x64xf32>
    %c1_178 = arith.constant 1 : index
    %c0_179 = arith.constant 0 : index
    %c0_180 = arith.constant 0 : index
    %259 = vector.load %arg5[%c1_178, %c0_179, %c0_180] : memref<2x64x64xf32, #tpu.memory_space<vmem>>, vector<1x64x64xf32>
    %260 = vector.shape_cast %259 : vector<1x64x64xf32> to vector<64x64xf32>
    %cst_181 = arith.constant dense<0.000000e+00> : vector<40x64xf32>
    %261 = tpu.matmul %258, %260, %cst_181 {dimension_numbers = #tpu.dot_dimension_numbers<[1], [0], [0], [1], [0, 0, 1, 1], [], []>} : vector<40x64xf32>, vector<64x64xf32>, vector<40x64xf32> -> vector<40x64xf32>
    %c1_182 = arith.constant 1 : index
    %c0_183 = arith.constant 0 : index
    %c0_184 = arith.constant 0 : index
    %262 = vector.load %arg6[%c1_182, %c0_183, %c0_184] : memref<2x40x64xf32, #tpu.memory_space<vmem>>, vector<1x40x64xf32>
    %263 = vector.shape_cast %262 : vector<1x40x64xf32> to vector<40x64xf32>
    %264 = arith.addf %261, %263 : vector<40x64xf32>
    %c1_185 = arith.constant 1 : index
    %c0_186 = arith.constant 0 : index
    %c0_187 = arith.constant 0 : index
    %265 = vector.load %arg7[%c1_185, %c0_186, %c0_187] : memref<2x40x1xf32, #tpu.memory_space<vmem>>, vector<1x40x1xf32>
    %266 = vector.shape_cast %265 : vector<1x40x1xf32> to vector<40x1xf32>
    %267 = vector.broadcast %266 : vector<40x1xf32> to vector<40x64xf32>
    %268 = arith.mulf %267, %264 : vector<40x64xf32>
    %cst_188 = arith.constant 1.000000e+00 : f32
    %269 = vector.broadcast %cst_188 : f32 to vector<40x1xf32>
    %270 = arith.subf %269, %266 : vector<40x1xf32>
    %271 = vector.broadcast %270 : vector<40x1xf32> to vector<40x64xf32>
    %272 = arith.mulf %271, %140 : vector<40x64xf32>
    %273 = arith.addf %268, %272 : vector<40x64xf32>
    %274 = vector.extract_strided_slice %273 {offsets = [0, 0], sizes = [40, 32], strides = [1, 1]} : vector<40x64xf32> to vector<40x32xf32>
    %275 = vector.extract_strided_slice %273 {offsets = [0, 32], sizes = [40, 32], strides = [1, 1]} : vector<40x64xf32> to vector<40x32xf32>
    %276 = arith.addf %274, %275 : vector<40x32xf32>
    %c0_189 = arith.constant 0 : index
    %c0_190 = arith.constant 0 : index
    %277 = vector.load %arg15[%c0_189, %c0_190] : memref<40x32xf32, #tpu.memory_space<vmem>>, vector<40x32xf32>
    tpu.vector_store %arg15[%c0_189, %c0_190], %276 {strides = array<i32>} : memref<40x32xf32, #tpu.memory_space<vmem>>, vector<40x32xf32>,
    return
  }
}

</mosaic_0001>

<bundles_post_ra>
// kernel: _fused_call.1
= control target key start
LH: loop header
LB: loop body
LE: loop exit
PB: predicated region body
PF: predicated region fallthrough
CT: control target
= control target key end

     0   :  { %20 = vsyncpa [#allocation3], 0  ;;  %s7757_s0 = inlined_call_operand.vmem [shape: f32[40,24], index: 0, kind: input, shape index: {}]   ;;  %s7758_s1 = inlined_call_operand.vmem [shape: f32[24,64], index: 1, kind: input, shape index: {}]   ;;  %s7759_s2 = inlined_call_operand.hbm [shape: f32[40,64], index: 2, kind: input, shape index: {}]   ;;  %s7760_s3 = inlined_call_operand.vmem [shape: f32[2,64,96], index: 3, kind: input, shape index: {}]   ;;  %s7761_s4 = inlined_call_operand.hbm [shape: f32[2,40,96], index: 4, kind: input, shape index: {}]   ;;  %s7762_s5 = inlined_call_operand.vmem [shape: f32[2,64,64], index: 5, kind: input, shape index: {}]   ;;  %s7763_s6 = inlined_call_operand.hbm [shape: f32[2,40,64], index: 6, kind: input, shape index: {}]   ;;  %s7764_s7 = inlined_call_operand.vmem [shape: f32[2,40,1], index: 7, kind: input, shape index: {}]   ;;  %s7765_s8 = inlined_call_operand.vmem [shape: f32[2,2,64,96], index: 8, kind: input, shape index: {}]   ;;  %s7766_s9 = inlined_call_operand.vmem [shape: f32[2,2,1,64], index: 9, kind: input, shape index: {}]   ;;  %s7767_s10 = inlined_call_operand.hbm [shape: f32[32,64], index: 10, kind: input, shape index: {}]   ;;  %s7768_s11 = inlined_call_operand.vmem [shape: f32[2,48,40], index: 11, kind: input, shape index: {}]   ;;  %s7769_s12 = inlined_call_operand.vmem [shape: f32[2,48,40], index: 12, kind: input, shape index: {}]   ;;  %s7770_s13 = inlined_call_operand.hbm [shape: f32[2,40,48], index: 13, kind: input, shape index: {}]   ;;  %s7771_s14 = inlined_call_operand.vmem [shape: f32[2,48,48], index: 14, kind: input, shape index: {}]   ;;  %s7772_s15 = inlined_call_operand.vmem [shape: f32[40,32], index: 15, kind: output, shape index: {}]  }
   0x1   :  { %21 = vsyncpa [#allocation5], 0 }
   0x2   :  { %22 = vsyncpa [#allocation8], 0  ;;  %s6204_s18 = smov [#allocation4]   ;;  %s6205_s20 = smov [#allocation7]  }
   0x3   :  { %s46_s19 = sshll.u32 %s6204_s18, 4  ;;  %s78_s21 = sshll.u32 %s6205_s20, 4  ;;  %s47_s19 = int_to_ptr.vmem [resolvable:$true] %s46_s19  ;;  %s6299_s21 = int_to_ptr.vmem [resolvable:$true] %s78_s21 }
   0x4   :  { %s6088_s24 = scalar_lea.hbm %s7761_s4, 1280 }
   0x5   :  { %p6089_p0 = scmp.ne.s32.totalorder %s7761_s4, %s6088_s24  ;;  %p6092_p1 = scmp.lt.u32.totalorder %s6088_s24, %s7761_s4 }
   0x7   :  { %p6094_p2 = pnand %p6092_p1, %p6089_p0 }
   0x9   :  { %6097 = shalt.err (!%p6094_p2)
}
   0xa   :  { %s6098_s29 = scalar_lea.vmem %s47_s19, 1280  ;;  %p6103_p4 = scmp.lt.s32.totalorder %s47_s19, %s47_s19 }
   0xb   :  { %p6099_p3 = scmp.ne.s32.totalorder %s47_s19, %s6098_s29  ;;  %p6104_p5 = scmp.lt.s32.totalorder %s6098_s29, %s6098_s29 }
   0xd   :  { %p6105_p6 = por %p6104_p5, %p6103_p4 }
   0xf   :  { %p6106_p7 = pnand %p6105_p6, %p6099_p3 }
  0x11   :  { %6109 = shalt.err (!%p6106_p7)
}
  0x12   :  { %s6206_s30 = smov 128   ;;  %s6207_s16 = smov 8  }
  0x13   :  { %52 = dma.hbm_to_vmem [thread:$0]  %s7761_s4, 1280, %s47_s19, [#allocation5], %s6206_s30, %s6206_s30, %s6207_s16  }
  0x14   :  { %s6110_s23 = scalar_lea.hbm %s7767_s10, 512 }
  0x15   :  { %p6111_p8 = scmp.ne.s32.totalorder %s7767_s10, %s6110_s23  ;;  %p6114_p9 = scmp.lt.u32.totalorder %s6110_s23, %s7767_s10 }
  0x17   :  { %p6116_p10 = pnand %p6114_p9, %p6111_p8 }
  0x19   :  { %6119 = shalt.err (!%p6116_p10)
}
  0x1a   :  { %s6120_s28 = scalar_lea.vmem %s6299_s21, 512  ;;  %p6125_p12 = scmp.lt.s32.totalorder %s6299_s21, %s6299_s21 }
  0x1b   :  { %p6121_p11 = scmp.ne.s32.totalorder %s6299_s21, %s6120_s28  ;;  %p6126_p13 = scmp.lt.s32.totalorder %s6120_s28, %s6120_s28 }
  0x1d   :  { %p6127_p0 = por %p6126_p13, %p6125_p12 }
  0x1f   :  { %p6128_p1 = pnand %p6127_p0, %p6121_p11 }
  0x21   :  { %6131 = shalt.err (!%p6128_p1)
}
  0x22   :  { %84 = dma.hbm_to_vmem [thread:$0]  %s7767_s10, 512, %s6299_s21, [#allocation8], %s6206_s30, %s6206_s30, %s6207_s16  }
  0x23   :  { %s6208_s29 = smov [#allocation2]   ;;  %s6209_s18 = smov [#allocation6]  }
  0x24   :  { %s32_s17 = sshll.u32 %s6208_s29, 4  ;;  %s60_s20 = sshll.u32 %s6209_s18, 4  ;;  %s33_s17 = int_to_ptr.vmem [resolvable:$true] %s32_s17  ;;  %s6336_s20 = int_to_ptr.vmem [resolvable:$true] %s60_s20 }
  0x25   :  { %s6132_s24 = scalar_lea.hbm %s7759_s2, 640 }
  0x26   :  { %p6133_p2 = scmp.ne.s32.totalorder %s7759_s2, %s6132_s24  ;;  %p6136_p3 = scmp.lt.u32.totalorder %s6132_s24, %s7759_s2 }
  0x28   :  { %p6138_p4 = pnand %p6136_p3, %p6133_p2 }
  0x2a   :  { %6141 = shalt.err (!%p6138_p4)
}
  0x2b   :  { %s6142_s10 = scalar_lea.vmem %s33_s17, 640  ;;  %p6147_p6 = scmp.lt.s32.totalorder %s33_s17, %s33_s17 }
  0x2c   :  { %p6143_p5 = scmp.ne.s32.totalorder %s33_s17, %s6142_s10  ;;  %p6148_p7 = scmp.lt.s32.totalorder %s6142_s10, %s6142_s10 }
  0x2e   :  { %p6149_p8 = por %p6148_p7, %p6147_p6 }
  0x30   :  { %p6150_p9 = pnand %p6149_p8, %p6143_p5 }
  0x32   :  { %6153 = shalt.err (!%p6150_p9)
}
  0x33   :  { %38 = dma.hbm_to_vmem [thread:$0]  %s7759_s2, 640, %s33_s17, [#allocation3], %s6206_s30, %s6206_s30, %s6207_s16  }
  0x34   :  { %s6154_s18 = scalar_lea.hbm %s7763_s6, 1280 }
  0x35   :  { %p6155_p10 = scmp.ne.s32.totalorder %s7763_s6, %s6154_s18  ;;  %p6158_p11 = scmp.lt.u32.totalorder %s6154_s18, %s7763_s6 }
  0x37   :  { %p6160_p12 = pnand %p6158_p11, %p6155_p10 }
  0x39   :  { %6163 = shalt.err (!%p6160_p12)
}
  0x3a   :  { %s6164_s26 = scalar_lea.vmem %s6336_s20, 1280  ;;  %p6169_p0 = scmp.lt.s32.totalorder %s6336_s20, %s6336_s20 }
  0x3b   :  { %p6165_p13 = scmp.ne.s32.totalorder %s6336_s20, %s6164_s26  ;;  %p6170_p1 = scmp.lt.s32.totalorder %s6164_s26, %s6164_s26 }
  0x3d   :  { %p6171_p2 = por %p6170_p1, %p6169_p0 }
  0x3f   :  { %p6172_p3 = pnand %p6171_p2, %p6165_p13 }
  0x41   :  { %6175 = shalt.err (!%p6172_p3)
}
  0x42   :  { %66 = dma.hbm_to_vmem [thread:$0]  %s7763_s6, 1280, %s6336_s20, [#allocation5], %s6206_s30, %s6206_s30, %s6207_s16  }
  0x43   :  { %s6210_s27 = smov [#allocation9]   ;;  %s6176_s4 = scalar_lea.hbm %s7770_s13, 1280 }
  0x44   :  { %s94_s28 = sshll.u32 %s6210_s27, 4  ;;  %p6177_p4 = scmp.ne.s32.totalorder %s7770_s13, %s6176_s4  ;;  %s95_s28 = int_to_ptr.vmem [resolvable:$true] %s94_s28 }
  0x45   :  { %p6180_p5 = scmp.lt.u32.totalorder %s6176_s4, %s7770_s13 }
  0x47   :  { %p6182_p6 = pnand %p6180_p5, %p6177_p4 }
  0x49   :  { %6185 = shalt.err (!%p6182_p6)
}
  0x4a   :  { %s6186_s23 = scalar_lea.vmem %s95_s28, 1280  ;;  %p6191_p8 = scmp.lt.s32.totalorder %s95_s28, %s95_s28 }
  0x4b   :  { %p6187_p7 = scmp.ne.s32.totalorder %s95_s28, %s6186_s23  ;;  %p6192_p9 = scmp.lt.s32.totalorder %s6186_s23, %s6186_s23 }
  0x4d   :  { %p6193_p10 = por %p6192_p9, %p6191_p8 }
  0x4f   :  { %p6194_p11 = pnand %p6193_p10, %p6187_p7 }
  0x51   :  { %6197 = shalt.err (!%p6194_p11)
}
  0x52   :  { %100 = dma.hbm_to_vmem [thread:$0]  %s7770_s13, 1280, %s95_s28, [#allocation8], %s6206_s30, %s6206_s30, %s6207_s16  }
  0x53   :  { %6198 = dma.done.wait [#allocation3], 640  }
  0x54   :  { %6199 = vsyncadd [#allocation3], 4294966656 }
  0x55   :  { %6200 = dma.done.wait [#allocation5], 2560  }
  0x56   :  { %6201 = vsyncadd [#allocation5], 4294964736 }
  0x57   :  { %6202 = dma.done.wait [#allocation8], 1792  }
  0x58   :  { %6203 = vsyncadd [#allocation8], 4294965504  ;;  %v6211_v0 = vmov 0.0|0.0   ;;  %vm6212_vm0 = vmmov 0   ;;  %v6213_v1 = vmov 0.0   ;;  %v127_v2 = vld [vmem:[%s7758_s1] sm:$0xff] }
  0x59   :  { %5506 = vmatprep.subr.bf16.mxu0 %v6211_v0  ;;  %4831 = vmatprep.mubr.msk.f32.mxu0 %vm6212_vm0, %v6213_v1  ;;  %v128_v3 = vld [vmem:[%s7758_s1 + $0x8] sm:$0xff]  ;;  %v246_v5 = vld [vmem:[%s7760_s3] sm:$0xff]  ;;  %v129_v7 = vld [vmem:[%s7758_s1 + $0x10] sm:$0xff]  ;;  %vm135_vm1 = vcmask 195584   ;;  %vm259_vm2 = vcmask 523264   ;;  %s6214_s26 = smov 64  }
  0x5a   :  { %5785 = vmatprep.subr.bf16.mxu1 %v6211_v0  ;;  %4843 = vmatprep.mubr.msk.f32.mxu1 %vm6212_vm0, %v6213_v1  ;;  %v5507_v4 = vpack.c.bf16 %v128_v3, %v127_v2  ;;  %v247_v6 = vld [vmem:[%s7760_s3 + $0x8] sm:$0xff]  ;;  %v122_v8 = vld [vmem:[%s7757_s0] sm:$0xff]  ;;  %v248_v11 = vld [vmem:[%s7760_s3 + $0x10] sm:$0xff]  ;;  %vm484_vm3 = vcmask 326656   ;;  %vm738_vm4 = vcmask 261120   ;;  %vm906_vm5 = vcmask 392192  }
  0x5b   :  { %v126_v9 = vld [vmem:[%s7757_s0 + $0x20] sm:$0xff]  ;;  %v5510_v10 = vpack.c.bf16 %v247_v6, %v246_v5  ;;  %v249_v12 = vld [vmem:[%s7760_s3 + $0x18] sm:$0xff]  ;;  %v123_v13 = vld [vmem:[%s7757_s0 + $0x8] sm:$0xff]  ;;  %s6215_s19 = smov 32   ;;  %s6217_s29 = smov 96  }
  0x5c   :  { %5508 = vmatpush3.bf16.msra.mxu0 %v5507_v4  ;;  %5787 = vmatpush3.bf16.msra.mxu1 %v5507_v4  ;;  %v5513_v14 = vpack.c.bf16 %v249_v12, %v248_v11  ;;  %v250_v15 = vld [vmem:[%s7760_s3 + $0x20] sm:$0xff]  ;;  %v251_v16 = vld [vmem:[%s7760_s3 + $0x28] sm:$0xff]  ;;  %v124_v17 = vld [vmem:[%s7757_s0 + $0x10] sm:$0xff] }
  0x5d   :  { %4829 = vmatprep.subr.mxu0 %v6213_v1  ;;  %5786 = vmatprep.subr.mxu1 %v6213_v1  ;;  %v5516_v18 = vpack.c.bf16 %v251_v16, %v250_v15  ;;  %v125_v19 = vld [vmem:[%s7757_s0 + $0x18] sm:$0xff]  ;;  %v252_v20 = vld [vmem:[%s7760_s3 + $0x30] sm:$0xff]  ;;  %v365_v23 = vld [vmem:[%s7765_s8] sm:$0xff] }
  0x5e   :  { %v253_v21 = vld [vmem:[%s7760_s3 + $0x38] sm:$0xff]  ;;  %v366_v24 = vld [vmem:[%s7765_s8 + $0x8] sm:$0xff]  ;;  %v367_v25 = vld [vmem:[%s7765_s8 + $0x10] sm:$0xff] }
  0x5f   :  { %v5519_v22 = vpack.c.bf16 %v253_v21, %v252_v20  ;;  %v5522_v26 = vpack.c.bf16 %v366_v24, %v365_v23  ;;  %v368_v27 = vld [vmem:[%s7765_s8 + $0x18] sm:$0xff]  ;;  %v369_v29 = vld [vmem:[%s7765_s8 + $0x20] sm:$0xff]  ;;  %v370_v30 = vld [vmem:[%s7765_s8 + $0x28] sm:$0xff] }
  0x60   :  { %4830 = vmatpush3.msra.mxu0 %v129_v7  ;;  %5788 = vmatpush3.msra.mxu1 %v129_v7  ;;  %v5525_v28 = vpack.c.bf16 %v368_v27, %v367_v25  ;;  %v5528_v31 = vpack.c.bf16 %v370_v30, %v369_v29  ;;  %v130_v32 = vld [vmem:[#allocation2] sm:$0xff]  ;;  %v131_v38 = vld [vmem:[#allocation2 + $0x8] sm:$0xff]  ;;  %v132_v43 = vld [vmem:[#allocation2 + $0x10] sm:$0xff] }
  0x61   :  { %4832 = vmatmul.mubr.msk.f32.vlgmr.msra.gmra.mrb[0].mxu0 %vm135_vm1, %v122_v8  ;;  %4844 = vmatmul.mubr.msk.f32.vlgmr.msra.gmra.mrb[0].mxu1 %vm135_vm1, %v126_v9  ;;  %v133_v48 = vld [vmem:[#allocation2 + $0x18] sm:$0xff]  ;;  %v134_v49 = vld [vmem:[#allocation2 + $0x20] sm:$0xff]  ;;  %v371_v57 = vld [vmem:[%s7765_s8 + $0x30] sm:$0xff] }
  0x62   :  { %4834 = vmatprep.mubr.msk.f32.mxu0 %vm6212_vm0, %v6213_v1  ;;  %5509 = vmatprep.subr.bf16.mxu1 %v6211_v0  ;;  %v372_v58 = vld [vmem:[%s7765_s8 + $0x38] sm:$0xff]  ;;  %v254_v60 = vld [vmem:[#allocation4] sm:$0xff]  ;;  %v255_v2 = vld [vmem:[#allocation4 + $0x8] sm:$0xff] }
  0x63   :  { %5511 = vmatpush3.bf16.msra.mxu1 %v5510_v10  ;;  %4862 = vmatprep.mubr.msk.f32.mxu1 %vm6212_vm0, %v6213_v1  ;;  %v5531_v59 = vpack.c.bf16 %v372_v58, %v371_v57  ;;  %v256_v6 = vld [vmem:[#allocation4 + $0x10] sm:$0xff]  ;;  %v257_v11 = vld [vmem:[#allocation4 + $0x18] sm:$0xff]  ;;  %v258_v15 = vld [vmem:[#allocation4 + $0x20] sm:$0xff] }
  0x64   :  { %5512 = vmatprep.subr.bf16.mxu1 %v6211_v0  ;;  %5521 = vmatprep.subr.bf16.mxu0 %v6211_v0  ;;  %v598_v20 = vld [vmem:[%s7769_s12] sm:$0xff]  ;;  %v119_v57 = vld [vmem:[#allocation7 + $0x8] sm:$0xff] }
  0x65   :  { %4835 = vmatmul.mubr.msk.f32.gmra.mrb[2].mxu0 %vm135_vm1, %v123_v13  ;;  %v478_v21 = vld [vmem:[%s7768_s11] sm:$0xff] }
  0x66   :  { %4837 = vmatprep.mubr.msk.f32.mxu0 %vm6212_vm0, %v6213_v1  ;;  %5523 = vmatpush3.bf16.msra.mxu0 %v5522_v26 }
  0x67   :  { %5514 = vmatpush3.bf16.msra.mxu1 %v5513_v14  ;;  %5524 = vmatprep.subr.bf16.mxu0 %v6211_v0 }
  0x68   :  { %5515 = vmatprep.subr.bf16.mxu1 %v6211_v0 }
  0x69   :  { %4838 = vmatmul.mubr.msk.f32.gmra.mrb[4].mxu0 %vm135_vm1, %v124_v17 }
  0x6a   :  { %4840 = vmatprep.mubr.msk.f32.mxu0 %vm6212_vm0, %v6213_v1  ;;  %5526 = vmatpush3.bf16.msra.mxu0 %v5525_v28 }
  0x6b   :  { %5517 = vmatpush3.bf16.msra.mxu1 %v5516_v18  ;;  %5527 = vmatprep.subr.bf16.mxu0 %v6211_v0 }
  0x6c   :  { %5518 = vmatprep.subr.bf16.mxu1 %v6211_v0 }
  0x6d   :  { %4841 = vmatmul.mubr.msk.f32.gmra.mrb[6].mxu0 %vm135_vm1, %v125_v19 }
  0x6e   :  { %4893 = vmatprep.mubr.msk.f32.mxu0 %vm6212_vm0, %v6213_v1  ;;  %5529 = vmatpush3.bf16.msra.mxu0 %v5528_v31  ;;  %v599_v31 = vld [vmem:[%s7769_s12 + $0x8] sm:$0xff] }
  0x6f   :  { %5520 = vmatpush3.bf16.msra.mxu1 %v5519_v22  ;;  %5530 = vmatprep.subr.bf16.mxu0 %v6211_v0 }
  0x72   :  { %5532 = vmatpush3.bf16.msra.mxu0 %v5531_v59 }
 0x134   :  { %v217_v33 = vpop.f32.mrb[0].mxu0  ;;  %v237_v34 = vpop.f32.mrb[0].mxu1 }
 0x135   :  { %v6485_v35 = vadd.f32 %v217_v33, %v130_v32  ;;  %v4833_v36 = vpop.f32.mrb[1].mxu0  ;;  %v4845_v37 = vpop.f32.mrb[1].mxu1  ;;  %v6509_v54 = vadd.f32 %v237_v34, %v134_v49  ;;  %v600_v32 = vld [vmem:[%s7769_s12 + $0x10] sm:$0xff]  ;;  %v601_v33 = vld [vmem:[%s7769_s12 + $0x18] sm:$0xff]  ;;  %v602_v34 = vld [vmem:[%s7769_s12 + $0x20] sm:$0xff] }
 0x136   :  { %v603_v36 = vld [vmem:[%s7769_s12 + $0x28] sm:$0xff] }
 0x137   :  { %v241_v39 = vmax.f32 %v6485_v35, 0.0  ;;  %v7773_v56 = vmax.f32 %v6509_v54, 0.0 }
 0x138   :  { %v222_v40 = vpop.f32.mrb[2].mxu0 }
 0x139   :  { %v6488_v41 = vadd.f32 %v222_v40, %v131_v38  ;;  %v4836_v42 = vpop.f32.mrb[3].mxu0  ;;  %4863 = vmatmul.mubr.msk.f32.vlgmr.msra.gmra.mrb[2].mxu1 %vm259_vm2, %v241_v39 }
 0x13a   :  { %4865 = vmatprep.mubr.msk.f32.mxu1 %vm6212_vm0, %v6213_v1 }
 0x13b   :  { %v7776_v44 = vmax.f32 %v6488_v41, 0.0 }
 0x13c   :  { %v227_v45 = vpop.f32.mrb[4].mxu0 }
 0x13d   :  { %v6496_v46 = vadd.f32 %v227_v45, %v132_v43  ;;  %v4839_v47 = vpop.f32.mrb[5].mxu0  ;;  %4866 = vmatmul.mubr.msk.f32.gmra.mrb[4].mxu1 %vm259_vm2, %v7776_v44 }
 0x13e   :  { %4868 = vmatprep.mubr.msk.f32.mxu1 %vm6212_vm0, %v6213_v1 }
 0x13f   :  { %v7775_v50 = vmax.f32 %v6496_v46, 0.0 }
 0x140   :  { %v232_v51 = vpop.f32.mrb[6].mxu0 }
 0x141   :  { %v6504_v52 = vadd.f32 %v232_v51, %v133_v48  ;;  %v4842_v53 = vpop.f32.mrb[7].mxu0  ;;  %4869 = vmatmul.mubr.msk.f32.gmra.mrb[6].mxu1 %vm259_vm2, %v7775_v50 }
 0x142   :  { %4871 = vmatprep.mubr.msk.f32.mxu1 %vm6212_vm0, %v6213_v1  ;;  %v118_v53 = vld [vmem:[#allocation7] sm:$0xff] }
 0x143   :  { %v7774_v55 = vmax.f32 %v6504_v52, 0.0 }
 0x145   :  { %4872 = vmatmul.mubr.msk.f32.gmra.mrb[8].mxu1 %vm259_vm2, %v7774_v55 }
 0x146   :  { %4874 = vmatprep.mubr.msk.f32.mxu1 %vm6212_vm0, %v6213_v1 }
 0x149   :  { %4875 = vmatmul.mubr.msk.f32.gmra.mrb[10].mxu1 %vm259_vm2, %v7773_v56 }
 0x14a   :  { %4918 = vmatprep.mubr.msk.f32.mxu1 %vm484_vm3, %v478_v21 }
 0x20c   :  { %v341_v61 = vpop.f32.mrb[2].mxu1 }
 0x20d   :  { %v6529_v62 = vadd.f32 %v341_v61, %v254_v60  ;;  %v4864_v63 = vpop.f32.mrb[3].mxu1  ;;  %v6605_v60 = vpack.c.bf16 %v119_v57, %v118_v53  ;;  %v479_v61 = vld [vmem:[%s7768_s11 + $0x8] sm:$0xff] }
 0x20e   :  { %v480_v63 = vld [vmem:[%s7768_s11 + $0x10] sm:$0xff] }
 0x20f   :  { %4894 = vmatmul.mubr.msk.f32.vlgmr.msra.gmra.mrb[8].mxu0 %vm259_vm2, %v6529_v62 }
 0x210   :  { %v346_v3 = vpop.f32.mrb[4].mxu1  ;;  %4896 = vmatprep.mubr.msk.f32.mxu0 %vm6212_vm0, %v6213_v1 }
 0x211   :  { %v6535_v4 = vadd.f32 %v346_v3, %v255_v2  ;;  %v4867_v5 = vpop.f32.mrb[5].mxu1  ;;  %v481_v2 = vld [vmem:[%s7768_s11 + $0x18] sm:$0xff]  ;;  %v482_v3 = vld [vmem:[%s7768_s11 + $0x20] sm:$0xff] }
 0x212   :  { %v483_v5 = vld [vmem:[%s7768_s11 + $0x28] sm:$0xff] }
 0x213   :  { %4897 = vmatmul.mubr.msk.f32.gmra.mrb[10].mxu0 %vm259_vm2, %v6535_v4  ;;  %v5824_v7 = vpack.i.bf16 %v6535_v4, %v6529_v62 }
 0x214   :  { %v351_v8 = vpop.f32.mrb[6].mxu1  ;;  %4899 = vmatprep.mubr.msk.f32.mxu0 %vm6212_vm0, %v6213_v1 }
 0x215   :  { %v6543_v9 = vadd.f32 %v351_v8, %v256_v6  ;;  %5825 = vrot.lane.b32.xlu0 %v5824_v7, %s6214_s26  ;;  %v4870_v10 = vpop.f32.mrb[7].mxu1  ;;  %v120_v6 = vld [vmem:[#allocation7 + $0x10] sm:$0xff]  ;;  %v121_v7 = vld [vmem:[#allocation7 + $0x18] sm:$0xff] }
 0x216   :  { %v6629_v8 = vpack.c.bf16 %v121_v7, %v120_v6 }
 0x217   :  { %4900 = vmatmul.mubr.msk.f32.gmra.mrb[12].mxu0 %vm259_vm2, %v6543_v9 }
 0x218   :  { %v356_v12 = vpop.f32.mrb[8].mxu1  ;;  %4902 = vmatprep.mubr.msk.f32.mxu0 %vm6212_vm0, %v6213_v1 }
 0x219   :  { %v6550_v13 = vadd.f32 %v356_v12, %v257_v11  ;;  %v4873_v14 = vpop.f32.mrb[9].mxu1 }
 0x21b   :  { %4903 = vmatmul.mubr.msk.f32.gmra.mrb[14].mxu0 %vm259_vm2, %v6550_v13  ;;  %v5829_v16 = vpack.i.bf16 %v6550_v13, %v6543_v9 }
 0x21c   :  { %v361_v17 = vpop.f32.mrb[10].mxu1  ;;  %4905 = vmatprep.mubr.msk.f32.mxu0 %vm6212_vm0, %v6213_v1 }
 0x21d   :  { %5830 = vrot.lane.b32.xlu0 %v5829_v16, %s6214_s26  ;;  %v6559_v18 = vadd.f32 %v361_v17, %v258_v15  ;;  %v4876_v19 = vpop.f32.mrb[11].mxu1  ;;  %v4302_v17 = vld [vmem:[%s7765_s8 + $0x40] sm:$0xff] }
 0x21e   :  { %v4303_v19 = vld [vmem:[%s7765_s8 + $0x48] sm:$0xff] }
 0x21f   :  { %4906 = vmatmul.mubr.msk.f32.gmra.mrb[16].mxu0 %vm259_vm2, %v6559_v18  ;;  %612 = vrot.lane.b32.xlu1 %v6559_v18, %s6214_s26 }
 0x220   :  { %4937 = vmatprep.mubr.msk.f32.mxu0 %vm484_vm3, %v598_v20 }
 0x287   :  { %v5826_v22 = vpop.permute.xlu0 %5825 }
 0x288   :  { %v5828_v23 = vunpack.i.h.bf16 %v5826_v22  ;;  %v5827_v24 = vunpack.i.l.bf16 %v5826_v22 }
 0x28a   :  { %v6573_v25 = vpack.c.bf16 %v5828_v23, %v5827_v24  ;;  %v5570_v24 = vpack.c.bf16 %v4303_v19, %v4302_v17 }
 0x28c   :  { %5542 = vmatprep.subr.bf16.mxu0 %v6573_v25 }
 0x28d   :  { %5544 = vmatpush3.bf16.msra.mxu0 %v6573_v25 }
 0x28f   :  { %v5831_v26 = vpop.permute.xlu0 %5830 }
 0x290   :  { %v5833_v27 = vunpack.i.h.bf16 %v5831_v26  ;;  %v5832_v28 = vunpack.i.l.bf16 %v5831_v26  ;;  %v4304_v26 = vld [vmem:[%s7765_s8 + $0x50] sm:$0xff] }
 0x291   :  { %v6580_v30 = vpop.permute.xlu1 %612 }
 0x292   :  { %v6577_v29 = vpack.c.bf16 %v5833_v27, %v5832_v28  ;;  %v4305_v27 = vld [vmem:[%s7765_s8 + $0x58] sm:$0xff] }
 0x294   :  { %5546 = vmatprep.subr.bf16.mxu0 %v6577_v29 }
 0x295   :  { %5548 = vmatpush3.bf16.msra.mxu0 %v6577_v29 }
 0x296   :  { %4935 = vmatprep.subr.mxu0 %v6580_v30 }
 0x299   :  { %4936 = vmatpush3.msra.mxu0 %v6580_v30 }
 0x29a   :  { %4938 = vmatmul.mubr.msk.f32.vlgmr.msra.gmra.mrb[18].mxu0 %vm484_vm3, %v599_v31 }
 0x29b   :  { %4940 = vmatprep.mubr.msk.f32.mxu0 %vm484_vm3, %v600_v32 }
 0x29e   :  { %4941 = vmatmul.mubr.msk.f32.gmra.mrb[20].mxu0 %vm484_vm3, %v601_v33 }
 0x29f   :  { %4943 = vmatprep.mubr.msk.f32.mxu0 %vm484_vm3, %v602_v34  ;;  %v5573_v34 = vpack.c.bf16 %v4305_v27, %v4304_v26 }
 0x2a2   :  { %4944 = vmatmul.mubr.msk.f32.gmra.mrb[22].mxu0 %vm484_vm3, %v603_v36  ;;  %v4306_v36 = vld [vmem:[%s7765_s8 + $0x60] sm:$0xff] }
 0x2e2   :  { %v454_v37 = vpop.f32.mrb[8].mxu0 }
 0x2e3   :  { %v4895_v38 = vpop.f32.mrb[9].mxu0 }
 0x2e6   :  { %v459_v40 = vpop.f32.mrb[10].mxu0 }
 0x2e7   :  { %v5533_v42 = vpack.c.bf16 %v459_v40, %v454_v37  ;;  %v4898_v43 = vpop.f32.mrb[11].mxu0  ;;  %v4307_v37 = vld [vmem:[%s7765_s8 + $0x68] sm:$0xff] }
 0x2e9   :  { %5534 = vmatprep.subr.bf16.mxu1 %v5533_v42 }
 0x2ea   :  { %v464_v45 = vpop.f32.mrb[12].mxu0  ;;  %5536 = vmatpush3.bf16.msra.mxu1 %v5533_v42 }
 0x2eb   :  { %v4901_v47 = vpop.f32.mrb[13].mxu0 }
 0x2ec   :  { %v4308_v47 = vld [vmem:[%s7765_s8 + $0x70] sm:$0xff] }
 0x2ee   :  { %v469_v48 = vpop.f32.mrb[14].mxu0 }
 0x2ef   :  { %v5537_v49 = vpack.c.bf16 %v469_v48, %v464_v45  ;;  %v4904_v51 = vpop.f32.mrb[15].mxu0  ;;  %v5576_v45 = vpack.c.bf16 %v4307_v37, %v4306_v36  ;;  %v4309_v48 = vld [vmem:[%s7765_s8 + $0x78] sm:$0xff] }
 0x2f0   :  { %v4295_v51 = vld [vmem:[%s7766_s9] ss:$0 sm:$0xff] }
 0x2f1   :  { %5538 = vmatprep.subr.bf16.mxu1 %v5537_v49 }
 0x2f2   :  { %5540 = vmatpush3.bf16.msra.mxu1 %v5537_v49  ;;  %v474_v58 = vpop.f32.mrb[16].mxu0  ;;  %v5579_v49 = vpack.c.bf16 %v4309_v48, %v4308_v47 }
 0x2f3   :  { %v4907_v59 = vpop.f32.mrb[17].mxu0  ;;  %4916 = vmatprep.subr.mxu1 %v474_v58 }
 0x2f6   :  { %4917 = vmatpush3.msra.mxu1 %v474_v58 }
 0x2f7   :  { %4919 = vmatmul.mubr.msk.f32.vlgmr.msra.gmra.mrb[12].mxu1 %vm484_vm3, %v479_v61  ;;  %5550 = vmatprep.subr.bf16.mxu1 %v6605_v60 }
 0x2f8   :  { %4921 = vmatprep.mubr.msk.f32.mxu1 %vm484_vm3, %v480_v63  ;;  %5552 = vmatpush3.bf16.msra.mxu1 %v6605_v60 }
 0x2f9   :  { %5554 = vmatprep.subr.bf16.mxu1 %v6629_v8 }
 0x2fb   :  { %4922 = vmatmul.mubr.msk.f32.gmra.mrb[14].mxu1 %vm484_vm3, %v481_v2 }
 0x2fc   :  { %4924 = vmatprep.mubr.msk.f32.mxu1 %vm484_vm3, %v482_v3  ;;  %5556 = vmatpush3.bf16.msra.mxu1 %v6629_v8 }
 0x2fd   :  { %5569 = vmatprep.subr.bf16.mxu1 %v6211_v0 }
 0x2ff   :  { %4925 = vmatmul.mubr.msk.f32.gmra.mrb[16].mxu1 %vm484_vm3, %v483_v5 }
 0x36d   :  { %v4939_v10 = vpop.f32.mrb[18].mxu0 }
 0x36e   :  { %v703_v11 = vpop.f32.mrb[19].mxu0 }
 0x371   :  { %v4942_v12 = vpop.f32.mrb[20].mxu0 }
 0x372   :  { %v713_v14 = vpop.f32.mrb[21].mxu0 }
 0x375   :  { %v4945_v15 = vpop.f32.mrb[22].mxu0 }
 0x376   :  { %v723_v16 = vpop.f32.mrb[23].mxu0 }
 0x3ca   :  { %v6640_v20 = vpop.f32.mrb[12].mxu1 }
 0x3cb   :  { %v733_v21 = vmul.f32 %v4939_v10, %v6640_v20  ;;  %v6643_v22 = vpop.f32.mrb[13].mxu1 }
 0x3cc   :  { %v732_v23 = vmul.f32 %v703_v11, %v6643_v22 }
 0x3ce   :  { %v6652_v28 = vpop.f32.mrb[14].mxu1  ;;  %4954 = vmatprep.mubr.msk.f32.mxu1 %vm738_vm4, %v732_v23 }
 0x3cf   :  { %v735_v31 = vmul.f32 %v4942_v12, %v6652_v28  ;;  %v6656_v32 = vpop.f32.mrb[15].mxu1  ;;  %4955 = vmatmul.mubr.msk.f32.vlgmr.msra.gmra.mrb[18].mxu1 %vm738_vm4, %v733_v21 }
 0x3d0   :  { %v734_v33 = vmul.f32 %v713_v14, %v6656_v32  ;;  %5571 = vmatpush3.bf16.msra.mxu1 %v5570_v24 }
 0x3d1   :  { %5572 = vmatprep.subr.bf16.mxu1 %v6211_v0 }
 0x3d2   :  { %v6667_v38 = vpop.f32.mrb[16].mxu1  ;;  %4957 = vmatprep.mubr.msk.f32.mxu1 %vm738_vm4, %v734_v33 }
 0x3d3   :  { %v737_v40 = vmul.f32 %v4945_v15, %v6667_v38  ;;  %v6671_v42 = vpop.f32.mrb[17].mxu1  ;;  %4958 = vmatmul.mubr.msk.f32.gmra.mrb[20].mxu1 %vm738_vm4, %v735_v31 }
 0x3d4   :  { %v736_v43 = vmul.f32 %v723_v16, %v6671_v42  ;;  %5574 = vmatpush3.bf16.msra.mxu1 %v5573_v34 }
 0x3d5   :  { %5575 = vmatprep.subr.bf16.mxu1 %v6211_v0 }
 0x3d6   :  { %4960 = vmatprep.mubr.msk.f32.mxu1 %vm738_vm4, %v736_v43 }
 0x3d7   :  { %4961 = vmatmul.mubr.msk.f32.gmra.mrb[22].mxu1 %vm738_vm4, %v737_v40 }
 0x3d8   :  { %5577 = vmatpush3.bf16.msra.mxu1 %v5576_v45  ;;  %5000 = vmatprep.mubr.msk.f32.mxu1 %vm6212_vm0, %v6213_v1 }
 0x3d9   :  { %5578 = vmatprep.subr.bf16.mxu1 %v6211_v0 }
 0x3dc   :  { %5580 = vmatpush3.bf16.msra.mxu1 %v5579_v49 }
 0x3dd   :  { %5598 = vmatprep.subr.bf16.mxu1 %v6605_v60 }
 0x3df   :  { %5001 = vmatmul.mubr.msk.f32.vlgmr.msra.gmra.mrb[24].mxu1 %vm259_vm2, %v6529_v62  ;;  %v900_v62 = vld [vmem:[%s7771_s14] sm:$0xff] }
 0x3e0   :  { %5003 = vmatprep.mubr.msk.f32.mxu1 %vm6212_vm0, %v6213_v1  ;;  %5600 = vmatpush3.bf16.msra.mxu1 %v6605_v60 }
 0x3e1   :  { %5602 = vmatprep.subr.bf16.mxu1 %v6629_v8  ;;  %4975 = vmatprep.mubr.msk.f32.mxu0 %vm906_vm5, %v900_v62 }
 0x3e3   :  { %5004 = vmatmul.mubr.msk.f32.gmra.mrb[26].mxu1 %vm259_vm2, %v6535_v4 }
 0x3e4   :  { %5006 = vmatprep.mubr.msk.f32.mxu1 %vm6212_vm0, %v6213_v1  ;;  %5604 = vmatpush3.bf16.msra.mxu1 %v6629_v8 }
 0x3e5   :  { %5617 = vmatprep.subr.bf16.mxu1 %v6211_v0 }
 0x3e7   :  { %5007 = vmatmul.mubr.msk.f32.gmra.mrb[28].mxu1 %vm259_vm2, %v6543_v9 }
 0x3e8   :  { %5009 = vmatprep.mubr.msk.f32.mxu1 %vm6212_vm0, %v6213_v1 }
 0x3eb   :  { %5010 = vmatmul.mubr.msk.f32.gmra.mrb[30].mxu1 %vm259_vm2, %v6550_v13 }
 0x3ec   :  { %5012 = vmatprep.mubr.msk.f32.mxu1 %vm6212_vm0, %v6213_v1 }
 0x3ef   :  { %5013 = vmatmul.mubr.msk.f32.gmra.mrb[32].mxu1 %vm259_vm2, %v6559_v18 }
 0x4a2   :  { %v4956_v4 = vpop.f32.mrb[18].mxu1 }
 0x4a3   :  { %v823_v9 = vpop.f32.mrb[19].mxu1  ;;  %v860_v59 = vmul.f32 %v4956_v4, %v4295_v51 }
 0x4a4   :  { %v859_v61 = vmul.f32 %v4295_v51, %v823_v9 }
 0x4a5   :  { %v866_v10 = vsel %vm259_vm2, %v860_v59, -inf }
 0x4a6   :  { %v4959_v13 = vpop.f32.mrb[20].mxu1  ;;  %v865_v12 = vsel %vm259_vm2, %v859_v61, -inf }
 0x4a7   :  { %v862_v53 = vmul.f32 %v4959_v13, %v4295_v51  ;;  %v833_v57 = vpop.f32.mrb[21].mxu1 }
 0x4a8   :  { %v861_v58 = vmul.f32 %v4295_v51, %v833_v57 }
 0x4a9   :  { %v868_v18 = vsel %vm259_vm2, %v862_v53, -inf }
 0x4aa   :  { %v867_v63 = vsel %vm259_vm2, %v861_v58, -inf  ;;  %v4962_v2 = vpop.f32.mrb[22].mxu1 }
 0x4ab   :  { %v874_v3 = vmax.f32 %v867_v63, %v868_v18  ;;  %v864_v5 = vmul.f32 %v4962_v2, %v4295_v51  ;;  %v843_v6 = vpop.f32.mrb[23].mxu1 }
 0x4ac   :  { %v863_v7 = vmul.f32 %v4295_v51, %v843_v6 }
 0x4ad   :  { %v871_v11 = vsel %vm259_vm2, %v864_v5, -inf }
 0x4ae   :  { %v872_v14 = vmax.f32 %v866_v10, %v871_v11  ;;  %v869_v15 = vsel %vm259_vm2, %v863_v7, -inf }
 0x4af   :  { %v870_v16 = vmax.f32 %v865_v12, %v869_v15 }
 0x4b1   :  { %v873_v17 = vmax.f32 %v870_v16, %v872_v14 }
 0x4b2   :  { %v1142_v19 = vpop.f32.mrb[24].mxu1 }
 0x4b3   :  { %v875_v21 = vmax.f32 %v873_v17, %v874_v3  ;;  %v5002_v23 = vpop.f32.mrb[25].mxu1  ;;  %v901_v17 = vld [vmem:[%s7771_s14 + $0x8] sm:$0xff] }
 0x4b4   :  { %v904_v23 = vld [vmem:[%s7771_s14 + $0x20] sm:$0xff] }
 0x4b5   :  { %v876_v24 = vrot.slane %v875_v21, 4 }
 0x4b6   :  { %v1147_v26 = vpop.f32.mrb[26].mxu1 }
 0x4b7   :  { %v877_v27 = vmax.f32 %v875_v21, %v876_v24  ;;  %v5581_v31 = vpack.c.bf16 %v1147_v26, %v1142_v19  ;;  %v5005_v33 = vpop.f32.mrb[27].mxu1  ;;  %v902_v19 = vld [vmem:[%s7771_s14 + $0x10] sm:$0xff]  ;;  %v903_v21 = vld [vmem:[%s7771_s14 + $0x18] sm:$0xff]  ;;  %v905_v24 = vld [vmem:[%s7771_s14 + $0x28] sm:$0xff] }
 0x4b8   :  { %v4315_v26 = vld [vmem:[%s7768_s11 + $0x30] sm:$0xff]  ;;  %v4318_v33 = vld [vmem:[%s7768_s11 + $0x48] sm:$0xff] }
 0x4b9   :  { %v878_v34 = vrot.slane %v877_v27, 2 }
 0x4ba   :  { %v1152_v36 = vpop.f32.mrb[28].mxu1 }
 0x4bb   :  { %v879_v37 = vmax.f32 %v877_v27, %v878_v34  ;;  %v5008_v40 = vpop.f32.mrb[29].mxu1  ;;  %v4316_v27 = vld [vmem:[%s7768_s11 + $0x38] sm:$0xff]  ;;  %v4319_v34 = vld [vmem:[%s7768_s11 + $0x50] sm:$0xff] }
 0x4bc   :  { %v4330_v40 = vld [vmem:[%s7769_s12 + $0x48] sm:$0xff] }
 0x4bd   :  { %v880_v43 = vrot.slane %v879_v37, 1 }
 0x4be   :  { %v1157_v45 = vpop.f32.mrb[30].mxu1 }
 0x4bf   :  { %v881_v47 = vmax.f32 %v879_v37, %v880_v43  ;;  %v5585_v48 = vpack.c.bf16 %v1157_v45, %v1152_v36  ;;  %v5011_v49 = vpop.f32.mrb[31].mxu1  ;;  %v4327_v36 = vld [vmem:[%s7769_s12 + $0x30] sm:$0xff]  ;;  %v4329_v37 = vld [vmem:[%s7769_s12 + $0x40] sm:$0xff]  ;;  %v4332_v43 = vld [vmem:[%s7769_s12 + $0x58] sm:$0xff] }
 0x4c1   :  { %v886_v62 = vsub.f32 %v863_v7, %v881_v47  ;;  %v882_v4 = vsub.f32 %v859_v61, %v881_v47  ;;  %v883_v9 = vsub.f32 %v860_v59, %v881_v47  ;;  %v884_v51 = vsub.f32 %v861_v58, %v881_v47 }
 0x4c2   :  { %v1162_v13 = vpop.f32.mrb[32].mxu1  ;;  %v885_v57 = vsub.f32 %v862_v53, %v881_v47  ;;  %v887_v18 = vsub.f32 %v864_v5, %v881_v47 }
 0x4c3   :  { %v5014_v63 = vpop.f32.mrb[33].mxu1  ;;  %v888_v2 = vmul.f32 1.442695, %v882_v4  ;;  %v890_v3 = vmul.f32 1.442695, %v883_v9 }
 0x4c4   :  { %v892_v6 = vmul.f32 1.442695, %v884_v51  ;;  %v894_v10 = vmul.f32 1.442695, %v885_v57  ;;  %v896_v11 = vmul.f32 1.442695, %v886_v62 }
 0x4c5   :  { %5906 = vpow2.f32 %v888_v2  ;;  %v898_v12 = vmul.f32 1.442695, %v887_v18 }
 0x4c6   :  { %5908 = vpow2.f32 %v890_v3 }
 0x4c7   :  { %5910 = vpow2.f32 %v892_v6 }
 0x4c8   :  { %5912 = vpow2.f32 %v894_v10 }
 0x4c9   :  { %5914 = vpow2.f32 %v896_v11 }
 0x4ca   :  { %5916 = vpow2.f32 %v898_v12 }
 0x4cf   :  { %v6723_v7 = vpop.eup %5906 }
 0x4d0   :  { %v6725_v59 = vpop.eup %5908 }
 0x4d1   :  { %v6727_v58 = vpop.eup %5910  ;;  %v5557_v53 = vpack.c.bf16 %v6725_v59, %v6723_v7 }
 0x4d2   :  { %v6731_v61 = vpop.eup %5912 }
 0x4d3   :  { %v6733_v5 = vpop.eup %5914  ;;  %5558 = vmatprep.subr.bf16.mxu0 %v5557_v53  ;;  %v5561_v14 = vpack.c.bf16 %v6731_v61, %v6727_v58 }
 0x4d4   :  { %v6737_v15 = vpop.eup %5916  ;;  %5560 = vmatpush3.bf16.msra.mxu0 %v5557_v53 }
 0x4d5   :  { %5562 = vmatprep.subr.bf16.mxu0 %v5561_v14  ;;  %v5565_v16 = vpack.c.bf16 %v6737_v15, %v6733_v5 }
 0x4d8   :  { %5564 = vmatpush3.bf16.msra.mxu0 %v5561_v14 }
 0x4d9   :  { %5566 = vmatprep.subr.bf16.mxu0 %v5565_v16 }
 0x4dc   :  { %5568 = vmatpush3.bf16.msra.mxu0 %v5565_v16 }
 0x4dd   :  { %5582 = vmatprep.subr.bf16.mxu0 %v5581_v31 }
 0x4df   :  { %4976 = vmatmul.mubr.msk.f32.vlgmr.msra.gmra.mrb[24].mxu0 %vm906_vm5, %v901_v17 }
 0x4e0   :  { %5584 = vmatpush3.bf16.msra.mxu0 %v5581_v31  ;;  %4978 = vmatprep.mubr.msk.f32.mxu0 %vm906_vm5, %v902_v19  ;;  %v4317_v31 = vld [vmem:[%s7768_s11 + $0x40] sm:$0xff] }
 0x4e1   :  { %5586 = vmatprep.subr.bf16.mxu0 %v5585_v48 }
 0x4e3   :  { %4979 = vmatmul.mubr.msk.f32.gmra.mrb[26].mxu0 %vm906_vm5, %v903_v21 }
 0x4e4   :  { %5588 = vmatpush3.bf16.msra.mxu0 %v5585_v48  ;;  %4981 = vmatprep.mubr.msk.f32.mxu0 %vm906_vm5, %v904_v23  ;;  %v4347_v23 = vld [vmem:[%s7771_s14 + $0x30] sm:$0xff] }
 0x4e5   :  { %5023 = vmatprep.subr.mxu0 %v1162_v13 }
 0x4e7   :  { %4982 = vmatmul.mubr.msk.f32.gmra.mrb[28].mxu0 %vm906_vm5, %v905_v24 }
 0x4e8   :  { %5024 = vmatpush3.msra.mxu0 %v1162_v13  ;;  %5025 = vmatprep.mubr.msk.f32.mxu0 %vm484_vm3, %v4315_v26 }
 0x4e9   :  { %5590 = vmatprep.subr.bf16.mxu0 %v6573_v25 }
 0x4eb   :  { %5026 = vmatmul.mubr.msk.f32.vlgmr.msra.gmra.mrb[30].mxu0 %vm484_vm3, %v4316_v27  ;;  %v4346_v27 = vld [vmem:[%s7766_s9 + $0x1] ss:$0 sm:$0xff] }
 0x4ec   :  { %5592 = vmatpush3.bf16.msra.mxu0 %v6573_v25  ;;  %5028 = vmatprep.mubr.msk.f32.mxu0 %vm484_vm3, %v4317_v31  ;;  %v4320_v25 = vld [vmem:[%s7768_s11 + $0x58] sm:$0xff] }
 0x4ed   :  { %5594 = vmatprep.subr.bf16.mxu0 %v6577_v29 }
 0x4ef   :  { %5029 = vmatmul.mubr.msk.f32.gmra.mrb[32].mxu0 %vm484_vm3, %v4318_v33 }
 0x4f0   :  { %5596 = vmatpush3.bf16.msra.mxu0 %v6577_v29  ;;  %5031 = vmatprep.mubr.msk.f32.mxu0 %vm484_vm3, %v4319_v34  ;;  %v4328_v29 = vld [vmem:[%s7769_s12 + $0x38] sm:$0xff] }
 0x4f1   :  { %5042 = vmatprep.subr.mxu0 %v6580_v30 }
 0x4f3   :  { %5032 = vmatmul.mubr.msk.f32.gmra.mrb[34].mxu0 %vm484_vm3, %v4320_v25 }
 0x4f4   :  { %5043 = vmatpush3.msra.mxu0 %v6580_v30  ;;  %5044 = vmatprep.mubr.msk.f32.mxu0 %vm484_vm3, %v4327_v36  ;;  %v4331_v30 = vld [vmem:[%s7769_s12 + $0x50] sm:$0xff] }
 0x4f7   :  { %5045 = vmatmul.mubr.msk.f32.vlgmr.msra.gmra.mrb[36].mxu0 %vm484_vm3, %v4328_v29 }
 0x4f8   :  { %5047 = vmatprep.mubr.msk.f32.mxu0 %vm484_vm3, %v4329_v37 }
 0x4fb   :  { %5048 = vmatmul.mubr.msk.f32.gmra.mrb[38].mxu0 %vm484_vm3, %v4330_v40 }
 0x4fc   :  { %5050 = vmatprep.mubr.msk.f32.mxu0 %vm484_vm3, %v4331_v30 }
 0x4ff   :  { %5051 = vmatmul.mubr.msk.f32.gmra.mrb[40].mxu0 %vm484_vm3, %v4332_v43 }
 0x500   :  { %5082 = vmatprep.mubr.msk.f32.mxu0 %vm906_vm5, %v4347_v23 }
 0x5b2   :  { %v6815_v45 = vpop.f32.mrb[24].mxu0 }
 0x5b3   :  { %v6817_v47 = vpop.f32.mrb[25].mxu0 }
 0x5b6   :  { %v6819_v48 = vpop.f32.mrb[26].mxu0 }
 0x5b7   :  { %v6821_v49 = vpop.f32.mrb[27].mxu0 }
 0x5ba   :  { %v6823_v62 = vpop.f32.mrb[28].mxu0 }
 0x5bb   :  { %v6825_v4 = vpop.f32.mrb[29].mxu0 }
 0x5be   :  { %v6827_v9 = vpop.f32.mrb[30].mxu0 }
 0x5bf   :  { %v6829_v51 = vpop.f32.mrb[31].mxu0 }
 0x5c2   :  { %v6831_v13 = vpop.f32.mrb[32].mxu0 }
 0x5c3   :  { %v6833_v57 = vpop.f32.mrb[33].mxu0 }
 0x5c6   :  { %v6835_v18 = vpop.f32.mrb[34].mxu0 }
 0x5c7   :  { %v6837_v63 = vpop.f32.mrb[35].mxu0 }
 0x5ca   :  { %v5046_v2 = vpop.f32.mrb[36].mxu0 }
 0x5cb   :  { %v1407_v3 = vmul.f32 %v5046_v2, %v6827_v9  ;;  %v1377_v6 = vpop.f32.mrb[37].mxu0 }
 0x5cc   :  { %v1406_v10 = vmul.f32 %v1377_v6, %v6829_v51 }
 0x5ce   :  { %v5049_v11 = vpop.f32.mrb[38].mxu0  ;;  %5061 = vmatprep.mubr.msk.f32.mxu1 %vm738_vm4, %v1406_v10 }
 0x5cf   :  { %v1409_v12 = vmul.f32 %v5049_v11, %v6831_v13  ;;  %v1387_v53 = vpop.f32.mrb[39].mxu0  ;;  %5062 = vmatmul.mubr.msk.f32.vlgmr.msra.gmra.mrb[34].mxu1 %vm738_vm4, %v1407_v3 }
 0x5d0   :  { %v1408_v14 = vmul.f32 %v1387_v53, %v6833_v57 }
 0x5d2   :  { %v5052_v16 = vpop.f32.mrb[40].mxu0  ;;  %5064 = vmatprep.mubr.msk.f32.mxu1 %vm738_vm4, %v1408_v14 }
 0x5d3   :  { %v1411_v17 = vmul.f32 %v5052_v16, %v6835_v18  ;;  %v1397_v19 = vpop.f32.mrb[41].mxu0  ;;  %5065 = vmatmul.mubr.msk.f32.gmra.mrb[36].mxu1 %vm738_vm4, %v1409_v12 }
 0x5d4   :  { %v1410_v21 = vmul.f32 %v1397_v19, %v6837_v63 }
 0x5d6   :  { %5067 = vmatprep.mubr.msk.f32.mxu1 %vm738_vm4, %v1410_v21 }
 0x5d7   :  { %5068 = vmatmul.mubr.msk.f32.gmra.mrb[38].mxu1 %vm738_vm4, %v1411_v17 }
 0x5d8   :  { %5103 = vmatprep.mubr.msk.f32.mxu1 %vm6212_vm0, %v6213_v1 }
 0x6a2   :  { %v5063_v24 = vpop.f32.mrb[34].mxu1 }
 0x6a3   :  { %v1496_v26 = vpop.f32.mrb[35].mxu1  ;;  %v1534_v36 = vmul.f32 %v5063_v24, %v4346_v27 }
 0x6a4   :  { %v1533_v37 = vmul.f32 %v4346_v27, %v1496_v26 }
 0x6a5   :  { %v1540_v10 = vsel %vm259_vm2, %v1534_v36, -inf }
 0x6a6   :  { %v5066_v31 = vpop.f32.mrb[36].mxu1  ;;  %v1539_v12 = vsel %vm259_vm2, %v1533_v37, -inf }
 0x6a7   :  { %v1536_v33 = vmul.f32 %v5066_v31, %v4346_v27  ;;  %v1506_v34 = vpop.f32.mrb[37].mxu1 }
 0x6a8   :  { %v1535_v25 = vmul.f32 %v4346_v27, %v1506_v34 }
 0x6a9   :  { %v1542_v29 = vsel %vm259_vm2, %v1536_v33, -inf }
 0x6aa   :  { %v1541_v40 = vsel %vm259_vm2, %v1535_v25, -inf  ;;  %v5069_v30 = vpop.f32.mrb[38].mxu1 }
 0x6ab   :  { %v1548_v43 = vmax.f32 %v1541_v40, %v1542_v29  ;;  %v1538_v2 = vmul.f32 %v5069_v30, %v4346_v27  ;;  %v1516_v3 = vpop.f32.mrb[39].mxu1 }
 0x6ac   :  { %v1537_v6 = vmul.f32 %v4346_v27, %v1516_v3 }
 0x6ad   :  { %v1545_v11 = vsel %vm259_vm2, %v1538_v2, -inf }
 0x6ae   :  { %v1546_v53 = vmax.f32 %v1540_v10, %v1545_v11  ;;  %v1543_v14 = vsel %vm259_vm2, %v1537_v6, -inf }
 0x6af   :  { %v1544_v16 = vmax.f32 %v1539_v12, %v1543_v14  ;;  %v4351_v14 = vld [vmem:[%s7771_s14 + $0x50] sm:$0xff] }
 0x6b1   :  { %v1547_v17 = vmax.f32 %v1544_v16, %v1546_v53  ;;  %v4352_v16 = vld [vmem:[%s7771_s14 + $0x58] sm:$0xff] }
 0x6b3   :  { %v1549_v19 = vmax.f32 %v1547_v17, %v1548_v43 }
 0x6b5   :  { %v1550_v21 = vrot.slane %v1549_v19, 4 }
 0x6b7   :  { %v1551_v23 = vmax.f32 %v1549_v19, %v1550_v21 }
 0x6b9   :  { %v1552_v24 = vrot.slane %v1551_v23, 2 }
 0x6bb   :  { %v1553_v26 = vmax.f32 %v1551_v23, %v1552_v24 }
 0x6bd   :  { %v1554_v31 = vrot.slane %v1553_v26, 1 }
 0x6bf   :  { %v1555_v34 = vmax.f32 %v1553_v26, %v1554_v31 }
 0x6c1   :  { %v1560_v29 = vsub.f32 %v1537_v6, %v1555_v34  ;;  %v1556_v27 = vsub.f32 %v1533_v37, %v1555_v34  ;;  %v1557_v40 = vsub.f32 %v1534_v36, %v1555_v34  ;;  %v1558_v30 = vsub.f32 %v1535_v25, %v1555_v34 }
 0x6c2   :  { %v1559_v3 = vsub.f32 %v1536_v33, %v1555_v34  ;;  %v1561_v56 = vsub.f32 %v1538_v2, %v1555_v34 }
 0x6c3   :  { %v1562_v55 = vmul.f32 1.442695, %v1556_v27  ;;  %v1564_v50 = vmul.f32 1.442695, %v1557_v40  ;;  %v1566_v10 = vmul.f32 1.442695, %v1558_v30 }
 0x6c4   :  { %v1568_v11 = vmul.f32 1.442695, %v1559_v3  ;;  %v1570_v44 = vmul.f32 1.442695, %v1560_v29  ;;  %v1572_v43 = vmul.f32 1.442695, %v1561_v56 }
 0x6c5   :  { %5918 = vpow2.f32 %v1562_v55  ;;  %v4349_v55 = vld [vmem:[%s7771_s14 + $0x40] sm:$0xff]  ;;  %v4350_v56 = vld [vmem:[%s7771_s14 + $0x48] sm:$0xff]  ;;  %v997_v27 = vadd.f32 1e-16, %v6815_v45  ;;  %v992_v3 = vadd.f32 1e-16, %v6817_v47 }
 0x6c6   :  { %5920 = vpow2.f32 %v1564_v50  ;;  %v1017_v47 = vadd.f32 1e-16, %v6823_v62 }
 0x6c7   :  { %5922 = vpow2.f32 %v1566_v10 }
 0x6c8   :  { %5924 = vpow2.f32 %v1568_v11 }
 0x6c9   :  { %5926 = vpow2.f32 %v1570_v44  ;;  %v4348_v44 = vld [vmem:[%s7771_s14 + $0x38] sm:$0xff] }
 0x6ca   :  { %5928 = vpow2.f32 %v1572_v43  ;;  %v1007_v43 = vadd.f32 1e-16, %v6819_v48 }
 0x6cf   :  { %v5919_v12 = vpop.eup %5918 }
 0x6d0   :  { %v5921_v53 = vpop.eup %5920 }
 0x6d1   :  { %v6866_v6 = vpop.eup %5922  ;;  %v5605_v36 = vpack.c.bf16 %v5921_v53, %v5919_v12 }
 0x6d2   :  { %v5925_v25 = vpop.eup %5924 }
 0x6d3   :  { %v6868_v33 = vpop.eup %5926  ;;  %5606 = vmatprep.subr.bf16.mxu0 %v5605_v36  ;;  %v5609_v37 = vpack.c.bf16 %v5925_v25, %v6866_v6 }
 0x6d4   :  { %v6871_v2 = vpop.eup %5928  ;;  %5608 = vmatpush3.bf16.msra.mxu0 %v5605_v36 }
 0x6d5   :  { %5610 = vmatprep.subr.bf16.mxu0 %v5609_v37  ;;  %v5613_v50 = vpack.c.bf16 %v6871_v2, %v6868_v33 }
 0x6d8   :  { %5612 = vmatpush3.bf16.msra.mxu0 %v5609_v37  ;;  %v1002_v37 = vadd.f32 1e-16, %v6821_v49 }
 0x6d9   :  { %5614 = vmatprep.subr.bf16.mxu0 %v5613_v50 }
 0x6dc   :  { %5616 = vmatpush3.bf16.msra.mxu0 %v5613_v50 }
 0x6dd   :  { %5635 = vmatprep.subr.bf16.mxu0 %v6211_v0 }
 0x6df   :  { %5083 = vmatmul.mubr.msk.f32.vlgmr.msra.gmra.mrb[42].mxu0 %vm906_vm5, %v4348_v44 }
 0x6e0   :  { %5085 = vmatprep.mubr.msk.f32.mxu0 %vm906_vm5, %v4349_v55 }
 0x6e3   :  { %5086 = vmatmul.mubr.msk.f32.gmra.mrb[44].mxu0 %vm906_vm5, %v4350_v56  ;;  %v1012_v56 = vadd.f32 1e-16, %v6825_v4 }
 0x6e4   :  { %5088 = vmatprep.mubr.msk.f32.mxu0 %vm906_vm5, %v4351_v14 }
 0x6e7   :  { %5089 = vmatmul.mubr.msk.f32.gmra.mrb[46].mxu0 %vm906_vm5, %v4352_v16 }
 0x6e8   :  { %5161 = vmatprep.mubr.msk.f32.mxu0 %vm6212_vm0, %v6213_v1 }
 0x7b2   :  { %v5084_v17 = vpop.f32.mrb[42].mxu0 }
 0x7b3   :  { %v1671_v19 = vadd.f32 1e-16, %v5084_v17  ;;  %v1665_v21 = vpop.f32.mrb[43].mxu0 }
 0x7b4   :  { %v1666_v23 = vadd.f32 1e-16, %v1665_v21 }
 0x7b5   :  { %5930 = vrcp.f32 %v1671_v19  ;;  %v6216_v19 = vmov 0  }
 0x7b6   :  { %5932 = vrcp.f32 %v1666_v23  ;;  %v5087_v24 = vpop.f32.mrb[44].mxu0  ;;  %5864 = vset.pattern.permute.xlu1 %v6216_v19  ;;  %5865 = vset.pattern.permute.xlu0 %v6216_v19 }
 0x7b7   :  { %v1681_v26 = vadd.f32 1e-16, %v5087_v24  ;;  %v1675_v31 = vpop.f32.mrb[45].mxu0 }
 0x7b8   :  { %v1676_v34 = vadd.f32 1e-16, %v1675_v31 }
 0x7b9   :  { %5934 = vrcp.f32 %v1681_v26 }
 0x7ba   :  { %5936 = vrcp.f32 %v1676_v34  ;;  %v5090_v29 = vpop.f32.mrb[46].mxu0 }
 0x7bb   :  { %v1691_v40 = vadd.f32 1e-16, %v5090_v29  ;;  %v1685_v30 = vpop.f32.mrb[47].mxu0 }
 0x7bc   :  { %v1686_v10 = vadd.f32 1e-16, %v1685_v30 }
 0x7bd   :  { %5938 = vrcp.f32 %v1691_v40 }
 0x7be   :  { %5940 = vrcp.f32 %v1686_v10 }
 0x7bf   :  { %v5931_v11 = vpop.eup %5930  ;;  %5942 = vrcp.f32 %v997_v27 }
 0x7c0   :  { %v5933_v36 = vpop.eup %5932  ;;  %5944 = vrcp.f32 %v992_v3  ;;  %v1701_v50 = vmul.f32 %v5931_v11, %v5921_v53 }
 0x7c1   :  { %v1700_v44 = vmul.f32 %v5933_v36, %v5919_v12  ;;  %5946 = vrcp.f32 %v1007_v43 }
 0x7c2   :  { %1720 = vrot.lane.b32.xlu0 %v1701_v50, %s6215_s19  ;;  %5948 = vrcp.f32 %v1002_v37 }
 0x7c3   :  { %v5935_v45 = vpop.eup %5934  ;;  %1718 = vrot.lane.b32.xlu1 %v1700_v44, %s6215_s19  ;;  %5950 = vrcp.f32 %v1017_v47 }
 0x7c4   :  { %v5937_v55 = vpop.eup %5936  ;;  %v1703_v48 = vmul.f32 %v5935_v45, %v5925_v25  ;;  %5952 = vrcp.f32 %v1012_v56 }
 0x7c5   :  { %v1702_v14 = vmul.f32 %v5937_v55, %v6866_v6 }
 0x7c6   :  { %1724 = vrot.lane.b32.xlu0 %v1703_v48, %s6215_s19 }
 0x7c7   :  { %v5939_v49 = vpop.eup %5938  ;;  %1722 = vrot.lane.b32.xlu1 %v1702_v14, %s6215_s19  ;;  %v2256_v14 = vld [vmem:[%s7764_s7 + $0x18] sm:$0xff] }
 0x7c8   :  { %v5941_v12 = vpop.eup %5940  ;;  %v1705_v53 = vmul.f32 %v5939_v49, %v6871_v2  ;;  %v2291_v49 = vsub.f32 1.0, %v2256_v14 }
 0x7c9   :  { %v5943_v62 = vpop.eup %5942  ;;  %v1704_v16 = vmul.f32 %v5941_v12, %v6868_v33  ;;  %v2257_v12 = vld [vmem:[%s7764_s7 + $0x20] sm:$0xff] }
 0x7ca   :  { %v5945_v17 = vpop.eup %5944  ;;  %1728 = vrot.lane.b32.xlu0 %v1705_v53, %s6215_s19  ;;  %v1027_v4 = vmul.f32 %v5943_v62, %v6725_v59  ;;  %v2292_v53 = vsub.f32 1.0, %v2257_v12 }
 0x7cb   :  { %1726 = vrot.lane.b32.xlu1 %v1704_v16, %s6215_s19  ;;  %v5947_v6 = vpop.eup %5946  ;;  %v1026_v25 = vmul.f32 %v5945_v17, %v6723_v7 }
 0x7cc   :  { %v5949_v21 = vpop.eup %5948  ;;  %v1029_v33 = vmul.f32 %v5947_v6, %v6731_v61 }
 0x7cd   :  { %v5951_v2 = vpop.eup %5950  ;;  %v1028_v23 = vmul.f32 %v5949_v21, %v6727_v58 }
 0x7ce   :  { %1045 = vrot.lane.b32.xlu0 %v1027_v4, %s6215_s19  ;;  %v5953_v24 = vpop.eup %5952  ;;  %v1031_v7 = vmul.f32 %v5951_v2, %v6737_v15 }
 0x7cf   :  { %1043 = vrot.lane.b32.xlu1 %v1026_v25, %s6215_s19  ;;  %v1030_v59 = vmul.f32 %v5953_v24, %v6733_v5 }
 0x7d2   :  { %1049 = vrot.lane.b32.xlu0 %v1029_v33, %s6215_s19 }
 0x7d3   :  { %1047 = vrot.lane.b32.xlu1 %v1028_v23, %s6215_s19 }
 0x7d6   :  { %1053 = vrot.lane.b32.xlu0 %v1031_v7, %s6215_s19 }
 0x7d7   :  { %1051 = vrot.lane.b32.xlu1 %v1030_v59, %s6215_s19 }
 0x834   :  { %v1721_v26 = vpop.permute.xlu0 %1720 }
 0x835   :  { %v1737_v31 = vmul.f32 %v6827_v9, %v1721_v26  ;;  %v1719_v61 = vpop.permute.xlu1 %1718 }
 0x836   :  { %v1736_v34 = vmul.f32 %v1719_v61, %v6829_v51 }
 0x838   :  { %v5834_v58 = vpack.i.bf16 %v1737_v31, %v1736_v34  ;;  %v1725_v29 = vpop.permute.xlu0 %1724  ;;  %v1707_v31 = vld [vmem:[#allocation9 + $0x28] sm:$0xff] }
 0x839   :  { %v1739_v27 = vmul.f32 %v6831_v13, %v1725_v29  ;;  %v1723_v40 = vpop.permute.xlu1 %1722 }
 0x83a   :  { %v1738_v30 = vmul.f32 %v1723_v40, %v6833_v57  ;;  %5835 = vrot.lane.b32.xlu1 %v5834_v58, %s6217_s29 }
 0x83c   :  { %v5839_v5 = vpack.i.bf16 %v1739_v27, %v1738_v30  ;;  %v1729_v15 = vpop.permute.xlu0 %1728  ;;  %v1708_v27 = vld [vmem:[#allocation9 + $0x30] sm:$0xff] }
 0x83d   :  { %v1741_v3 = vmul.f32 %v6835_v18, %v1729_v15  ;;  %v1727_v10 = vpop.permute.xlu1 %1726 }
 0x83e   :  { %v1740_v9 = vmul.f32 %v1727_v10, %v6837_v63  ;;  %5840 = vrot.lane.b32.xlu0 %v5839_v5, %s6217_s29 }
 0x840   :  { %v5844_v51 = vpack.i.bf16 %v1741_v3, %v1740_v9  ;;  %v1046_v11 = vpop.permute.xlu0 %1045  ;;  %v1709_v3 = vld [vmem:[#allocation9 + $0x38] sm:$0xff]  ;;  %v1710_v9 = vld [vmem:[#allocation9 + $0x40] sm:$0xff] }
 0x841   :  { %v1062_v43 = vmul.f32 %v6640_v20, %v1046_v11  ;;  %v1044_v13 = vpop.permute.xlu1 %1043  ;;  %v1032_v11 = vld [vmem:[#allocation9] sm:$0xff] }
 0x842   :  { %v1061_v36 = vmul.f32 %v1044_v13, %v6643_v22  ;;  %5845 = vrot.lane.b32.xlu1 %v5844_v51, %s6217_s29  ;;  %v2253_v22 = vld [vmem:[%s7764_s7] sm:$0xff]  ;;  %v1711_v51 = vld [vmem:[#allocation9 + $0x48] sm:$0xff]  ;;  %v1034_v13 = vld [vmem:[#allocation9 + $0x10] sm:$0xff] }
 0x844   :  { %v5849_v57 = vpack.i.bf16 %v1062_v43, %v1061_v36  ;;  %v1050_v37 = vpop.permute.xlu0 %1049  ;;  %v1033_v43 = vld [vmem:[#allocation9 + $0x8] sm:$0xff]  ;;  %v1035_v36 = vld [vmem:[#allocation9 + $0x18] sm:$0xff] }
 0x845   :  { %v1064_v50 = vmul.f32 %v6652_v28, %v1050_v37  ;;  %v1048_v44 = vpop.permute.xlu1 %1047  ;;  %v2288_v28 = vsub.f32 1.0, %v2253_v22  ;;  %v2135_v37 = vld [vmem:[%s7762_s5] sm:$0xff] }
 0x846   :  { %v1063_v18 = vmul.f32 %v1048_v44, %v6656_v32  ;;  %5850 = vrot.lane.b32.xlu0 %v5849_v57, %s6217_s29  ;;  %v2254_v32 = vld [vmem:[%s7764_s7 + $0x8] sm:$0xff] }
 0x847   :  { %v2289_v48 = vsub.f32 1.0, %v2254_v32  ;;  %v1036_v57 = vld [vmem:[#allocation9 + $0x20] sm:$0xff] }
 0x848   :  { %v5854_v63 = vpack.i.bf16 %v1064_v50, %v1063_v18  ;;  %v1054_v45 = vpop.permute.xlu0 %1053  ;;  %v2136_v50 = vld [vmem:[%s7762_s5 + $0x8] sm:$0xff]  ;;  %v2137_v18 = vld [vmem:[%s7762_s5 + $0x10] sm:$0xff] }
 0x849   :  { %v1066_v47 = vmul.f32 %v6667_v38, %v1054_v45  ;;  %v1052_v55 = vpop.permute.xlu1 %1051  ;;  %v2255_v38 = vld [vmem:[%s7764_s7 + $0x10] sm:$0xff]  ;;  %v5636_v44 = vpack.c.bf16 %v2136_v50, %v2135_v37 }
 0x84a   :  { %v1065_v20 = vmul.f32 %v1052_v55, %v6671_v42  ;;  %5855 = vrot.lane.b32.xlu1 %v5854_v63, %s6217_s29  ;;  %v2290_v42 = vsub.f32 1.0, %v2255_v38  ;;  %v2138_v63 = vld [vmem:[%s7762_s5 + $0x18] sm:$0xff]  ;;  %v2140_v55 = vld [vmem:[%s7762_s5 + $0x28] sm:$0xff] }
 0x84b   :  { %5637 = vmatpush3.bf16.msra.mxu0 %v5636_v44  ;;  %v5639_v45 = vpack.c.bf16 %v2138_v63, %v2137_v18 }
 0x84c   :  { %v5859_v56 = vpack.i.bf16 %v1066_v47, %v1065_v20  ;;  %5638 = vmatprep.subr.bf16.mxu0 %v6211_v0  ;;  %v2139_v47 = vld [vmem:[%s7762_s5 + $0x20] sm:$0xff] }
 0x84d   :  { %v5642_v20 = vpack.c.bf16 %v2140_v55, %v2139_v47 }
 0x84e   :  { %2260 = vperm.xlu1 %5864, %v2253_v22   ;;  %5860 = vrot.lane.b32.xlu0 %v5859_v56, %s6217_s29  ;;  %v2141_v22 = vld [vmem:[%s7762_s5 + $0x30] sm:$0xff]  ;;  %v2142_v56 = vld [vmem:[%s7762_s5 + $0x38] sm:$0xff] }
 0x84f   :  { %5640 = vmatpush3.bf16.msra.mxu0 %v5639_v45 }
 0x850   :  { %5641 = vmatprep.subr.bf16.mxu0 %v6211_v0 }
 0x852   :  { %2265 = vperm.xlu1 %5864, %v2254_v32   ;;  %2295 = vperm.xlu0 %5865, %v2288_v28   ;;  %v5645_v28 = vpack.c.bf16 %v2142_v56, %v2141_v22 }
 0x853   :  { %5643 = vmatpush3.bf16.msra.mxu0 %v5642_v20 }
 0x854   :  { %5644 = vmatprep.subr.bf16.mxu0 %v6211_v0 }
 0x856   :  { %2300 = vperm.xlu1 %5864, %v2289_v48   ;;  %2270 = vperm.xlu0 %5865, %v2255_v38  }
 0x857   :  { %5646 = vmatpush3.bf16.msra.mxu0 %v5645_v28 }
 0x858   :  { %5647 = vmatprep.subr.bf16.mxu0 %v6211_v0 }
 0x85a   :  { %2305 = vperm.xlu1 %5864, %v2290_v42   ;;  %2275 = vperm.xlu0 %5865, %v2256_v14  }
 0x85e   :  { %2310 = vperm.xlu1 %5864, %v2291_v49   ;;  %2280 = vperm.xlu0 %5865, %v2257_v12  }
 0x862   :  { %2315 = vperm.xlu1 %5864, %v2292_v53  }
 0x8ac   :  { %v5836_v62 = vpop.permute.xlu1 %5835 }
 0x8ad   :  { %v5838_v16 = vunpack.i.h.bf16 %v5836_v62  ;;  %v5837_v17 = vunpack.i.l.bf16 %v5836_v62 }
 0x8af   :  { %v5618_v4 = vpack.c.bf16 %v5838_v16, %v5837_v17 }
 0x8b0   :  { %v5841_v6 = vpop.permute.xlu0 %5840 }
 0x8b1   :  { %v5843_v25 = vunpack.i.h.bf16 %v5841_v6  ;;  %v5842_v19 = vunpack.i.l.bf16 %v5841_v6  ;;  %5619 = vmatpush3.bf16.msra.mxu1 %v5618_v4 }
 0x8b2   :  { %5620 = vmatprep.subr.bf16.mxu1 %v6211_v0 }
 0x8b3   :  { %v5621_v21 = vpack.c.bf16 %v5843_v25, %v5842_v19 }
 0x8b4   :  { %v5846_v33 = vpop.permute.xlu1 %5845 }
 0x8b5   :  { %v5848_v2 = vunpack.i.h.bf16 %v5846_v33  ;;  %v5847_v23 = vunpack.i.l.bf16 %v5846_v33  ;;  %5622 = vmatpush3.bf16.msra.mxu1 %v5621_v21 }
 0x8b6   :  { %5623 = vmatprep.subr.bf16.mxu1 %v6211_v0 }
 0x8b7   :  { %v5624_v24 = vpack.c.bf16 %v5848_v2, %v5847_v23 }
 0x8b8   :  { %v5851_v7 = vpop.permute.xlu0 %5850 }
 0x8b9   :  { %v5853_v59 = vunpack.i.h.bf16 %v5851_v7  ;;  %v5852_v26 = vunpack.i.l.bf16 %v5851_v7  ;;  %5625 = vmatpush3.bf16.msra.mxu1 %v5624_v24 }
 0x8ba   :  { %5626 = vmatprep.subr.bf16.mxu1 %v6211_v0 }
 0x8bb   :  { %v5627_v61 = vpack.c.bf16 %v5853_v59, %v5852_v26 }
 0x8bc   :  { %v5856_v34 = vpop.permute.xlu1 %5855  ;;  %5104 = vmatmul.mubr.msk.f32.vlgmr.msra.gmra.mrb[40].mxu1 %vm906_vm5, %v1707_v31 }
 0x8bd   :  { %v5858_v58 = vunpack.i.h.bf16 %v5856_v34  ;;  %v5857_v29 = vunpack.i.l.bf16 %v5856_v34  ;;  %5628 = vmatpush3.bf16.msra.mxu1 %v5627_v61  ;;  %5106 = vmatprep.mubr.msk.f32.mxu1 %vm6212_vm0, %v6213_v1 }
 0x8be   :  { %5629 = vmatprep.subr.bf16.mxu1 %v6211_v0 }
 0x8bf   :  { %v5630_v40 = vpack.c.bf16 %v5858_v58, %v5857_v29 }
 0x8c0   :  { %v5861_v30 = vpop.permute.xlu0 %5860  ;;  %5107 = vmatmul.mubr.msk.f32.gmra.mrb[42].mxu1 %vm906_vm5, %v1708_v27 }
 0x8c1   :  { %v5863_v5 = vunpack.i.h.bf16 %v5861_v30  ;;  %v5862_v15 = vunpack.i.l.bf16 %v5861_v30  ;;  %5631 = vmatpush3.bf16.msra.mxu1 %v5630_v40  ;;  %5109 = vmatprep.mubr.msk.f32.mxu1 %vm6212_vm0, %v6213_v1 }
 0x8c2   :  { %5632 = vmatprep.subr.bf16.mxu1 %v6211_v0 }
 0x8c3   :  { %v5633_v10 = vpack.c.bf16 %v5863_v5, %v5862_v15 }
 0x8c4   :  { %5110 = vmatmul.mubr.msk.f32.gmra.mrb[44].mxu1 %vm906_vm5, %v1709_v3 }
 0x8c5   :  { %5634 = vmatpush3.bf16.msra.mxu1 %v5633_v10  ;;  %5112 = vmatprep.mubr.msk.f32.mxu1 %vm6212_vm0, %v6213_v1 }
 0x8c6   :  { %5659 = vmatprep.subr.bf16.mxu1 %v6211_v0 }
 0x8c8   :  { %5113 = vmatmul.mubr.msk.f32.gmra.mrb[46].mxu1 %vm906_vm5, %v1710_v9 }
 0x8c9   :  { %5115 = vmatprep.mubr.msk.f32.mxu1 %vm6212_vm0, %v6213_v1 }
 0x8cc   :  { %5116 = vmatmul.mubr.msk.f32.gmra.mrb[48].mxu1 %vm906_vm5, %v1711_v51 }
 0x8cd   :  { %5130 = vmatprep.mubr.msk.f32.mxu1 %vm6212_vm0, %v6213_v1 }
 0x8d0   :  { %5131 = vmatmul.mubr.msk.f32.vlgmr.msra.gmra.mrb[40].mxu1 %vm906_vm5, %v1032_v11 }
 0x8d1   :  { %5133 = vmatprep.mubr.msk.f32.mxu1 %vm6212_vm0, %v6213_v1 }
 0x8d4   :  { %5134 = vmatmul.mubr.msk.f32.gmra.mrb[42].mxu1 %vm906_vm5, %v1033_v43 }
 0x8d5   :  { %5136 = vmatprep.mubr.msk.f32.mxu1 %vm6212_vm0, %v6213_v1 }
 0x8d8   :  { %5137 = vmatmul.mubr.msk.f32.gmra.mrb[44].mxu1 %vm906_vm5, %v1034_v13 }
 0x8d9   :  { %5139 = vmatprep.mubr.msk.f32.mxu1 %vm6212_vm0, %v6213_v1 }
 0x8dc   :  { %5140 = vmatmul.mubr.msk.f32.gmra.mrb[46].mxu1 %vm906_vm5, %v1035_v36 }
 0x8dd   :  { %5142 = vmatprep.mubr.msk.f32.mxu1 %vm6212_vm0, %v6213_v1 }
 0x8e0   :  { %5143 = vmatmul.mubr.msk.f32.gmra.mrb[48].mxu1 %vm906_vm5, %v1036_v57 }
 0x8e1   :  { %5223 = vmatprep.mubr.msk.f32.mxu1 %vm6212_vm0, %v6213_v1 }
 0x9a3   :  { %v7022_v32 = vpop.f32.mrb[40].mxu1 }
 0x9a4   :  { %v7025_v48 = vmul.f32 0.70710677, %v7022_v32  ;;  %v5132_v38 = vpop.f32.mrb[41].mxu1 }
 0x9a6   :  { %v2020_v42 = vand.u32 2147483647, %v7025_v48  ;;  %vm2010_vm6 = vcmp.lt.f32.partialorder %v7025_v48, 0.0 }
 0x9a7   :  { %v7028_v14 = vpop.f32.mrb[42].mxu1 }
 0x9a8   :  { %v2025_v49 = vmul.f32 0.3275911, %v2020_v42  ;;  %v7031_v12 = vmul.f32 0.70710677, %v7028_v14  ;;  %v5135_v53 = vpop.f32.mrb[43].mxu1  ;;  %v2090_v7 = vsub.f32 0.0, %v2020_v42 }
 0x9aa   :  { %v2030_v62 = vadd.f32 1.0, %v2025_v49  ;;  %v2021_v16 = vand.u32 2147483647, %v7031_v12  ;;  %v2095_v27 = vmul.f32 %v2090_v7, %v2020_v42  ;;  %vm2011_vm7 = vcmp.lt.f32.partialorder %v7031_v12, 0.0 }
 0x9ab   :  { %v7034_v17 = vpop.f32.mrb[44].mxu1 }
 0x9ac   :  { %5954 = vrcp.f32 %v2030_v62  ;;  %v2026_v4 = vmul.f32 0.3275911, %v2021_v16  ;;  %v5138_v6 = vpop.f32.mrb[45].mxu1  ;;  %v7037_v25 = vmul.f32 0.70710677, %v7034_v17  ;;  %v2091_v40 = vsub.f32 0.0, %v2021_v16 }
 0x9ad   :  { %v2100_v51 = vmul.f32 1.442695, %v2095_v27 }
 0x9ae   :  { %v2031_v19 = vadd.f32 1.0, %v2026_v4  ;;  %v2022_v21 = vand.u32 2147483647, %v7037_v25  ;;  %v2096_v11 = vmul.f32 %v2091_v40, %v2021_v16  ;;  %vm2012_vm8 = vcmp.lt.f32.partialorder %v7037_v25, 0.0 }
 0x9af   :  { %v7040_v33 = vpop.f32.mrb[46].mxu1 }
 0x9b0   :  { %5956 = vrcp.f32 %v2031_v19  ;;  %v5141_v2 = vpop.f32.mrb[47].mxu1  ;;  %v2027_v23 = vmul.f32 0.3275911, %v2022_v21  ;;  %v7043_v24 = vmul.f32 0.70710677, %v7040_v33  ;;  %v2092_v43 = vsub.f32 0.0, %v2022_v21 }
 0x9b1   :  { %v2102_v44 = vmul.f32 1.442695, %v2096_v11 }
 0x9b2   :  { %v2032_v59 = vadd.f32 1.0, %v2027_v23  ;;  %v2023_v26 = vand.u32 2147483647, %v7043_v24  ;;  %v2097_v18 = vmul.f32 %v2092_v43, %v2022_v21  ;;  %vm2013_vm9 = vcmp.lt.f32.partialorder %v7043_v24, 0.0 }
 0x9b3   :  { %v7046_v31 = vpop.f32.mrb[48].mxu1 }
 0x9b4   :  { %v7049_v61 = vmul.f32 0.70710677, %v7046_v31  ;;  %v5144_v34 = vpop.f32.mrb[49].mxu1  ;;  %5958 = vrcp.f32 %v2032_v59  ;;  %v2028_v58 = vmul.f32 0.3275911, %v2023_v26  ;;  %v2093_v55 = vsub.f32 0.0, %v2023_v26 }
 0x9b5   :  { %v2104_v38 = vmul.f32 1.442695, %v2097_v18 }
 0x9b6   :  { %v5955_v29 = vpop.eup %5954  ;;  %v2024_v30 = vand.u32 2147483647, %v7049_v61  ;;  %v2033_v15 = vadd.f32 1.0, %v2028_v58  ;;  %v2098_v16 = vmul.f32 %v2093_v55, %v2023_v26  ;;  %v4374_v55 = vld [vmem:[%s7760_s3 + $0x40] sm:$0xff]  ;;  %vm2014_vm10 = vcmp.lt.f32.partialorder %v7049_v61, 0.0 }
 0x9b7   :  { %v2045_v5 = vmul.f32 1.0614054, %v5955_v29  ;;  %v2004_v61 = vmul.f32 0.5, %v7046_v31  ;;  %v4379_v31 = vld [vmem:[%s7760_s3 + $0x68] sm:$0xff] }
 0x9b8   :  { %v2029_v3 = vmul.f32 0.3275911, %v2024_v30  ;;  %5960 = vrcp.f32 %v2033_v15  ;;  %v2094_v42 = vsub.f32 0.0, %v2024_v30  ;;  %v2106_v27 = vmul.f32 1.442695, %v2098_v16 }
 0x9b9   :  { %v2050_v10 = vadd.f32 -1.4531521, %v2045_v5 }
 0x9ba   :  { %v5957_v9 = vpop.eup %5956  ;;  %v2034_v13 = vadd.f32 1.0, %v2029_v3  ;;  %v2099_v59 = vmul.f32 %v2094_v42, %v2024_v30 }
 0x9bb   :  { %v2055_v36 = vmul.f32 %v5955_v29, %v2050_v10  ;;  %v2046_v57 = vmul.f32 1.0614054, %v5957_v9 }
 0x9bc   :  { %5962 = vrcp.f32 %v2034_v13  ;;  %v2108_v13 = vmul.f32 1.442695, %v2099_v59 }
 0x9bd   :  { %v2060_v37 = vadd.f32 1.4214138, %v2055_v36  ;;  %v2051_v50 = vadd.f32 -1.4531521, %v2046_v57  ;;  %5964 = vpow2.f32 %v2100_v51 }
 0x9be   :  { %v5959_v63 = vpop.eup %5958  ;;  %5966 = vpow2.f32 %v2102_v44 }
 0x9bf   :  { %v2065_v45 = vmul.f32 %v5955_v29, %v2060_v37  ;;  %v2056_v47 = vmul.f32 %v5957_v9, %v2051_v50  ;;  %v2047_v20 = vmul.f32 1.0614054, %v5959_v63  ;;  %5968 = vpow2.f32 %v2104_v38 }
 0x9c0   :  { %5970 = vpow2.f32 %v2106_v27  ;;  %v6218_v37 = vmov 1.0  }
 0x9c1   :  { %v2070_v22 = vadd.f32 -0.28449672, %v2065_v45  ;;  %v2061_v56 = vadd.f32 1.4214138, %v2056_v47  ;;  %v2052_v28 = vadd.f32 -1.4531521, %v2047_v20  ;;  %5972 = vpow2.f32 %v2108_v13 }
 0x9c2   :  { %v7052_v49 = vpop.eup %5960  ;;  %v2015_v50 = vsel %vm2010_vm6, -1.0, %v6218_v37  ;;  %v2017_v25 = vsel %vm2012_vm8, -1.0, %v6218_v37 }
 0x9c3   :  { %v2075_v53 = vmul.f32 %v5955_v29, %v2070_v22  ;;  %v2066_v62 = vmul.f32 %v5957_v9, %v2061_v56  ;;  %v2057_v4 = vmul.f32 %v5959_v63, %v2052_v28  ;;  %v2048_v6 = vmul.f32 1.0614054, %v7052_v49 }
 0x9c4   :  { %v2000_v56 = vmul.f32 0.5, %v7022_v32  ;;  %v4377_v32 = vld [vmem:[%s7760_s3 + $0x58] sm:$0xff] }
 0x9c5   :  { %v2080_v19 = vadd.f32 0.2548296, %v2075_v53  ;;  %v2071_v21 = vadd.f32 -0.28449672, %v2066_v62  ;;  %v2062_v23 = vadd.f32 1.4214138, %v2057_v4 }
 0x9c6   :  { %v7055_v2 = vpop.eup %5962  ;;  %v2053_v7 = vadd.f32 -1.4531521, %v2048_v6  ;;  %v2016_v53 = vsel %vm2011_vm7, -1.0, %v6218_v37 }
 0x9c7   :  { %v2085_v34 = vmul.f32 %v5955_v29, %v2080_v19  ;;  %v2076_v58 = vmul.f32 %v5957_v9, %v2071_v21  ;;  %v2049_v40 = vmul.f32 1.0614054, %v7055_v2  ;;  %v5965_v5 = vpop.eup %5964  ;;  %v2067_v15 = vmul.f32 %v5959_v63, %v2062_v23  ;;  %v4376_v23 = vld [vmem:[%s7760_s3 + $0x50] sm:$0xff] }
 0x9c8   :  { %v2058_v26 = vmul.f32 %v7052_v49, %v2053_v7  ;;  %v5967_v30 = vpop.eup %5966 }
 0x9c9   :  { %v2110_v3 = vmul.f32 %v5965_v5, %v2085_v34  ;;  %v2081_v10 = vadd.f32 0.2548296, %v2076_v58  ;;  %v2054_v51 = vadd.f32 -1.4531521, %v2049_v40  ;;  %v2072_v11 = vadd.f32 -0.28449672, %v2067_v15  ;;  %v5969_v12 = vpop.eup %5968 }
 0x9ca   :  { %v2063_v43 = vadd.f32 1.4214138, %v2058_v26  ;;  %v5651_v5 = vpack.c.bf16 %v4377_v32, %v4376_v23  ;;  %v5971_v15 = vpop.eup %5970  ;;  %v2296_v23 = vpop.permute.xlu0 %2295 }
 0x9cb   :  { %v2115_v36 = vsub.f32 1.0, %v2110_v3  ;;  %v2086_v57 = vmul.f32 %v5957_v9, %v2081_v10  ;;  %v2059_v29 = vmul.f32 %v7055_v2, %v2054_v51  ;;  %v2077_v44 = vmul.f32 %v5959_v63, %v2072_v11  ;;  %v4375_v9 = vld [vmem:[%s7760_s3 + $0x48] sm:$0xff] }
 0x9cc   :  { %v2068_v18 = vmul.f32 %v7052_v49, %v2063_v43  ;;  %v5648_v4 = vpack.c.bf16 %v4375_v9, %v4374_v55  ;;  %v2002_v11 = vmul.f32 0.5, %v7034_v17  ;;  %v2019_v17 = vsel %vm2014_vm10, -1.0, %v6218_v37  ;;  %v4380_v55 = vld [vmem:[%s7760_s3 + $0x70] sm:$0xff]  ;;  %v4381_v9 = vld [vmem:[%s7760_s3 + $0x78] sm:$0xff] }
 0x9cd   :  { %v2120_v45 = vmul.f32 %v2115_v36, %v2015_v50  ;;  %v2111_v48 = vmul.f32 %v5967_v30, %v2086_v57  ;;  %v2064_v47 = vadd.f32 1.4214138, %v2059_v29  ;;  %v2082_v20 = vadd.f32 0.2548296, %v2077_v44 }
 0x9ce   :  { %v2073_v22 = vadd.f32 -0.28449672, %v2068_v18  ;;  %v2018_v36 = vsel %vm2013_vm9, -1.0, %v6218_v37  ;;  %v2003_v30 = vmul.f32 0.5, %v7040_v33  ;;  %v4378_v33 = vld [vmem:[%s7760_s3 + $0x60] sm:$0xff] }
 0x9cf   :  { %v2125_v28 = vadd.f32 1.0, %v2120_v45  ;;  %v2116_v38 = vsub.f32 1.0, %v2111_v48  ;;  %v2069_v42 = vmul.f32 %v7055_v2, %v2064_v47  ;;  %v2087_v62 = vmul.f32 %v5959_v63, %v2082_v20 }
 0x9d0   :  { %v2078_v16 = vmul.f32 %v7052_v49, %v2073_v22  ;;  %v2001_v63 = vmul.f32 0.5, %v7028_v14  ;;  %v5654_v47 = vpack.c.bf16 %v4379_v31, %v4378_v33  ;;  %v5657_v20 = vpack.c.bf16 %v4381_v9, %v4380_v55  ;;  %v4387_v22 = vld [vmem:[%s7765_s8 + $0x80] sm:$0xff] }
 0x9d1   :  { %v2130_v6 = vmul.f32 %v2125_v28, %v2000_v56  ;;  %v2121_v19 = vmul.f32 %v2116_v38, %v2016_v53  ;;  %v2074_v21 = vadd.f32 -0.28449672, %v2069_v42  ;;  %v2112_v7 = vmul.f32 %v5969_v12, %v2087_v62  ;;  %v4388_v56 = vld [vmem:[%s7765_s8 + $0x88] sm:$0xff]  ;;  %v4389_v28 = vld [vmem:[%s7765_s8 + $0x90] sm:$0xff]  ;;  %v4390_v42 = vld [vmem:[%s7765_s8 + $0x98] sm:$0xff] }
 0x9d2   :  { %v2083_v59 = vadd.f32 0.2548296, %v2078_v16  ;;  %v5660_v38 = vpack.c.bf16 %v4388_v56, %v4387_v22  ;;  %v5663_v12 = vpack.c.bf16 %v4390_v42, %v4389_v28  ;;  %v4391_v53 = vld [vmem:[%s7765_s8 + $0xa0] sm:$0xff]  ;;  %v4392_v62 = vld [vmem:[%s7765_s8 + $0xa8] sm:$0xff]  ;;  %v7780_v55 = vmax.f32 %v6509_v54, 0.0  ;;  %v4393_v54 = vld [vmem:[%s7765_s8 + $0xb0] sm:$0xff] }
 0x9d3   :  { %v2126_v34 = vadd.f32 1.0, %v2121_v19  ;;  %v2079_v58 = vmul.f32 %v7055_v2, %v2074_v21  ;;  %5162 = vmatmul.mubr.msk.f32.vlgmr.msra.gmra.mrb[48].mxu0 %vm259_vm2, %v2130_v6  ;;  %v2117_v27 = vsub.f32 1.0, %v2112_v7  ;;  %v5666_v16 = vpack.c.bf16 %v4392_v62, %v4391_v53  ;;  %v2143_v19 = vld [vmem:[#allocation6] sm:$0xff]  ;;  %v6042_v22 = vld [vmem:[%s7768_s11] sm:$0xff] }
 0x9d4   :  { %v2088_v40 = vmul.f32 %v7052_v49, %v2083_v59  ;;  %5164 = vmatprep.mubr.msk.f32.mxu0 %vm6212_vm0, %v6213_v1  ;;  %5649 = vmatpush3.bf16.msra.mxu0 %v5648_v4  ;;  %v5973_v49 = vpop.eup %5972  ;;  %v2261_v4 = vpop.permute.xlu1 %2260  ;;  %v4394_v56 = vld [vmem:[%s7765_s8 + $0xb8] sm:$0xff] }
 0x9d5   :  { %v2131_v26 = vmul.f32 %v2126_v34, %v2001_v63  ;;  %v2084_v3 = vadd.f32 0.2548296, %v2079_v58  ;;  %5650 = vmatprep.subr.bf16.mxu0 %v6211_v0  ;;  %v2122_v14 = vmul.f32 %v2117_v27, %v2017_v25  ;;  %5661 = vmatpush3.bf16.msra.mxu1 %v5660_v38  ;;  %v2144_v63 = vld [vmem:[#allocation6 + $0x8] sm:$0xff]  ;;  %v2318_v34 = vmul.f32 %v2296_v23, %v241_v39  ;;  %v2338_v38 = vld [vmem:[#allocation4 + $0x28] sm:$0xff]  ;;  %v2339_v62 = vld [vmem:[#allocation4 + $0x30] sm:$0xff] }
 0x9d6   :  { %v2113_v10 = vmul.f32 %v5971_v15, %v2088_v40  ;;  %5662 = vmatprep.subr.bf16.mxu1 %v6211_v0  ;;  %v7777_v25 = vmax.f32 %v6488_v41, 0.0  ;;  %v2146_v41 = vld [vmem:[#allocation6 + $0x18] sm:$0xff]  ;;  %v5669_v28 = vpack.c.bf16 %v4394_v56, %v4393_v54  ;;  %v6052_v56 = vld [vmem:[%s7768_s11 + $0x18] sm:$0xff] }
 0x9d7   :  { %v2089_v51 = vmul.f32 %v7055_v2, %v2084_v3  ;;  %5165 = vmatmul.mubr.msk.f32.gmra.mrb[50].mxu0 %vm259_vm2, %v2131_v26  ;;  %v2127_v43 = vadd.f32 1.0, %v2122_v14  ;;  %v2271_v14 = vpop.permute.xlu0 %2270  ;;  %v6051_v54 = vld [vmem:[%s7768_s11 + $0x10] sm:$0xff] }
 0x9d8   :  { %v2118_v13 = vsub.f32 1.0, %v2113_v10  ;;  %5167 = vmatprep.mubr.msk.f32.mxu0 %vm6212_vm0, %v6213_v1  ;;  %5652 = vmatpush3.bf16.msra.mxu0 %v5651_v5  ;;  %v2266_v6 = vpop.permute.xlu1 %2265 }
 0x9d9   :  { %v2114_v57 = vmul.f32 %v5973_v49, %v2089_v51  ;;  %5653 = vmatprep.subr.bf16.mxu0 %v6211_v0  ;;  %v2132_v24 = vmul.f32 %v2127_v43, %v2002_v11  ;;  %5664 = vmatpush3.bf16.msra.mxu1 %v5663_v12  ;;  %v2145_v51 = vld [vmem:[#allocation6 + $0x10] sm:$0xff] }
 0x9da   :  { %v2123_v2 = vmul.f32 %v2118_v13, %v2018_v36  ;;  %5665 = vmatprep.subr.bf16.mxu1 %v6211_v0  ;;  %v7778_v13 = vmax.f32 %v6496_v46, 0.0 }
 0x9db   :  { %v2119_v29 = vsub.f32 1.0, %v2114_v57  ;;  %5168 = vmatmul.mubr.msk.f32.gmra.mrb[52].mxu0 %vm259_vm2, %v2132_v24  ;;  %v2276_v24 = vpop.permute.xlu0 %2275 }
 0x9dc   :  { %v2128_v50 = vadd.f32 1.0, %v2123_v2  ;;  %5170 = vmatprep.mubr.msk.f32.mxu0 %vm6212_vm0, %v6213_v1  ;;  %5655 = vmatpush3.bf16.msra.mxu0 %v5654_v47  ;;  %v2301_v21 = vpop.permute.xlu1 %2300 }
 0x9dd   :  { %v2124_v44 = vmul.f32 %v2119_v29, %v2019_v17  ;;  %5656 = vmatprep.subr.bf16.mxu0 %v6211_v0  ;;  %5667 = vmatpush3.bf16.msra.mxu1 %v5666_v16  ;;  %v2319_v3 = vmul.f32 %v2301_v21, %v7777_v25  ;;  %v2147_v17 = vld [vmem:[#allocation6 + $0x20] sm:$0xff] }
 0x9de   :  { %v2133_v18 = vmul.f32 %v2128_v50, %v2003_v30  ;;  %5668 = vmatprep.subr.bf16.mxu1 %v6211_v0 }
 0x9df   :  { %v2129_v45 = vadd.f32 1.0, %v2124_v44  ;;  %v7779_v44 = vmax.f32 %v6504_v52, 0.0  ;;  %v2281_v47 = vpop.permute.xlu0 %2280 }
 0x9e0   :  { %5171 = vmatmul.mubr.msk.f32.gmra.mrb[54].mxu0 %vm259_vm2, %v2133_v18  ;;  %v2306_v40 = vpop.permute.xlu1 %2305 }
 0x9e1   :  { %v2134_v48 = vmul.f32 %v2129_v45, %v2004_v61  ;;  %5173 = vmatprep.mubr.msk.f32.mxu0 %vm6212_vm0, %v6213_v1  ;;  %5658 = vmatpush3.bf16.msra.mxu0 %v5657_v20  ;;  %v2320_v36 = vmul.f32 %v2306_v40, %v7778_v13 }
 0x9e2   :  { %5670 = vmatpush3.bf16.msra.mxu1 %v5669_v28  ;;  %v6053_v28 = vld [vmem:[%s7768_s11 + $0x20] sm:$0xff] }
 0x9e4   :  { %5174 = vmatmul.mubr.msk.f32.gmra.mrb[56].mxu0 %vm259_vm2, %v2134_v48  ;;  %v2311_v43 = vpop.permute.xlu1 %2310 }
 0x9e5   :  { %5192 = vmatprep.mubr.msk.f32.mxu0 %vm6212_vm0, %v6213_v1  ;;  %v2321_v18 = vmul.f32 %v2311_v43, %v7779_v44 }
 0x9e8   :  { %v2316_v46 = vpop.permute.xlu1 %2315 }
 0x9e9   :  { %v2322_v9 = vmul.f32 %v2316_v46, %v7780_v55 }
 0xaa6   :  { %v2229_v32 = vpop.f32.mrb[48].mxu0 }
 0xaa7   :  { %v2230_v7 = vadd.f32 %v2229_v32, %v2143_v19  ;;  %v5163_v59 = vpop.f32.mrb[49].mxu0  ;;  %v2340_v19 = vld [vmem:[#allocation4 + $0x38] sm:$0xff] }
 0xaa8   :  { %v2341_v59 = vld [vmem:[#allocation4 + $0x40] sm:$0xff] }
 0xaa9   :  { %v2283_v58 = vmul.f32 %v2261_v4, %v2230_v7 }
 0xaaa   :  { %v2234_v27 = vpop.f32.mrb[50].mxu0 }
 0xaab   :  { %v7146_v5 = vadd.f32 %v2318_v34, %v2283_v58  ;;  %v2235_v15 = vadd.f32 %v2234_v27, %v2144_v63  ;;  %v5166_v26 = vpop.f32.mrb[51].mxu0  ;;  %v2342_v27 = vld [vmem:[#allocation4 + $0x48] sm:$0xff] }
 0xaad   :  { %v2284_v10 = vmul.f32 %v2266_v6, %v2235_v15  ;;  %5193 = vmatmul.mubr.msk.f32.vlgmr.msra.gmra.mrb[58].mxu0 %vm259_vm2, %v7146_v5 }
 0xaae   :  { %5195 = vmatprep.mubr.msk.f32.mxu0 %vm6212_vm0, %v6213_v1  ;;  %v2239_v39 = vpop.f32.mrb[52].mxu0 }
 0xaaf   :  { %v7154_v35 = vadd.f32 %v2319_v3, %v2284_v10  ;;  %v2240_v49 = vadd.f32 %v2239_v39, %v2145_v51  ;;  %v5169_v11 = vpop.f32.mrb[53].mxu0  ;;  %v6043_v3 = vld [vmem:[%s7769_s12] sm:$0xff] }
 0xab1   :  { %5196 = vmatmul.mubr.msk.f32.gmra.mrb[60].mxu0 %vm259_vm2, %v7154_v35  ;;  %v2285_v57 = vmul.f32 %v2271_v14, %v2240_v49 }
 0xab2   :  { %5198 = vmatprep.mubr.msk.f32.mxu0 %vm6212_vm0, %v6213_v1 }
 0xab3   :  { %v2244_v2 = vpop.f32.mrb[54].mxu0  ;;  %v7162_v29 = vadd.f32 %v2320_v36, %v2285_v57  ;;  %v6044_v36 = vld [vmem:[%s7769_s12 + $0x8] sm:$0xff]  ;;  %v6045_v57 = vld [vmem:[%s7769_s12 + $0x10] sm:$0xff] }
 0xab4   :  { %v2245_v30 = vadd.f32 %v2244_v2, %v2146_v41  ;;  %v5172_v50 = vpop.f32.mrb[55].mxu0  ;;  %v6047_v2 = vld [vmem:[%s7769_s12 + $0x20] sm:$0xff] }
 0xab5   :  { %5199 = vmatmul.mubr.msk.f32.gmra.mrb[62].mxu0 %vm259_vm2, %v7162_v29  ;;  %v6049_v50 = vld [vmem:[%s7771_s14] sm:$0xff] }
 0xab6   :  { %v2286_v61 = vmul.f32 %v2276_v24, %v2245_v30  ;;  %5201 = vmatprep.mubr.msk.f32.mxu0 %vm6212_vm0, %v6213_v1  ;;  %v6046_v24 = vld [vmem:[%s7769_s12 + $0x18] sm:$0xff]  ;;  %v6048_v30 = vld [vmem:[%s7769_s12 + $0x28] sm:$0xff] }
 0xab7   :  { %v2249_v45 = vpop.f32.mrb[56].mxu0 }
 0xab8   :  { %v7170_v48 = vadd.f32 %v2321_v18, %v2286_v61  ;;  %v2250_v33 = vadd.f32 %v2249_v45, %v2147_v17  ;;  %v5175_v31 = vpop.f32.mrb[57].mxu0 }
 0xaba   :  { %v2287_v20 = vmul.f32 %v2281_v47, %v2250_v33  ;;  %5202 = vmatmul.mubr.msk.f32.gmra.mrb[64].mxu0 %vm259_vm2, %v7170_v48 }
 0xabb   :  { %5204 = vmatprep.mubr.msk.f32.mxu0 %vm6212_vm0, %v6213_v1 }
 0xabc   :  { %v7178_v52 = vadd.f32 %v2322_v9, %v2287_v20 }
 0xabe   :  { %5205 = vmatmul.mubr.msk.f32.gmra.mrb[66].mxu0 %vm259_vm2, %v7178_v52 }
 0xabf   :  { %5248 = vmatprep.mubr.msk.f32.mxu0 %vm484_vm3, %v6042_v22  ;;  %v6050_v22 = vld [vmem:[%s7768_s11 + $0x8] sm:$0xff] }
 0xb80   :  { %v2424_v42 = vpop.f32.mrb[58].mxu0 }
 0xb81   :  { %v7192_v12 = vadd.f32 %v2424_v42, %v2338_v38  ;;  %v5194_v53 = vpop.f32.mrb[59].mxu0  ;;  %v6054_v38 = vld [vmem:[%s7768_s11 + $0x28] sm:$0xff] }
 0xb83   :  { %5224 = vmatmul.mubr.msk.f32.vlgmr.msra.gmra.mrb[50].mxu1 %vm259_vm2, %v7192_v12 }
 0xb84   :  { %v2429_v16 = vpop.f32.mrb[60].mxu0  ;;  %5226 = vmatprep.mubr.msk.f32.mxu1 %vm6212_vm0, %v6213_v1 }
 0xb85   :  { %v7198_v4 = vadd.f32 %v2429_v16, %v2339_v62  ;;  %v5197_v6 = vpop.f32.mrb[61].mxu0 }
 0xb87   :  { %5227 = vmatmul.mubr.msk.f32.gmra.mrb[52].mxu1 %vm259_vm2, %v7198_v4  ;;  %v5866_v21 = vpack.i.bf16 %v7198_v4, %v7192_v12 }
 0xb88   :  { %5229 = vmatprep.mubr.msk.f32.mxu1 %vm6212_vm0, %v6213_v1  ;;  %v2434_v23 = vpop.f32.mrb[62].mxu0 }
 0xb89   :  { %5867 = vrot.lane.b32.xlu0 %v5866_v21, %s6214_s26  ;;  %v7207_v32 = vadd.f32 %v2434_v23, %v2340_v19  ;;  %v5200_v7 = vpop.f32.mrb[63].mxu0  ;;  %v4426_v21 = vld [vmem:[%s7765_s8 + $0xc0] sm:$0xff]  ;;  %v4427_v23 = vld [vmem:[%s7765_s8 + $0xc8] sm:$0xff] }
 0xb8b   :  { %5230 = vmatmul.mubr.msk.f32.gmra.mrb[54].mxu1 %vm259_vm2, %v7207_v32 }
 0xb8c   :  { %5232 = vmatprep.mubr.msk.f32.mxu1 %vm6212_vm0, %v6213_v1 }
 0xb8d   :  { %v2439_v63 = vpop.f32.mrb[64].mxu0 }
 0xb8e   :  { %v7213_v34 = vadd.f32 %v2439_v63, %v2341_v59  ;;  %v5203_v58 = vpop.f32.mrb[65].mxu0 }
 0xb90   :  { %5233 = vmatmul.mubr.msk.f32.gmra.mrb[56].mxu1 %vm259_vm2, %v7213_v34  ;;  %v5871_v40 = vpack.i.bf16 %v7213_v34, %v7207_v32 }
 0xb91   :  { %v2444_v15 = vpop.f32.mrb[66].mxu0  ;;  %5235 = vmatprep.mubr.msk.f32.mxu1 %vm6212_vm0, %v6213_v1 }
 0xb92   :  { %v7221_v26 = vadd.f32 %v2444_v15, %v2342_v27  ;;  %5872 = vrot.lane.b32.xlu1 %v5871_v40, %s6214_s26  ;;  %v5206_v25 = vpop.f32.mrb[67].mxu0  ;;  %v5708_v27 = vpack.c.bf16 %v4427_v23, %v4426_v21  ;;  %v4428_v40 = vld [vmem:[%s7765_s8 + $0xd0] sm:$0xff]  ;;  %v4429_v15 = vld [vmem:[%s7765_s8 + $0xd8] sm:$0xff] }
 0xb94   :  { %2665 = vrot.lane.b32.xlu0 %v7221_v26, %s6214_s26  ;;  %5236 = vmatmul.mubr.msk.f32.gmra.mrb[58].mxu1 %vm259_vm2, %v7221_v26 }
 0xb95   :  { %5267 = vmatprep.mubr.msk.f32.mxu1 %vm484_vm3, %v6043_v3 }
 0xbfb   :  { %v5868_v14 = vpop.permute.xlu0 %5867 }
 0xbfc   :  { %v5870_v10 = vunpack.i.h.bf16 %v5868_v14  ;;  %v5869_v51 = vunpack.i.l.bf16 %v5868_v14 }
 0xbfe   :  { %v7232_v39 = vpack.c.bf16 %v5870_v10, %v5869_v51  ;;  %v5711_v51 = vpack.c.bf16 %v4429_v15, %v4428_v40 }
 0xc00   :  { %5680 = vmatprep.subr.bf16.mxu1 %v7232_v39 }
 0xc01   :  { %5682 = vmatpush3.bf16.msra.mxu1 %v7232_v39 }
 0xc04   :  { %v5873_v49 = vpop.permute.xlu1 %5872 }
 0xc05   :  { %v5875_v11 = vunpack.i.h.bf16 %v5873_v49  ;;  %v5874_v43 = vunpack.i.l.bf16 %v5873_v49  ;;  %v4430_v49 = vld [vmem:[%s7765_s8 + $0xe0] sm:$0xff] }
 0xc06   :  { %v7239_v13 = vpop.permute.xlu0 %2665 }
 0xc07   :  { %v7236_v41 = vpack.c.bf16 %v5875_v11, %v5874_v43  ;;  %v4431_v11 = vld [vmem:[%s7765_s8 + $0xe8] sm:$0xff] }
 0xc09   :  { %5684 = vmatprep.subr.bf16.mxu1 %v7236_v41 }
 0xc0a   :  { %5686 = vmatpush3.bf16.msra.mxu1 %v7236_v41 }
 0xc0b   :  { %5265 = vmatprep.subr.mxu1 %v7239_v13 }
 0xc0e   :  { %5266 = vmatpush3.msra.mxu1 %v7239_v13 }
 0xc0f   :  { %5268 = vmatmul.mubr.msk.f32.vlgmr.msra.gmra.mrb[60].mxu1 %vm484_vm3, %v6044_v36 }
 0xc10   :  { %5270 = vmatprep.mubr.msk.f32.mxu1 %vm484_vm3, %v6045_v57 }
 0xc13   :  { %5271 = vmatmul.mubr.msk.f32.gmra.mrb[62].mxu1 %vm484_vm3, %v6046_v24 }
 0xc14   :  { %5273 = vmatprep.mubr.msk.f32.mxu1 %vm484_vm3, %v6047_v2  ;;  %v5714_v2 = vpack.c.bf16 %v4431_v11, %v4430_v49 }
 0xc17   :  { %5274 = vmatmul.mubr.msk.f32.gmra.mrb[64].mxu1 %vm484_vm3, %v6048_v30  ;;  %v4432_v30 = vld [vmem:[%s7765_s8 + $0xf0] sm:$0xff] }
 0xc18   :  { %5305 = vmatprep.mubr.msk.f32.mxu1 %vm906_vm5, %v6049_v50  ;;  %v4433_v50 = vld [vmem:[%s7765_s8 + $0xf8] sm:$0xff] }
 0xc56   :  { %v2538_v17 = vpop.f32.mrb[50].mxu1 }
 0xc57   :  { %v5225_v44 = vpop.f32.mrb[51].mxu1 }
 0xc5a   :  { %v2543_v18 = vpop.f32.mrb[52].mxu1 }
 0xc5b   :  { %v5671_v61 = vpack.c.bf16 %v2543_v18, %v2538_v17  ;;  %v5228_v46 = vpop.f32.mrb[53].mxu1  ;;  %v5717_v17 = vpack.c.bf16 %v4433_v50, %v4432_v30 }
 0xc5d   :  { %5672 = vmatprep.subr.bf16.mxu0 %v5671_v61 }
 0xc5e   :  { %5674 = vmatpush3.bf16.msra.mxu0 %v5671_v61  ;;  %v2548_v45 = vpop.f32.mrb[54].mxu1 }
 0xc5f   :  { %v5231_v33 = vpop.f32.mrb[55].mxu1 }
 0xc63   :  { %v2553_v31 = vpop.f32.mrb[56].mxu1 }
 0xc64   :  { %v5675_v47 = vpack.c.bf16 %v2553_v31, %v2548_v45  ;;  %v5234_v55 = vpop.f32.mrb[57].mxu1 }
 0xc66   :  { %5676 = vmatprep.subr.bf16.mxu0 %v5675_v47 }
 0xc67   :  { %v2558_v9 = vpop.f32.mrb[58].mxu1  ;;  %5678 = vmatpush3.bf16.msra.mxu0 %v5675_v47 }
 0xc68   :  { %v5237_v20 = vpop.f32.mrb[59].mxu1  ;;  %5246 = vmatprep.subr.mxu0 %v2558_v9 }
 0xc6b   :  { %5247 = vmatpush3.msra.mxu0 %v2558_v9 }
 0xc6c   :  { %5249 = vmatmul.mubr.msk.f32.vlgmr.msra.gmra.mrb[68].mxu0 %vm484_vm3, %v6050_v22  ;;  %5688 = vmatprep.subr.bf16.mxu0 %v6605_v60 }
 0xc6d   :  { %5251 = vmatprep.mubr.msk.f32.mxu0 %vm484_vm3, %v6051_v54  ;;  %5690 = vmatpush3.bf16.msra.mxu0 %v6605_v60 }
 0xc6e   :  { %5692 = vmatprep.subr.bf16.mxu0 %v6629_v8 }
 0xc70   :  { %5252 = vmatmul.mubr.msk.f32.gmra.mrb[70].mxu0 %vm484_vm3, %v6052_v56 }
 0xc71   :  { %5254 = vmatprep.mubr.msk.f32.mxu0 %vm484_vm3, %v6053_v28  ;;  %5694 = vmatpush3.bf16.msra.mxu0 %v6629_v8 }
 0xc72   :  { %5707 = vmatprep.subr.bf16.mxu0 %v6211_v0 }
 0xc74   :  { %5255 = vmatmul.mubr.msk.f32.gmra.mrb[72].mxu0 %vm484_vm3, %v6054_v38 }
 0xce2   :  { %v5269_v42 = vpop.f32.mrb[60].mxu1 }
 0xce3   :  { %v2738_v53 = vpop.f32.mrb[61].mxu1 }
 0xce6   :  { %v5272_v62 = vpop.f32.mrb[62].mxu1 }
 0xce7   :  { %v2748_v16 = vpop.f32.mrb[63].mxu1 }
 0xcea   :  { %v5275_v6 = vpop.f32.mrb[64].mxu1 }
 0xceb   :  { %v2758_v19 = vpop.f32.mrb[65].mxu1 }
 0xd3f   :  { %v7299_v7 = vpop.f32.mrb[68].mxu0 }
 0xd40   :  { %v2768_v59 = vmul.f32 %v5269_v42, %v7299_v7  ;;  %v7302_v63 = vpop.f32.mrb[69].mxu0 }
 0xd41   :  { %v2767_v58 = vmul.f32 %v2738_v53, %v7302_v63 }
 0xd43   :  { %v7311_v25 = vpop.f32.mrb[70].mxu0  ;;  %5284 = vmatprep.mubr.msk.f32.mxu0 %vm738_vm4, %v2767_v58 }
 0xd44   :  { %v2770_v3 = vmul.f32 %v5272_v62, %v7311_v25  ;;  %v7315_v14 = vpop.f32.mrb[71].mxu0  ;;  %5285 = vmatmul.mubr.msk.f32.vlgmr.msra.gmra.mrb[74].mxu0 %vm738_vm4, %v2768_v59 }
 0xd45   :  { %v2769_v10 = vmul.f32 %v2748_v16, %v7315_v14  ;;  %5709 = vmatpush3.bf16.msra.mxu0 %v5708_v27 }
 0xd46   :  { %5710 = vmatprep.subr.bf16.mxu0 %v6211_v0 }
 0xd47   :  { %v7326_v43 = vpop.f32.mrb[72].mxu0  ;;  %5287 = vmatprep.mubr.msk.f32.mxu0 %vm738_vm4, %v2769_v10 }
 0xd48   :  { %v2772_v36 = vmul.f32 %v5275_v6, %v7326_v43  ;;  %v7330_v57 = vpop.f32.mrb[73].mxu0  ;;  %5288 = vmatmul.mubr.msk.f32.gmra.mrb[76].mxu0 %vm738_vm4, %v2770_v3 }
 0xd49   :  { %v2771_v24 = vmul.f32 %v2758_v19, %v7330_v57  ;;  %5712 = vmatpush3.bf16.msra.mxu0 %v5711_v51 }
 0xd4a   :  { %5713 = vmatprep.subr.bf16.mxu0 %v6211_v0 }
 0xd4b   :  { %5290 = vmatprep.mubr.msk.f32.mxu0 %vm738_vm4, %v2771_v24 }
 0xd4c   :  { %5291 = vmatmul.mubr.msk.f32.gmra.mrb[78].mxu0 %vm738_vm4, %v2772_v36 }
 0xd4d   :  { %5715 = vmatpush3.bf16.msra.mxu0 %v5714_v2  ;;  %5330 = vmatprep.mubr.msk.f32.mxu0 %vm6212_vm0, %v6213_v1 }
 0xd4e   :  { %5716 = vmatprep.subr.bf16.mxu0 %v6211_v0 }
 0xd51   :  { %5718 = vmatpush3.bf16.msra.mxu0 %v5717_v17 }
 0xd52   :  { %5736 = vmatprep.subr.bf16.mxu0 %v6605_v60 }
 0xd54   :  { %5331 = vmatmul.mubr.msk.f32.vlgmr.msra.gmra.mrb[80].mxu0 %vm259_vm2, %v7192_v12 }
 0xd55   :  { %5333 = vmatprep.mubr.msk.f32.mxu0 %vm6212_vm0, %v6213_v1  ;;  %5738 = vmatpush3.bf16.msra.mxu0 %v6605_v60 }
 0xd56   :  { %5740 = vmatprep.subr.bf16.mxu0 %v6629_v8 }
 0xd58   :  { %5334 = vmatmul.mubr.msk.f32.gmra.mrb[82].mxu0 %vm259_vm2, %v7198_v4 }
 0xd59   :  { %5336 = vmatprep.mubr.msk.f32.mxu0 %vm6212_vm0, %v6213_v1  ;;  %5742 = vmatpush3.bf16.msra.mxu0 %v6629_v8  ;;  %v4419_v8 = vld [vmem:[%s7766_s9 + $0x2] ss:$0 sm:$0xff] }
 0xd5a   :  { %5755 = vmatprep.subr.bf16.mxu0 %v6211_v0 }
 0xd5c   :  { %5337 = vmatmul.mubr.msk.f32.gmra.mrb[84].mxu0 %vm259_vm2, %v7207_v32 }
 0xd5d   :  { %5339 = vmatprep.mubr.msk.f32.mxu0 %vm6212_vm0, %v6213_v1 }
 0xd60   :  { %5340 = vmatmul.mubr.msk.f32.gmra.mrb[86].mxu0 %vm259_vm2, %v7213_v34 }
 0xd61   :  { %5342 = vmatprep.mubr.msk.f32.mxu0 %vm6212_vm0, %v6213_v1 }
 0xd64   :  { %5343 = vmatmul.mubr.msk.f32.gmra.mrb[88].mxu0 %vm259_vm2, %v7221_v26 }
 0xe17   :  { %v5286_v60 = vpop.f32.mrb[74].mxu0 }
 0xe18   :  { %v2857_v12 = vpop.f32.mrb[75].mxu0  ;;  %v2895_v61 = vmul.f32 %v5286_v60, %v4419_v8 }
 0xe19   :  { %v2894_v34 = vmul.f32 %v4419_v8, %v2857_v12 }
 0xe1a   :  { %v2901_v9 = vsel %vm259_vm2, %v2895_v61, -inf }
 0xe1b   :  { %v5289_v4 = vpop.f32.mrb[76].mxu0  ;;  %v2900_v22 = vsel %vm259_vm2, %v2894_v34, -inf }
 0xe1c   :  { %v2897_v32 = vmul.f32 %v5289_v4, %v4419_v8  ;;  %v2867_v44 = vpop.f32.mrb[77].mxu0 }
 0xe1d   :  { %v2896_v18 = vmul.f32 %v4419_v8, %v2867_v44 }
 0xe1e   :  { %v2903_v46 = vsel %vm259_vm2, %v2897_v32, -inf }
 0xe1f   :  { %v2902_v45 = vsel %vm259_vm2, %v2896_v18, -inf  ;;  %v5292_v33 = vpop.f32.mrb[78].mxu0 }
 0xe20   :  { %v2909_v31 = vmax.f32 %v2902_v45, %v2903_v46  ;;  %v2899_v47 = vmul.f32 %v5292_v33, %v4419_v8  ;;  %v2877_v26 = vpop.f32.mrb[79].mxu0 }
 0xe21   :  { %v2898_v55 = vmul.f32 %v4419_v8, %v2877_v26 }
 0xe22   :  { %v2906_v20 = vsel %vm259_vm2, %v2899_v47, -inf }
 0xe23   :  { %v2907_v54 = vmax.f32 %v2901_v9, %v2906_v20  ;;  %v2904_v56 = vsel %vm259_vm2, %v2898_v55, -inf  ;;  %v6055_v9 = vld [vmem:[%s7771_s14 + $0x8] sm:$0xff]  ;;  %v6056_v20 = vld [vmem:[%s7771_s14 + $0x10] sm:$0xff] }
 0xe24   :  { %v2905_v28 = vmax.f32 %v2900_v22, %v2904_v56  ;;  %v6057_v22 = vld [vmem:[%s7771_s14 + $0x18] sm:$0xff]  ;;  %v6059_v56 = vld [vmem:[%s7771_s14 + $0x28] sm:$0xff] }
 0xe26   :  { %v2908_v38 = vmax.f32 %v2905_v28, %v2907_v54  ;;  %v6058_v54 = vld [vmem:[%s7771_s14 + $0x20] sm:$0xff]  ;;  %v6060_v28 = vld [vmem:[%s7768_s11 + $0x30] sm:$0xff] }
 0xe27   :  { %v3147_v42 = vpop.f32.mrb[80].mxu0 }
 0xe28   :  { %v2910_v53 = vmax.f32 %v2908_v38, %v2909_v31  ;;  %v5332_v62 = vpop.f32.mrb[81].mxu0  ;;  %v6061_v38 = vld [vmem:[%s7768_s11 + $0x38] sm:$0xff] }
 0xe29   :  { %v6065_v62 = vld [vmem:[%s7768_s11 + $0x58] sm:$0xff] }
 0xe2a   :  { %v2911_v16 = vrot.slane %v2910_v53, 4 }
 0xe2b   :  { %v3152_v6 = vpop.f32.mrb[82].mxu0 }
 0xe2c   :  { %v2912_v19 = vmax.f32 %v2910_v53, %v2911_v16  ;;  %v5719_v21 = vpack.c.bf16 %v3152_v6, %v3147_v42  ;;  %v5335_v23 = vpop.f32.mrb[83].mxu0  ;;  %v6062_v42 = vld [vmem:[%s7768_s11 + $0x40] sm:$0xff]  ;;  %v6063_v53 = vld [vmem:[%s7768_s11 + $0x48] sm:$0xff]  ;;  %v6067_v16 = vld [vmem:[%s7769_s12 + $0x38] sm:$0xff] }
 0xe2d   :  { %v6068_v6 = vld [vmem:[%s7769_s12 + $0x40] sm:$0xff]  ;;  %v6072_v23 = vld [vmem:[%s7771_s14 + $0x30] sm:$0xff] }
 0xe2e   :  { %v2913_v59 = vrot.slane %v2912_v19, 2 }
 0xe2f   :  { %v3157_v58 = vpop.f32.mrb[84].mxu0 }
 0xe30   :  { %v2914_v27 = vmax.f32 %v2912_v19, %v2913_v59  ;;  %v5338_v40 = vpop.f32.mrb[85].mxu0  ;;  %v6070_v19 = vld [vmem:[%s7769_s12 + $0x50] sm:$0xff] }
 0xe32   :  { %v2915_v15 = vrot.slane %v2914_v27, 1 }
 0xe33   :  { %v3162_v3 = vpop.f32.mrb[86].mxu0 }
 0xe34   :  { %v2916_v10 = vmax.f32 %v2914_v27, %v2915_v15  ;;  %v5723_v51 = vpack.c.bf16 %v3162_v3, %v3157_v58  ;;  %v5341_v49 = vpop.f32.mrb[87].mxu0 }
 0xe36   :  { %v2921_v11 = vsub.f32 %v2898_v55, %v2916_v10  ;;  %v2917_v36 = vsub.f32 %v2894_v34, %v2916_v10  ;;  %v2918_v24 = vsub.f32 %v2895_v61, %v2916_v10  ;;  %v2919_v2 = vsub.f32 %v2896_v18, %v2916_v10 }
 0xe37   :  { %v3167_v30 = vpop.f32.mrb[88].mxu0  ;;  %v2920_v50 = vsub.f32 %v2897_v32, %v2916_v10  ;;  %v2922_v17 = vsub.f32 %v2899_v47, %v2916_v10 }
 0xe38   :  { %v5344_v60 = vpop.f32.mrb[89].mxu0  ;;  %v2923_v12 = vmul.f32 1.442695, %v2917_v36  ;;  %v2925_v8 = vmul.f32 1.442695, %v2918_v24 }
 0xe39   :  { %v2927_v4 = vmul.f32 1.442695, %v2919_v2  ;;  %v2929_v44 = vmul.f32 1.442695, %v2920_v50  ;;  %v2931_v46 = vmul.f32 1.442695, %v2921_v11 }
 0xe3a   :  { %5974 = vpow2.f32 %v2923_v12  ;;  %v2933_v45 = vmul.f32 1.442695, %v2922_v17 }
 0xe3b   :  { %5976 = vpow2.f32 %v2925_v8 }
 0xe3c   :  { %5978 = vpow2.f32 %v2927_v4 }
 0xe3d   :  { %5980 = vpow2.f32 %v2929_v44 }
 0xe3e   :  { %5982 = vpow2.f32 %v2931_v46 }
 0xe3f   :  { %5984 = vpow2.f32 %v2933_v45 }
 0xe44   :  { %v7378_v33 = vpop.eup %5974 }
 0xe45   :  { %v7380_v61 = vpop.eup %5976 }
 0xe46   :  { %v7382_v18 = vpop.eup %5978  ;;  %v5695_v32 = vpack.c.bf16 %v7380_v61, %v7378_v33 }
 0xe47   :  { %v7386_v34 = vpop.eup %5980 }
 0xe48   :  { %v7388_v31 = vpop.eup %5982  ;;  %5696 = vmatprep.subr.bf16.mxu1 %v5695_v32  ;;  %v5699_v47 = vpack.c.bf16 %v7386_v34, %v7382_v18 }
 0xe49   :  { %v7392_v26 = vpop.eup %5984  ;;  %5698 = vmatpush3.bf16.msra.mxu1 %v5695_v32 }
 0xe4a   :  { %5700 = vmatprep.subr.bf16.mxu1 %v5699_v47  ;;  %v5703_v55 = vpack.c.bf16 %v7392_v26, %v7388_v31 }
 0xe4d   :  { %5702 = vmatpush3.bf16.msra.mxu1 %v5699_v47 }
 0xe4e   :  { %5704 = vmatprep.subr.bf16.mxu1 %v5703_v55 }
 0xe51   :  { %5706 = vmatpush3.bf16.msra.mxu1 %v5703_v55 }
 0xe52   :  { %5720 = vmatprep.subr.bf16.mxu1 %v5719_v21 }
 0xe54   :  { %5306 = vmatmul.mubr.msk.f32.vlgmr.msra.gmra.mrb[66].mxu1 %vm906_vm5, %v6055_v9  ;;  %v4458_v9 = vld [vmem:[%s7766_s9 + $0x3] ss:$0 sm:$0xff] }
 0xe55   :  { %5722 = vmatpush3.bf16.msra.mxu1 %v5719_v21  ;;  %5308 = vmatprep.mubr.msk.f32.mxu1 %vm906_vm5, %v6056_v20  ;;  %v6071_v21 = vld [vmem:[%s7769_s12 + $0x58] sm:$0xff] }
 0xe56   :  { %5724 = vmatprep.subr.bf16.mxu1 %v5723_v51 }
 0xe58   :  { %5309 = vmatmul.mubr.msk.f32.gmra.mrb[68].mxu1 %vm906_vm5, %v6057_v22 }
 0xe59   :  { %5726 = vmatpush3.bf16.msra.mxu1 %v5723_v51  ;;  %5311 = vmatprep.mubr.msk.f32.mxu1 %vm906_vm5, %v6058_v54 }
 0xe5a   :  { %5353 = vmatprep.subr.mxu1 %v3167_v30 }
 0xe5c   :  { %5312 = vmatmul.mubr.msk.f32.gmra.mrb[70].mxu1 %vm906_vm5, %v6059_v56 }
 0xe5d   :  { %5354 = vmatpush3.msra.mxu1 %v3167_v30  ;;  %5355 = vmatprep.mubr.msk.f32.mxu1 %vm484_vm3, %v6060_v28 }
 0xe5e   :  { %5728 = vmatprep.subr.bf16.mxu1 %v7232_v39 }
 0xe60   :  { %5356 = vmatmul.mubr.msk.f32.vlgmr.msra.gmra.mrb[72].mxu1 %vm484_vm3, %v6061_v38 }
 0xe61   :  { %5730 = vmatpush3.bf16.msra.mxu1 %v7232_v39  ;;  %5358 = vmatprep.mubr.msk.f32.mxu1 %vm484_vm3, %v6062_v42  ;;  %v6064_v39 = vld [vmem:[%s7768_s11 + $0x50] sm:$0xff] }
 0xe62   :  { %5732 = vmatprep.subr.bf16.mxu1 %v7236_v41 }
 0xe64   :  { %5359 = vmatmul.mubr.msk.f32.gmra.mrb[74].mxu1 %vm484_vm3, %v6063_v53 }
 0xe65   :  { %5734 = vmatpush3.bf16.msra.mxu1 %v7236_v41  ;;  %5361 = vmatprep.mubr.msk.f32.mxu1 %vm484_vm3, %v6064_v39  ;;  %v6066_v41 = vld [vmem:[%s7769_s12 + $0x30] sm:$0xff] }
 0xe66   :  { %5372 = vmatprep.subr.mxu1 %v7239_v13 }
 0xe68   :  { %5362 = vmatmul.mubr.msk.f32.gmra.mrb[76].mxu1 %vm484_vm3, %v6065_v62 }
 0xe69   :  { %5373 = vmatpush3.msra.mxu1 %v7239_v13  ;;  %5374 = vmatprep.mubr.msk.f32.mxu1 %vm484_vm3, %v6066_v41  ;;  %v6069_v13 = vld [vmem:[%s7769_s12 + $0x48] sm:$0xff] }
 0xe6c   :  { %5375 = vmatmul.mubr.msk.f32.vlgmr.msra.gmra.mrb[78].mxu1 %vm484_vm3, %v6067_v16 }
 0xe6d   :  { %5377 = vmatprep.mubr.msk.f32.mxu1 %vm484_vm3, %v6068_v6 }
 0xe70   :  { %5378 = vmatmul.mubr.msk.f32.gmra.mrb[80].mxu1 %vm484_vm3, %v6069_v13 }
 0xe71   :  { %5380 = vmatprep.mubr.msk.f32.mxu1 %vm484_vm3, %v6070_v19 }
 0xe74   :  { %5381 = vmatmul.mubr.msk.f32.gmra.mrb[82].mxu1 %vm484_vm3, %v6071_v21 }
 0xe75   :  { %5412 = vmatprep.mubr.msk.f32.mxu1 %vm906_vm5, %v6072_v23 }
 0xf27   :  { %v7474_v59 = vpop.f32.mrb[66].mxu1 }
 0xf28   :  { %v7476_v58 = vpop.f32.mrb[67].mxu1 }
 0xf2b   :  { %v7478_v27 = vpop.f32.mrb[68].mxu1 }
 0xf2c   :  { %v7480_v40 = vpop.f32.mrb[69].mxu1 }
 0xf2f   :  { %v7482_v15 = vpop.f32.mrb[70].mxu1 }
 0xf30   :  { %v7484_v3 = vpop.f32.mrb[71].mxu1 }
 0xf33   :  { %v7486_v10 = vpop.f32.mrb[72].mxu1 }
 0xf34   :  { %v7488_v51 = vpop.f32.mrb[73].mxu1 }
 0xf37   :  { %v7490_v49 = vpop.f32.mrb[74].mxu1 }
 0xf38   :  { %v7492_v11 = vpop.f32.mrb[75].mxu1 }
 0xf3b   :  { %v7494_v36 = vpop.f32.mrb[76].mxu1 }
 0xf3c   :  { %v7496_v24 = vpop.f32.mrb[77].mxu1 }
 0xf3f   :  { %v5376_v2 = vpop.f32.mrb[78].mxu1 }
 0xf40   :  { %v3362_v30 = vmul.f32 %v5376_v2, %v7486_v10  ;;  %v3332_v50 = vpop.f32.mrb[79].mxu1 }
 0xf41   :  { %v3361_v17 = vmul.f32 %v3332_v50, %v7488_v51 }
 0xf43   :  { %v5379_v60 = vpop.f32.mrb[80].mxu1  ;;  %5391 = vmatprep.mubr.msk.f32.mxu0 %vm738_vm4, %v3361_v17 }
 0xf44   :  { %v3364_v12 = vmul.f32 %v5379_v60, %v7490_v49  ;;  %v3342_v8 = vpop.f32.mrb[81].mxu1  ;;  %5392 = vmatmul.mubr.msk.f32.vlgmr.msra.gmra.mrb[90].mxu0 %vm738_vm4, %v3362_v30 }
 0xf45   :  { %v3363_v4 = vmul.f32 %v3342_v8, %v7492_v11 }
 0xf47   :  { %v5382_v44 = vpop.f32.mrb[82].mxu1  ;;  %5394 = vmatprep.mubr.msk.f32.mxu0 %vm738_vm4, %v3363_v4 }
 0xf48   :  { %v3366_v46 = vmul.f32 %v5382_v44, %v7494_v36  ;;  %v3352_v45 = vpop.f32.mrb[83].mxu1  ;;  %5395 = vmatmul.mubr.msk.f32.gmra.mrb[92].mxu0 %vm738_vm4, %v3364_v12 }
 0xf49   :  { %v3365_v32 = vmul.f32 %v3352_v45, %v7496_v24 }
 0xf4b   :  { %5397 = vmatprep.mubr.msk.f32.mxu0 %vm738_vm4, %v3365_v32 }
 0xf4c   :  { %5398 = vmatmul.mubr.msk.f32.gmra.mrb[94].mxu0 %vm738_vm4, %v3366_v46 }
 0xf4d   :  { %5433 = vmatprep.mubr.msk.f32.mxu0 %vm6212_vm0, %v6213_v1 }
0x1017   :  { %v5393_v47 = vpop.f32.mrb[90].mxu0 }
0x1018   :  { %v3451_v55 = vpop.f32.mrb[91].mxu0  ;;  %v3489_v28 = vmul.f32 %v5393_v47, %v4458_v9 }
0x1019   :  { %v3488_v42 = vmul.f32 %v4458_v9, %v3451_v55 }
0x101a   :  { %v3495_v13 = vsel %vm259_vm2, %v3489_v28, -inf }
0x101b   :  { %v5396_v20 = vpop.f32.mrb[92].mxu0  ;;  %v3494_v21 = vsel %vm259_vm2, %v3488_v42, -inf }
0x101c   :  { %v3491_v22 = vmul.f32 %v5396_v20, %v4458_v9  ;;  %v3461_v54 = vpop.f32.mrb[93].mxu0 }
0x101d   :  { %v3490_v56 = vmul.f32 %v4458_v9, %v3461_v54 }
0x101e   :  { %v3497_v38 = vsel %vm259_vm2, %v3491_v22, -inf }
0x101f   :  { %v3496_v53 = vsel %vm259_vm2, %v3490_v56, -inf  ;;  %v5399_v39 = vpop.f32.mrb[94].mxu0 }
0x1020   :  { %v3503_v62 = vmax.f32 %v3496_v53, %v3497_v38  ;;  %v3493_v41 = vmul.f32 %v5399_v39, %v4458_v9  ;;  %v3471_v16 = vpop.f32.mrb[95].mxu0 }
0x1021   :  { %v3492_v6 = vmul.f32 %v4458_v9, %v3471_v16 }
0x1022   :  { %v3500_v19 = vsel %vm259_vm2, %v3493_v41, -inf }
0x1023   :  { %v3501_v23 = vmax.f32 %v3495_v13, %v3500_v19  ;;  %v3498_v2 = vsel %vm259_vm2, %v3492_v6, -inf }
0x1024   :  { %v3499_v30 = vmax.f32 %v3494_v21, %v3498_v2  ;;  %v6074_v2 = vld [vmem:[%s7771_s14 + $0x40] sm:$0xff] }
0x1026   :  { %v3502_v50 = vmax.f32 %v3499_v30, %v3501_v23  ;;  %v6073_v23 = vld [vmem:[%s7771_s14 + $0x38] sm:$0xff]  ;;  %v6075_v30 = vld [vmem:[%s7771_s14 + $0x48] sm:$0xff] }
0x1028   :  { %v3504_v17 = vmax.f32 %v3502_v50, %v3503_v62  ;;  %v6076_v50 = vld [vmem:[%s7771_s14 + $0x50] sm:$0xff] }
0x102a   :  { %v3505_v60 = vrot.slane %v3504_v17, 4 }
0x102c   :  { %v3506_v12 = vmax.f32 %v3504_v17, %v3505_v60  ;;  %v6077_v17 = vld [vmem:[%s7771_s14 + $0x58] sm:$0xff] }
0x102e   :  { %v3507_v8 = vrot.slane %v3506_v12, 2 }
0x1030   :  { %v3508_v4 = vmax.f32 %v3506_v12, %v3507_v8 }
0x1032   :  { %v3509_v44 = vrot.slane %v3508_v4, 1 }
0x1034   :  { %v3510_v46 = vmax.f32 %v3508_v4, %v3509_v44 }
0x1036   :  { %v3515_v45 = vsub.f32 %v3492_v6, %v3510_v46  ;;  %v3511_v32 = vsub.f32 %v3488_v42, %v3510_v46  ;;  %v3512_v47 = vsub.f32 %v3489_v28, %v3510_v46  ;;  %v3513_v55 = vsub.f32 %v3490_v56, %v3510_v46 }
0x1037   :  { %v3514_v9 = vsub.f32 %v3491_v22, %v3510_v46  ;;  %v3516_v20 = vsub.f32 %v3493_v41, %v3510_v46 }
0x1038   :  { %v3517_v54 = vmul.f32 1.442695, %v3511_v32  ;;  %v3519_v38 = vmul.f32 1.442695, %v3512_v47  ;;  %v3521_v53 = vmul.f32 1.442695, %v3513_v55 }
0x1039   :  { %v3523_v39 = vmul.f32 1.442695, %v3514_v9  ;;  %v3525_v16 = vmul.f32 1.442695, %v3515_v45  ;;  %v3527_v62 = vmul.f32 1.442695, %v3516_v20 }
0x103a   :  { %5986 = vpow2.f32 %v3517_v54  ;;  %v3007_v55 = vadd.f32 1e-16, %v7474_v59  ;;  %v3002_v54 = vadd.f32 1e-16, %v7476_v58 }
0x103b   :  { %5988 = vpow2.f32 %v3519_v38 }
0x103c   :  { %5990 = vpow2.f32 %v3521_v53 }
0x103d   :  { %5992 = vpow2.f32 %v3523_v39  ;;  %v3017_v39 = vadd.f32 1e-16, %v7478_v27 }
0x103e   :  { %5994 = vpow2.f32 %v3525_v16 }
0x103f   :  { %5996 = vpow2.f32 %v3527_v62  ;;  %v3012_v62 = vadd.f32 1e-16, %v7480_v40 }
0x1044   :  { %v5987_v13 = vpop.eup %5986 }
0x1045   :  { %v5989_v19 = vpop.eup %5988 }
0x1046   :  { %v5991_v6 = vpop.eup %5990  ;;  %v5743_v42 = vpack.c.bf16 %v5989_v19, %v5987_v13 }
0x1047   :  { %v5993_v28 = vpop.eup %5992 }
0x1048   :  { %v7521_v56 = vpop.eup %5994  ;;  %5744 = vmatprep.subr.bf16.mxu1 %v5743_v42  ;;  %v5747_v22 = vpack.c.bf16 %v5993_v28, %v5991_v6 }
0x1049   :  { %v7523_v41 = vpop.eup %5996  ;;  %5746 = vmatpush3.bf16.msra.mxu1 %v5743_v42 }
0x104a   :  { %5748 = vmatprep.subr.bf16.mxu1 %v5747_v22  ;;  %v5751_v21 = vpack.c.bf16 %v7523_v41, %v7521_v56 }
0x104d   :  { %5750 = vmatpush3.bf16.msra.mxu1 %v5747_v22 }
0x104e   :  { %5752 = vmatprep.subr.bf16.mxu1 %v5751_v21 }
0x1051   :  { %5754 = vmatpush3.bf16.msra.mxu1 %v5751_v21  ;;  %v3027_v21 = vadd.f32 1e-16, %v7482_v15 }
0x1052   :  { %5773 = vmatprep.subr.bf16.mxu1 %v6211_v0 }
0x1054   :  { %5413 = vmatmul.mubr.msk.f32.vlgmr.msra.gmra.mrb[84].mxu1 %vm906_vm5, %v6073_v23  ;;  %v3022_v23 = vadd.f32 1e-16, %v7484_v3 }
0x1055   :  { %5415 = vmatprep.mubr.msk.f32.mxu1 %vm906_vm5, %v6074_v2 }
0x1058   :  { %5416 = vmatmul.mubr.msk.f32.gmra.mrb[86].mxu1 %vm906_vm5, %v6075_v30 }
0x1059   :  { %5418 = vmatprep.mubr.msk.f32.mxu1 %vm906_vm5, %v6076_v50 }
0x105c   :  { %5419 = vmatmul.mubr.msk.f32.gmra.mrb[88].mxu1 %vm906_vm5, %v6077_v17 }
0x105d   :  { %5491 = vmatprep.mubr.msk.f32.mxu1 %vm6212_vm0, %v6213_v1 }
0x1127   :  { %v5414_v60 = vpop.f32.mrb[84].mxu1 }
0x1128   :  { %v3601_v12 = vadd.f32 1e-16, %v5414_v60  ;;  %v3595_v8 = vpop.f32.mrb[85].mxu1 }
0x1129   :  { %v3596_v4 = vadd.f32 1e-16, %v3595_v8 }
0x112a   :  { %5998 = vrcp.f32 %v3601_v12 }
0x112b   :  { %6000 = vrcp.f32 %v3596_v4  ;;  %v5417_v44 = vpop.f32.mrb[86].mxu1 }
0x112c   :  { %v3611_v46 = vadd.f32 1e-16, %v5417_v44  ;;  %v3605_v45 = vpop.f32.mrb[87].mxu1 }
0x112d   :  { %v3606_v32 = vadd.f32 1e-16, %v3605_v45 }
0x112e   :  { %6002 = vrcp.f32 %v3611_v46 }
0x112f   :  { %6004 = vrcp.f32 %v3606_v32  ;;  %v5420_v47 = vpop.f32.mrb[88].mxu1 }
0x1130   :  { %v3621_v9 = vadd.f32 1e-16, %v5420_v47  ;;  %v3615_v20 = vpop.f32.mrb[89].mxu1 }
0x1131   :  { %v3616_v38 = vadd.f32 1e-16, %v3615_v20 }
0x1132   :  { %6006 = vrcp.f32 %v3621_v9 }
0x1133   :  { %6008 = vrcp.f32 %v3616_v38 }
0x1134   :  { %v5999_v53 = vpop.eup %5998  ;;  %6010 = vrcp.f32 %v3007_v55 }
0x1135   :  { %v6001_v16 = vpop.eup %6000  ;;  %6012 = vrcp.f32 %v3002_v54  ;;  %v3631_v42 = vmul.f32 %v5999_v53, %v5989_v19 }
0x1136   :  { %v3630_v22 = vmul.f32 %v6001_v16, %v5987_v13  ;;  %6014 = vrcp.f32 %v3017_v39 }
0x1137   :  { %3644 = vrot.lane.b32.xlu0 %v3631_v42, %s6215_s19  ;;  %6016 = vrcp.f32 %v3012_v62 }
0x1138   :  { %v6003_v59 = vpop.eup %6002  ;;  %3642 = vrot.lane.b32.xlu1 %v3630_v22, %s6215_s19  ;;  %6018 = vrcp.f32 %v3027_v21 }
0x1139   :  { %v6005_v58 = vpop.eup %6004  ;;  %v3633_v2 = vmul.f32 %v6003_v59, %v5993_v28  ;;  %6020 = vrcp.f32 %v3022_v23 }
0x113a   :  { %v3632_v27 = vmul.f32 %v6005_v58, %v5991_v6 }
0x113b   :  { %3648 = vrot.lane.b32.xlu0 %v3633_v2, %s6215_s19 }
0x113c   :  { %v6007_v30 = vpop.eup %6006  ;;  %3646 = vrot.lane.b32.xlu1 %v3632_v27, %s6215_s19 }
0x113d   :  { %v6009_v40 = vpop.eup %6008  ;;  %v3635_v13 = vmul.f32 %v6007_v30, %v7523_v41 }
0x113e   :  { %v6011_v19 = vpop.eup %6010  ;;  %v3634_v15 = vmul.f32 %v6009_v40, %v7521_v56 }
0x113f   :  { %v6013_v50 = vpop.eup %6012  ;;  %3652 = vrot.lane.b32.xlu0 %v3635_v13, %s6215_s19  ;;  %v3037_v3 = vmul.f32 %v6011_v19, %v7380_v61 }
0x1140   :  { %3650 = vrot.lane.b32.xlu1 %v3634_v15, %s6215_s19  ;;  %v6015_v6 = vpop.eup %6014  ;;  %v3036_v28 = vmul.f32 %v6013_v50, %v7378_v33 }
0x1141   :  { %v6017_v17 = vpop.eup %6016  ;;  %v3039_v41 = vmul.f32 %v6015_v6, %v7386_v34 }
0x1142   :  { %v6019_v60 = vpop.eup %6018  ;;  %v3038_v56 = vmul.f32 %v6017_v17, %v7382_v18 }
0x1143   :  { %3050 = vrot.lane.b32.xlu0 %v3037_v3, %s6215_s19  ;;  %v6021_v12 = vpop.eup %6020  ;;  %v3041_v61 = vmul.f32 %v6019_v60, %v7392_v26 }
0x1144   :  { %3048 = vrot.lane.b32.xlu1 %v3036_v28, %s6215_s19  ;;  %v3040_v8 = vmul.f32 %v6021_v12, %v7388_v31 }
0x1147   :  { %3054 = vrot.lane.b32.xlu0 %v3039_v41, %s6215_s19 }
0x1148   :  { %3052 = vrot.lane.b32.xlu1 %v3038_v56, %s6215_s19 }
0x114b   :  { %3058 = vrot.lane.b32.xlu0 %v3041_v61, %s6215_s19 }
0x114c   :  { %3056 = vrot.lane.b32.xlu1 %v3040_v8, %s6215_s19 }
0x11a9   :  { %v3645_v33 = vpop.permute.xlu0 %3644 }
0x11aa   :  { %v3661_v4 = vmul.f32 %v7486_v10, %v3645_v33  ;;  %v3643_v34 = vpop.permute.xlu1 %3642 }
0x11ab   :  { %v3660_v44 = vmul.f32 %v3643_v34, %v7488_v51 }
0x11ad   :  { %v5876_v18 = vpack.i.bf16 %v3661_v4, %v3660_v44  ;;  %v3649_v46 = vpop.permute.xlu0 %3648  ;;  %v6078_v4 = vld [vmem:[#allocation9 + $0x28] sm:$0xff] }
0x11ae   :  { %v3663_v45 = vmul.f32 %v7490_v49, %v3649_v46  ;;  %v3647_v32 = vpop.permute.xlu1 %3646 }
0x11af   :  { %v3662_v47 = vmul.f32 %v3647_v32, %v7492_v11  ;;  %5877 = vrot.lane.b32.xlu1 %v5876_v18, %s6217_s29 }
0x11b1   :  { %v5881_v31 = vpack.i.bf16 %v3663_v45, %v3662_v47  ;;  %v3653_v26 = vpop.permute.xlu0 %3652  ;;  %v6079_v45 = vld [vmem:[#allocation9 + $0x30] sm:$0xff] }
0x11b2   :  { %v3665_v55 = vmul.f32 %v7494_v36, %v3653_v26  ;;  %v3651_v9 = vpop.permute.xlu1 %3650  ;;  %v6080_v26 = vld [vmem:[#allocation9 + $0x38] sm:$0xff] }
0x11b3   :  { %v3664_v20 = vmul.f32 %v3651_v9, %v7496_v24  ;;  %5882 = vrot.lane.b32.xlu0 %v5881_v31, %s6217_s29  ;;  %v6082_v9 = vld [vmem:[#allocation9 + $0x48] sm:$0xff] }
0x11b5   :  { %v5886_v10 = vpack.i.bf16 %v3665_v55, %v3664_v20  ;;  %v3051_v51 = vpop.permute.xlu0 %3050  ;;  %v6081_v55 = vld [vmem:[#allocation9 + $0x40] sm:$0xff] }
0x11b6   :  { %v3067_v54 = vmul.f32 %v7299_v7, %v3051_v51  ;;  %v3049_v38 = vpop.permute.xlu1 %3048  ;;  %v6083_v20 = vld [vmem:[#allocation9] sm:$0xff]  ;;  %v6085_v51 = vld [vmem:[#allocation9 + $0x10] sm:$0xff] }
0x11b7   :  { %v3066_v49 = vmul.f32 %v3049_v38, %v7302_v63  ;;  %5887 = vrot.lane.b32.xlu1 %v5886_v10, %s6217_s29  ;;  %v4488_v63 = vld [vmem:[%s7764_s7 + $0x28] sm:$0xff]  ;;  %v6084_v10 = vld [vmem:[#allocation9 + $0x8] sm:$0xff] }
0x11b8   :  { %v4185_v21 = vsub.f32 1.0, %v4488_v63  ;;  %v6087_v38 = vld [vmem:[#allocation9 + $0x20] sm:$0xff] }
0x11b9   :  { %v5891_v11 = vpack.i.bf16 %v3067_v54, %v3066_v49  ;;  %v3055_v53 = vpop.permute.xlu0 %3054  ;;  %v6086_v54 = vld [vmem:[#allocation9 + $0x18] sm:$0xff] }
0x11ba   :  { %v3069_v39 = vmul.f32 %v7311_v25, %v3055_v53  ;;  %v3053_v16 = vpop.permute.xlu1 %3052  ;;  %v4490_v25 = vld [vmem:[%s7764_s7 + $0x38] sm:$0xff]  ;;  %v4475_v49 = vld [vmem:[%s7762_s5 + $0x40] sm:$0xff] }
0x11bb   :  { %v3068_v36 = vmul.f32 %v3053_v16, %v7315_v14  ;;  %5892 = vrot.lane.b32.xlu0 %v5891_v11, %s6217_s29  ;;  %v4489_v14 = vld [vmem:[%s7764_s7 + $0x30] sm:$0xff]  ;;  %v4187_v23 = vsub.f32 1.0, %v4490_v25  ;;  %v4476_v11 = vld [vmem:[%s7762_s5 + $0x48] sm:$0xff]  ;;  %v4478_v16 = vld [vmem:[%s7762_s5 + $0x58] sm:$0xff] }
0x11bc   :  { %v4186_v58 = vsub.f32 1.0, %v4489_v14  ;;  %v5774_v53 = vpack.c.bf16 %v4476_v11, %v4475_v49 }
0x11bd   :  { %v5896_v24 = vpack.i.bf16 %v3069_v39, %v3068_v36  ;;  %v3059_v62 = vpop.permute.xlu0 %3058  ;;  %v4477_v39 = vld [vmem:[%s7762_s5 + $0x50] sm:$0xff] }
0x11be   :  { %v3071_v42 = vmul.f32 %v7326_v43, %v3059_v62  ;;  %v3057_v22 = vpop.permute.xlu1 %3056  ;;  %v4492_v43 = vld [vmem:[%s7764_s7 + $0x48] sm:$0xff]  ;;  %5775 = vmatpush3.bf16.msra.mxu1 %v5774_v53  ;;  %v5777_v36 = vpack.c.bf16 %v4478_v16, %v4477_v39 }
0x11bf   :  { %v3070_v7 = vmul.f32 %v3057_v22, %v7330_v57  ;;  %5897 = vrot.lane.b32.xlu1 %v5896_v24, %s6217_s29  ;;  %v4491_v57 = vld [vmem:[%s7764_s7 + $0x40] sm:$0xff]  ;;  %v4189_v27 = vsub.f32 1.0, %v4492_v43  ;;  %5776 = vmatprep.subr.bf16.mxu1 %v6211_v0  ;;  %v4480_v62 = vld [vmem:[%s7762_s5 + $0x68] sm:$0xff]  ;;  %v4481_v22 = vld [vmem:[%s7762_s5 + $0x70] sm:$0xff] }
0x11c0   :  { %v4188_v2 = vsub.f32 1.0, %v4491_v57  ;;  %v4479_v24 = vld [vmem:[%s7762_s5 + $0x60] sm:$0xff] }
0x11c1   :  { %v5901_v59 = vpack.i.bf16 %v3071_v42, %v3070_v7  ;;  %v5780_v42 = vpack.c.bf16 %v4480_v62, %v4479_v24  ;;  %v4482_v7 = vld [vmem:[%s7762_s5 + $0x78] sm:$0xff] }
0x11c2   :  { %5778 = vmatpush3.bf16.msra.mxu1 %v5777_v36 }
0x11c3   :  { %4157 = vperm.xlu1 %5864, %v4488_v63   ;;  %5902 = vrot.lane.b32.xlu0 %v5901_v59, %s6217_s29  ;;  %v5783_v63 = vpack.c.bf16 %v4482_v7, %v4481_v22 }
0x11c4   :  { %5779 = vmatprep.subr.bf16.mxu1 %v6211_v0 }
0x11c6   :  { %5781 = vmatpush3.bf16.msra.mxu1 %v5780_v42 }
0x11c7   :  { %4167 = vperm.xlu1 %5864, %v4490_v25   ;;  %4162 = vperm.xlu0 %5865, %v4489_v14  }
0x11c8   :  { %5782 = vmatprep.subr.bf16.mxu1 %v6211_v0 }
0x11ca   :  { %5784 = vmatpush3.bf16.msra.mxu1 %v5783_v63 }
0x11cb   :  { %4177 = vperm.xlu1 %5864, %v4492_v43   ;;  %4172 = vperm.xlu0 %5865, %v4491_v57  }
0x11cf   :  { %4197 = vperm.xlu1 %5864, %v4186_v58   ;;  %4192 = vperm.xlu0 %5865, %v4185_v21  }
0x11d3   :  { %4207 = vperm.xlu1 %5864, %v4188_v2   ;;  %4202 = vperm.xlu0 %5865, %v4187_v23  }
0x11d7   :  { %4212 = vperm.xlu0 %5865, %v4189_v27  }
0x1221   :  { %v5878_v30 = vpop.permute.xlu1 %5877 }
0x1222   :  { %v5880_v40 = vunpack.i.h.bf16 %v5878_v30  ;;  %v5879_v13 = vunpack.i.l.bf16 %v5878_v30 }
0x1224   :  { %v5756_v19 = vpack.c.bf16 %v5880_v40, %v5879_v13 }
0x1225   :  { %v5883_v15 = vpop.permute.xlu0 %5882 }
0x1226   :  { %v5885_v50 = vunpack.i.h.bf16 %v5883_v15  ;;  %v5884_v3 = vunpack.i.l.bf16 %v5883_v15  ;;  %5757 = vmatpush3.bf16.msra.mxu0 %v5756_v19 }
0x1227   :  { %5758 = vmatprep.subr.bf16.mxu0 %v6211_v0 }
0x1228   :  { %v5759_v6 = vpack.c.bf16 %v5885_v50, %v5884_v3 }
0x1229   :  { %v5888_v28 = vpop.permute.xlu1 %5887 }
0x122a   :  { %v5890_v17 = vunpack.i.h.bf16 %v5888_v28  ;;  %v5889_v41 = vunpack.i.l.bf16 %v5888_v28  ;;  %5760 = vmatpush3.bf16.msra.mxu0 %v5759_v6 }
0x122b   :  { %5761 = vmatprep.subr.bf16.mxu0 %v6211_v0 }
0x122c   :  { %v5762_v60 = vpack.c.bf16 %v5890_v17, %v5889_v41 }
0x122d   :  { %v5893_v56 = vpop.permute.xlu0 %5892 }
0x122e   :  { %v5895_v12 = vunpack.i.h.bf16 %v5893_v56  ;;  %v5894_v61 = vunpack.i.l.bf16 %v5893_v56  ;;  %5763 = vmatpush3.bf16.msra.mxu0 %v5762_v60 }
0x122f   :  { %5764 = vmatprep.subr.bf16.mxu0 %v6211_v0 }
0x1230   :  { %v5765_v8 = vpack.c.bf16 %v5895_v12, %v5894_v61 }
0x1231   :  { %v5898_v33 = vpop.permute.xlu1 %5897  ;;  %5434 = vmatmul.mubr.msk.f32.vlgmr.msra.gmra.mrb[96].mxu0 %vm906_vm5, %v6078_v4 }
0x1232   :  { %v5900_v34 = vunpack.i.h.bf16 %v5898_v33  ;;  %v5899_v44 = vunpack.i.l.bf16 %v5898_v33  ;;  %5766 = vmatpush3.bf16.msra.mxu0 %v5765_v8  ;;  %5436 = vmatprep.mubr.msk.f32.mxu0 %vm6212_vm0, %v6213_v1 }
0x1233   :  { %5767 = vmatprep.subr.bf16.mxu0 %v6211_v0 }
0x1234   :  { %v5768_v18 = vpack.c.bf16 %v5900_v34, %v5899_v44 }
0x1235   :  { %v5903_v46 = vpop.permute.xlu0 %5902  ;;  %5437 = vmatmul.mubr.msk.f32.gmra.mrb[98].mxu0 %vm906_vm5, %v6079_v45 }
0x1236   :  { %v5905_v32 = vunpack.i.h.bf16 %v5903_v46  ;;  %v5904_v47 = vunpack.i.l.bf16 %v5903_v46  ;;  %5769 = vmatpush3.bf16.msra.mxu0 %v5768_v18  ;;  %5439 = vmatprep.mubr.msk.f32.mxu0 %vm6212_vm0, %v6213_v1 }
0x1237   :  { %5770 = vmatprep.subr.bf16.mxu0 %v6211_v0 }
0x1238   :  { %v5771_v31 = vpack.c.bf16 %v5905_v32, %v5904_v47 }
0x1239   :  { %5440 = vmatmul.mubr.msk.f32.gmra.mrb[100].mxu0 %vm906_vm5, %v6080_v26 }
0x123a   :  { %5772 = vmatpush3.bf16.msra.mxu0 %v5771_v31  ;;  %5442 = vmatprep.mubr.msk.f32.mxu0 %vm6212_vm0, %v6213_v1 }
0x123d   :  { %5443 = vmatmul.mubr.msk.f32.gmra.mrb[102].mxu0 %vm906_vm5, %v6081_v55 }
0x123e   :  { %5445 = vmatprep.mubr.msk.f32.mxu0 %vm6212_vm0, %v6213_v1 }
0x1241   :  { %5446 = vmatmul.mubr.msk.f32.gmra.mrb[104].mxu0 %vm906_vm5, %v6082_v9 }
0x1242   :  { %5460 = vmatprep.mubr.msk.f32.mxu0 %vm6212_vm0, %v6213_v1 }
0x1245   :  { %5461 = vmatmul.mubr.msk.f32.vlgmr.msra.gmra.mrb[96].mxu0 %vm906_vm5, %v6083_v20 }
0x1246   :  { %5463 = vmatprep.mubr.msk.f32.mxu0 %vm6212_vm0, %v6213_v1 }
0x1249   :  { %5464 = vmatmul.mubr.msk.f32.gmra.mrb[98].mxu0 %vm906_vm5, %v6084_v10 }
0x124a   :  { %5466 = vmatprep.mubr.msk.f32.mxu0 %vm6212_vm0, %v6213_v1 }
0x124d   :  { %5467 = vmatmul.mubr.msk.f32.gmra.mrb[100].mxu0 %vm906_vm5, %v6085_v51 }
0x124e   :  { %5469 = vmatprep.mubr.msk.f32.mxu0 %vm6212_vm0, %v6213_v1 }
0x1251   :  { %5470 = vmatmul.mubr.msk.f32.gmra.mrb[102].mxu0 %vm906_vm5, %v6086_v54 }
0x1252   :  { %5472 = vmatprep.mubr.msk.f32.mxu0 %vm6212_vm0, %v6213_v1 }
0x1255   :  { %5473 = vmatmul.mubr.msk.f32.gmra.mrb[104].mxu0 %vm906_vm5, %v6087_v38 }
0x1318   :  { %v7669_v59 = vpop.f32.mrb[96].mxu0 }
0x1319   :  { %v7672_v25 = vmul.f32 0.70710677, %v7669_v59  ;;  %v5462_v14 = vpop.f32.mrb[97].mxu0 }
0x131b   :  { %v3914_v43 = vand.u32 2147483647, %v7672_v25  ;;  %vm3904_vm11 = vcmp.lt.f32.partialorder %v7672_v25, 0.0 }
0x131c   :  { %v7675_v57 = vpop.f32.mrb[98].mxu0 }
0x131d   :  { %v3919_v0 = vmul.f32 0.3275911, %v3914_v43  ;;  %v7678_v21 = vmul.f32 0.70710677, %v7675_v57  ;;  %v5465_v58 = vpop.f32.mrb[99].mxu0  ;;  %v3984_v17 = vsub.f32 0.0, %v3914_v43 }
0x131f   :  { %v3924_v23 = vadd.f32 1.0, %v3919_v0  ;;  %v3915_v2 = vand.u32 2147483647, %v7678_v21  ;;  %v3989_v4 = vmul.f32 %v3984_v17, %v3914_v43  ;;  %vm3905_vm12 = vcmp.lt.f32.partialorder %v7678_v21, 0.0 }
0x1320   :  { %v7681_v27 = vpop.f32.mrb[100].mxu0 }
0x1321   :  { %6022 = vrcp.f32 %v3924_v23  ;;  %v3920_v30 = vmul.f32 0.3275911, %v3915_v2  ;;  %v5468_v40 = vpop.f32.mrb[101].mxu0  ;;  %v7684_v13 = vmul.f32 0.70710677, %v7681_v27  ;;  %v3985_v34 = vsub.f32 0.0, %v3915_v2 }
0x1322   :  { %v3994_v31 = vmul.f32 1.442695, %v3989_v4 }
0x1323   :  { %v3925_v19 = vadd.f32 1.0, %v3920_v30  ;;  %v3916_v15 = vand.u32 2147483647, %v7684_v13  ;;  %v3990_v26 = vmul.f32 %v3985_v34, %v3915_v2  ;;  %vm3906_vm13 = vcmp.lt.f32.partialorder %v7684_v13, 0.0 }
0x1324   :  { %v7687_v50 = vpop.f32.mrb[102].mxu0 }
0x1325   :  { %6024 = vrcp.f32 %v3925_v19  ;;  %v5471_v3 = vpop.f32.mrb[103].mxu0  ;;  %v3921_v6 = vmul.f32 0.3275911, %v3916_v15  ;;  %v7690_v28 = vmul.f32 0.70710677, %v7687_v50  ;;  %v3986_v55 = vsub.f32 0.0, %v3916_v15 }
0x1326   :  { %v3996_v38 = vmul.f32 1.442695, %v3990_v26 }
0x1327   :  { %v3926_v41 = vadd.f32 1.0, %v3921_v6  ;;  %v3917_v60 = vand.u32 2147483647, %v7690_v28  ;;  %v3991_v49 = vmul.f32 %v3986_v55, %v3916_v15  ;;  %vm3907_vm14 = vcmp.lt.f32.partialorder %v7690_v28, 0.0 }
0x1328   :  { %v7693_v56 = vpop.f32.mrb[104].mxu0 }
0x1329   :  { %v7696_v12 = vmul.f32 0.70710677, %v7693_v56  ;;  %v5474_v61 = vpop.f32.mrb[105].mxu0  ;;  %6026 = vrcp.f32 %v3926_v41  ;;  %v3922_v8 = vmul.f32 0.3275911, %v3917_v60  ;;  %v3987_v16 = vsub.f32 0.0, %v3917_v60 }
0x132a   :  { %v3998_v22 = vmul.f32 1.442695, %v3991_v49 }
0x132b   :  { %v6023_v33 = vpop.eup %6022  ;;  %v3918_v44 = vand.u32 2147483647, %v7696_v12  ;;  %v3927_v46 = vadd.f32 1.0, %v3922_v8  ;;  %v3992_v0 = vmul.f32 %v3987_v16, %v3917_v60  ;;  %vm3908_vm15 = vcmp.lt.f32.partialorder %v7696_v12, 0.0 }
0x132c   :  { %v3939_v18 = vmul.f32 1.0614054, %v6023_v33 }
0x132d   :  { %v3923_v45 = vmul.f32 0.3275911, %v3918_v44  ;;  %6028 = vrcp.f32 %v3927_v46  ;;  %v3988_v7 = vsub.f32 0.0, %v3918_v44  ;;  %v4000_v41 = vmul.f32 1.442695, %v3992_v0 }
0x132e   :  { %v3944_v32 = vadd.f32 -1.4531521, %v3939_v18  ;;  %v3895_v0 = vmul.f32 0.5, %v7675_v57 }
0x132f   :  { %v6025_v47 = vpop.eup %6024  ;;  %v3928_v9 = vadd.f32 1.0, %v3923_v45  ;;  %v3993_v3 = vmul.f32 %v3988_v7, %v3918_v44 }
0x1330   :  { %v3949_v20 = vmul.f32 %v6023_v33, %v3944_v32  ;;  %v3940_v10 = vmul.f32 1.0614054, %v6025_v47 }
0x1331   :  { %6030 = vrcp.f32 %v3928_v9 }
0x1332   :  { %v3954_v51 = vadd.f32 1.4214138, %v3949_v20  ;;  %v3945_v54 = vadd.f32 -1.4531521, %v3940_v10  ;;  %6032 = vpow2.f32 %v3994_v31  ;;  %v4002_v31 = vmul.f32 1.442695, %v3993_v3 }
0x1333   :  { %v6027_v11 = vpop.eup %6026  ;;  %6034 = vpow2.f32 %v3996_v38 }
0x1334   :  { %v3959_v53 = vmul.f32 %v6023_v33, %v3954_v51  ;;  %v3950_v39 = vmul.f32 %v6025_v47, %v3945_v54  ;;  %v3941_v36 = vmul.f32 1.0614054, %v6027_v11  ;;  %6036 = vpow2.f32 %v3998_v22 }
0x1335   :  { %6038 = vpow2.f32 %v4000_v41 }
0x1336   :  { %v3964_v24 = vadd.f32 -0.28449672, %v3959_v53  ;;  %v3955_v62 = vadd.f32 1.4214138, %v3950_v39  ;;  %v3946_v42 = vadd.f32 -1.4531521, %v3941_v36  ;;  %6040 = vpow2.f32 %v4002_v31 }
0x1337   :  { %v6029_v63 = vpop.eup %6028  ;;  %v3894_v53 = vmul.f32 0.5, %v7669_v59 }
0x1338   :  { %v3969_v14 = vmul.f32 %v6023_v33, %v3964_v24  ;;  %v3960_v43 = vmul.f32 %v6025_v47, %v3955_v62  ;;  %v3951_v58 = vmul.f32 %v6027_v11, %v3946_v42  ;;  %v3942_v23 = vmul.f32 1.0614054, %v6029_v63 }
0x1339   :  { %v3910_v24 = vsel %vm3905_vm12, -1.0, %v6218_v37 }
0x133a   :  { %v3974_v2 = vadd.f32 0.2548296, %v3969_v14  ;;  %v3965_v30 = vadd.f32 -0.28449672, %v3960_v43  ;;  %v3956_v19 = vadd.f32 1.4214138, %v3951_v58 }
0x133b   :  { %v6031_v40 = vpop.eup %6030  ;;  %v3947_v15 = vadd.f32 -1.4531521, %v3942_v23 }
0x133c   :  { %v3979_v6 = vmul.f32 %v6023_v33, %v3974_v2  ;;  %v3970_v17 = vmul.f32 %v6025_v47, %v3965_v30  ;;  %v3943_v61 = vmul.f32 1.0614054, %v6031_v40  ;;  %v6033_v8 = vpop.eup %6032  ;;  %v3961_v4 = vmul.f32 %v6027_v11, %v3956_v19 }
0x133d   :  { %v3952_v34 = vmul.f32 %v6029_v63, %v3947_v15  ;;  %v6035_v44 = vpop.eup %6034  ;;  %v3909_v33 = vsel %vm3904_vm11, -1.0, %v6218_v37  ;;  %v3911_v19 = vsel %vm3906_vm13, -1.0, %v6218_v37 }
0x133e   :  { %v4004_v18 = vmul.f32 %v6033_v8, %v3979_v6  ;;  %v3975_v60 = vadd.f32 0.2548296, %v3970_v17  ;;  %v3948_v46 = vadd.f32 -1.4531521, %v3943_v61  ;;  %v3966_v45 = vadd.f32 -0.28449672, %v3961_v4  ;;  %v6037_v36 = vpop.eup %6036 }
0x133f   :  { %v3957_v32 = vadd.f32 1.4214138, %v3952_v34  ;;  %v3896_v17 = vmul.f32 0.5, %v7681_v27  ;;  %v3912_v61 = vsel %vm3907_vm14, -1.0, %v6218_v37 }
0x1340   :  { %v4009_v26 = vsub.f32 1.0, %v4004_v18  ;;  %v3980_v55 = vmul.f32 %v6025_v47, %v3975_v60  ;;  %v3953_v9 = vmul.f32 %v6031_v40, %v3948_v46  ;;  %v3971_v20 = vmul.f32 %v6027_v11, %v3966_v45 }
0x1341   :  { %v3962_v10 = vmul.f32 %v6029_v63, %v3957_v32  ;;  %v3913_v60 = vsel %vm3908_vm15, -1.0, %v6218_v37  ;;  %v3898_v45 = vmul.f32 0.5, %v7693_v56  ;;  %v4163_v37 = vpop.permute.xlu0 %4162  ;;  %v4040_v56 = vld [vmem:[#allocation6 + $0x30] sm:$0xff] }
0x1342   :  { %v4014_v51 = vmul.f32 %v4009_v26, %v3909_v33  ;;  %v4005_v54 = vmul.f32 %v6035_v44, %v3980_v55  ;;  %v3958_v25 = vadd.f32 1.4214138, %v3953_v9  ;;  %v3976_v38 = vadd.f32 0.2548296, %v3971_v20  ;;  %v4039_v9 = vld [vmem:[#allocation6 + $0x28] sm:$0xff] }
0x1343   :  { %v3967_v49 = vadd.f32 -0.28449672, %v3962_v10 }
0x1344   :  { %v4019_v39 = vadd.f32 1.0, %v4014_v51  ;;  %v4010_v16 = vsub.f32 1.0, %v4005_v54  ;;  %v3963_v47 = vmul.f32 %v6031_v40, %v3958_v25  ;;  %v3981_v62 = vmul.f32 %v6027_v11, %v3976_v38  ;;  %v6039_v11 = vpop.eup %6038 }
0x1345   :  { %v3972_v42 = vmul.f32 %v6029_v63, %v3967_v49  ;;  %v6041_v57 = vpop.eup %6040  ;;  %v4173_v26 = vpop.permute.xlu0 %4172 }
0x1346   :  { %v4024_v22 = vmul.f32 %v4019_v39, %v3894_v53  ;;  %v4015_v7 = vmul.f32 %v4010_v16, %v3910_v24  ;;  %v3968_v14 = vadd.f32 -0.28449672, %v3963_v47  ;;  %v4006_v21 = vmul.f32 %v6037_v36, %v3981_v62  ;;  %v4041_v47 = vld [vmem:[#allocation6 + $0x38] sm:$0xff] }
0x1347   :  { %v3977_v43 = vadd.f32 0.2548296, %v3972_v42 }
0x1348   :  { %v4020_v58 = vadd.f32 1.0, %v4015_v7  ;;  %v3973_v23 = vmul.f32 %v6031_v40, %v3968_v14  ;;  %5492 = vmatmul.mubr.msk.f32.vlgmr.msra.gmra.mrb[90].mxu1 %vm259_vm2, %v4024_v22  ;;  %v4011_v59 = vsub.f32 1.0, %v4006_v21 }
0x1349   :  { %v3982_v2 = vmul.f32 %v6029_v63, %v3977_v43  ;;  %5494 = vmatprep.mubr.msk.f32.mxu1 %vm6212_vm0, %v6213_v1  ;;  %v4193_v44 = vpop.permute.xlu0 %4192 }
0x134a   :  { %v4025_v30 = vmul.f32 %v4020_v58, %v3895_v0  ;;  %v3978_v15 = vadd.f32 0.2548296, %v3973_v23  ;;  %v4016_v3 = vmul.f32 %v4011_v59, %v3911_v19  ;;  %v4215_v51 = vmul.f32 %v4193_v44, %v7146_v5  ;;  %v4042_v5 = vld [vmem:[#allocation6 + $0x40] sm:$0xff]  ;;  %v4043_v23 = vld [vmem:[#allocation6 + $0x48] sm:$0xff] }
0x134b   :  { %v4007_v13 = vmul.f32 %v6039_v11, %v3982_v2 }
0x134c   :  { %v3983_v6 = vmul.f32 %v6031_v40, %v3978_v15  ;;  %5495 = vmatmul.mubr.msk.f32.gmra.mrb[92].mxu1 %vm259_vm2, %v4025_v30  ;;  %v4021_v41 = vadd.f32 1.0, %v4016_v3  ;;  %v3897_v40 = vmul.f32 0.5, %v7687_v50  ;;  %v4158_v50 = vpop.permute.xlu1 %4157 }
0x134d   :  { %v4012_v63 = vsub.f32 1.0, %v4007_v13  ;;  %5497 = vmatprep.mubr.msk.f32.mxu1 %vm6212_vm0, %v6213_v1  ;;  %v4203_v36 = vpop.permute.xlu0 %4202 }
0x134e   :  { %v4008_v8 = vmul.f32 %v6041_v57, %v3983_v6  ;;  %v4026_v4 = vmul.f32 %v4021_v41, %v3896_v17  ;;  %v4217_v7 = vmul.f32 %v4203_v36, %v7162_v29 }
0x134f   :  { %v4017_v34 = vmul.f32 %v4012_v63, %v3912_v61 }
0x1350   :  { %v4013_v28 = vsub.f32 1.0, %v4008_v8  ;;  %5498 = vmatmul.mubr.msk.f32.gmra.mrb[94].mxu1 %vm259_vm2, %v4026_v4  ;;  %v4168_v31 = vpop.permute.xlu1 %4167 }
0x1351   :  { %v4022_v18 = vadd.f32 1.0, %v4017_v34  ;;  %5500 = vmatprep.mubr.msk.f32.mxu1 %vm6212_vm0, %v6213_v1  ;;  %v4213_v11 = vpop.permute.xlu0 %4212 }
0x1352   :  { %v4018_v27 = vmul.f32 %v4013_v28, %v3913_v60  ;;  %v4219_v13 = vmul.f32 %v4213_v11, %v7178_v52 }
0x1353   :  { %v4027_v46 = vmul.f32 %v4022_v18, %v3897_v40 }
0x1354   :  { %v4023_v32 = vadd.f32 1.0, %v4018_v27  ;;  %v4178_v55 = vpop.permute.xlu1 %4177 }
0x1355   :  { %5501 = vmatmul.mubr.msk.f32.gmra.mrb[96].mxu1 %vm259_vm2, %v4027_v46 }
0x1356   :  { %v4028_v12 = vmul.f32 %v4023_v32, %v3898_v45  ;;  %5503 = vmatprep.mubr.msk.f32.mxu1 %vm6212_vm0, %v6213_v1 }
0x1358   :  { %v4198_v25 = vpop.permute.xlu1 %4197 }
0x1359   :  { %5504 = vmatmul.mubr.msk.f32.gmra.mrb[98].mxu1 %vm259_vm2, %v4028_v12  ;;  %v4216_v39 = vmul.f32 %v4198_v25, %v7154_v35 }
0x135c   :  { %v4208_v21 = vpop.permute.xlu1 %4207 }
0x135d   :  { %v4218_v59 = vmul.f32 %v4208_v21, %v7170_v48 }
0x141b   :  { %v4125_v33 = vpop.f32.mrb[90].mxu1 }
0x141c   :  { %v4126_v20 = vadd.f32 %v4125_v33, %v4039_v9  ;;  %v5493_v10 = vpop.f32.mrb[91].mxu1 }
0x141e   :  { %v4180_v54 = vmul.f32 %v4158_v50, %v4126_v20 }
0x141f   :  { %v4130_v38 = vpop.f32.mrb[92].mxu1 }
0x1420   :  { %v4131_v49 = vadd.f32 %v4130_v38, %v4040_v56  ;;  %v5496_v1 = vpop.f32.mrb[93].mxu1  ;;  %v4220_v53 = vadd.f32 %v4215_v51, %v4180_v54 }
0x1422   :  { %v4181_v16 = vmul.f32 %v4163_v37, %v4131_v49  ;;  %4230 = vrot.lane.b32.xlu1 %v4220_v53, %s6217_s29 }
0x1423   :  { %v4135_v24 = vpop.f32.mrb[94].mxu1 }
0x1424   :  { %v4221_v62 = vadd.f32 %v4216_v39, %v4181_v16  ;;  %v4136_v42 = vadd.f32 %v4135_v24, %v4041_v47  ;;  %v5499_v22 = vpop.f32.mrb[95].mxu1 }
0x1426   :  { %4232 = vrot.lane.b32.xlu0 %v4221_v62, %s6217_s29  ;;  %v4182_v14 = vmul.f32 %v4168_v31, %v4136_v42 }
0x1428   :  { %v4140_v43 = vpop.f32.mrb[96].mxu1  ;;  %v4222_v35 = vadd.f32 %v4217_v7, %v4182_v14 }
0x1429   :  { %v4141_v0 = vadd.f32 %v4140_v43, %v4042_v5  ;;  %v5502_v58 = vpop.f32.mrb[97].mxu1 }
0x142a   :  { %4234 = vrot.lane.b32.xlu1 %v4222_v35, %s6217_s29 }
0x142b   :  { %v4183_v2 = vmul.f32 %v4173_v26, %v4141_v0 }
0x142c   :  { %v4145_v30 = vpop.f32.mrb[98].mxu1 }
0x142d   :  { %v4146_v19 = vadd.f32 %v4145_v30, %v4043_v23  ;;  %v5505_v15 = vpop.f32.mrb[99].mxu1  ;;  %v4223_v3 = vadd.f32 %v4218_v59, %v4183_v2 }
0x142f   :  { %v4184_v29 = vmul.f32 %v4178_v55, %v4146_v19  ;;  %4236 = vrot.lane.b32.xlu0 %v4223_v3, %s6217_s29 }
0x1431   :  { %v4224_v6 = vadd.f32 %v4219_v13, %v4184_v29 }
0x1433   :  { %4238 = vrot.lane.b32.xlu1 %v4224_v6, %s6217_s29 }
0x1494   :  { %v4231_v57 = vpop.permute.xlu1 %4230 }
0x1495   :  { %v4245_v17 = vadd.f32 %v4231_v57, %v4220_v53 }
0x1497   :  { %4250 = vst.msk [vmem:[%s7772_s15] sm:$0xff] %vm738_vm4, %v4245_v17 }
0x1498   :  { %v4233_v48 = vpop.permute.xlu0 %4232 }
0x1499   :  { %v4246_v41 = vadd.f32 %v4233_v48, %v4221_v62 }
0x149b   :  { %4251 = vst.msk [vmem:[%s7772_s15 + $0x8] sm:$0xff] %vm738_vm4, %v4246_v41 }
0x149c   :  { %v4235_v52 = vpop.permute.xlu1 %4234 }
0x149d   :  { %v4247_v63 = vadd.f32 %v4235_v52, %v4222_v35 }
0x149f   :  { %4252 = vst.msk [vmem:[%s7772_s15 + $0x10] sm:$0xff] %vm738_vm4, %v4247_v63 }
0x14a1   :  { %v4237_v61 = vpop.permute.xlu0 %4236 }
0x14a2   :  { %v4248_v8 = vadd.f32 %v4237_v61, %v4223_v3 }
0x14a4   :  { %4253 = vst.msk [vmem:[%s7772_s15 + $0x18] sm:$0xff] %vm738_vm4, %v4248_v8 }
0x14a5   :  { %v4239_v4 = vpop.permute.xlu1 %4238 }
0x14a6   :  { %v4249_v34 = vadd.f32 %v4239_v4, %v4224_v6 }
0x14a8   :  { %4254 = vst.msk [vmem:[%s7772_s15 + $0x20] sm:$0xff] %vm738_vm4, %v4249_v34 }
0x14a9   :  { %4259 = vsyncpa [#allocation3], 1 }
0x14aa   :  { %4260 = vsyncpa [#allocation5], 1 }
0x14ab   :  { %4261 = vsyncpa [#allocation8], 1 }

</bundles_post_ra>
